<compile_context>
chip_gen: v5e
topology: v5e:2x2
jax: 0.10.0
libtpu: 0.0.40
codegen_flags: <defaults>
</compile_context>

<pallas_src>
import functools
import math

import jax
import jax.numpy as jnp
from jax.experimental import pallas as pl
from jax.experimental.pallas import tpu as pltpu  # noqa: F401  (TPU backend)

D_MODEL = 32
NUM_HEADS = 4
D_FF = 64
EPS = 1e-5  # nn.LayerNorm default
HEAD_DIM = D_MODEL // NUM_HEADS

# dense weight-slab geometry (f32): 64 KiB total, ~80% real data
W_ROWS, W_COLS = 64, 256
OUT_LANES = 128  # lane-dense output width; real data lives in lanes 0..D_MODEL-1


def _layernorm(x, gamma, beta):
    mu = jnp.mean(x, axis=-1, keepdims=True)
    var = jnp.mean((x - mu) ** 2, axis=-1, keepdims=True)
    # exact sqrt + divide (matches nn.LayerNorm); no approximate rsqrt
    return (x - mu) * (1.0 / jnp.sqrt(var + EPS)) * gamma + beta


def decoder_layer_kernel(xf_ref, encf_ref, tbias_ref, sbias_ref, w_ref, p_ref,
                         out_ref, *, B, Tq, Tk):
    H, dk = NUM_HEADS, HEAD_DIM
    scale = 1.0 / math.sqrt(dk)

    xf = xf_ref[...]          # (B*Tq, D)
    encf = encf_ref[...]      # (B*Tk, D)
    tbias = tbias_ref[...]    # (B, Tq, Tq) additive mask bias: 0 keep / -1e9 masked
    sbias = sbias_ref[...]    # (B, Tq, Tk)

    # ---- densely packed parameters (static slices of the (64, 256) slab) ----
    # block 0 (lanes 0-127):  rows 0-31 -> [wqkv1 | wo1], rows 32-63 -> [w1 | wq2 | wo2]
    # block 1 (lanes 128-255): rows 0-63 lanes 128-159 -> w2, rows 0-31 lanes 160-223 -> wkv2
    wqkv1 = w_ref[0:D_MODEL, 0:3 * D_MODEL]                     # (32, 96)
    wo1   = w_ref[0:D_MODEL, 96:96 + D_MODEL]                   # (32, 32)
    w1    = w_ref[D_MODEL:2 * D_MODEL, 0:D_FF]                  # (32, 64)
    wq2   = w_ref[D_MODEL:2 * D_MODEL, 64:64 + D_MODEL]         # (32, 32)
    wo2   = w_ref[D_MODEL:2 * D_MODEL, 96:96 + D_MODEL]         # (32, 32)
    w2    = w_ref[0:D_FF, 128:128 + D_MODEL]                    # (64, 32)
    wkv2  = w_ref[0:D_MODEL, 160:160 + 2 * D_MODEL]             # (32, 64)

    bqkv1 = p_ref[0:1, 0:3 * D_MODEL]
    bo1   = p_ref[1:2, 0:D_MODEL]
    bq2   = p_ref[2:3, 0:D_MODEL]
    bkv2  = p_ref[3:4, 0:2 * D_MODEL]
    bo2   = p_ref[4:5, 0:D_MODEL]
    b1    = p_ref[5:6, 0:D_FF]
    b2    = p_ref[6:7, 0:D_MODEL]
    g1, be1 = p_ref[7:8, 0:D_MODEL], p_ref[8:9, 0:D_MODEL]
    g2, be2 = p_ref[9:10, 0:D_MODEL], p_ref[10:11, 0:D_MODEL]
    g3, be3 = p_ref[11:12, 0:D_MODEL], p_ref[12:13, 0:D_MODEL]

    def to_heads(t2d, T):
        # (B*T, D) -> (B*H, T, dk): one minor-dim split + one sublane-axis swap.
        # Single fused relayout per tensor (replaces H lane-slices + stack).
        return jnp.swapaxes(t2d.reshape(B, T, H, dk), 1, 2).reshape(B * H, T, dk)

    def attention(q2d, k2d, v2d, bias, tq, tk, wo, bo):
        qh = to_heads(q2d, tq)     # (B*H, tq, dk)
        kh = to_heads(k2d, tk)     # (B*H, tk, dk)
        vh = to_heads(v2d, tk)     # (B*H, tk, dk)
        # one batched dot over all (batch, head) pairs, no explicit K transpose
        s = jnp.einsum('nqd,nkd->nqk', qh, kh,
                       preferred_element_type=jnp.float32) * scale
        # additive mask bias (precomputed wrapper-side): one broadcast add,
        # no compare/select, no bool vreg
        s = s.reshape(B, H, tq, tk) + bias[:, None, :, :]
        m = jnp.max(s, axis=-1, keepdims=True)
        e = jnp.exp(s - m)
        l = jnp.sum(e, axis=-1, keepdims=True)
        # EXACT softmax normalization (correctness fix: approx reciprocal was 3.8e-3 off)
        p = e * (1.0 / l)
        o = jnp.einsum('nqk,nkd->nqd', p.reshape(B * H, tq, tk), vh,
                       preferred_element_type=jnp.float32)
        # merge heads back to features: one swap + one minor-dim merge
        o = jnp.swapaxes(o.reshape(B, H, tq, dk), 1, 2).reshape(B * tq, D_MODEL)
        return jnp.dot(o, wo, preferred_element_type=jnp.float32) + bo

    # 1) masked self-attention (fused QKV projection) + residual + LayerNorm
    qkv = jnp.dot(xf, wqkv1, preferred_element_type=jnp.float32) + bqkv1   # (B*Tq, 3D)
    sa = attention(qkv[:, 0:D_MODEL], qkv[:, D_MODEL:2 * D_MODEL],
                   qkv[:, 2 * D_MODEL:3 * D_MODEL], tbias, Tq, Tq, wo1, bo1)
    x1 = _layernorm(xf + sa, g1, be1)

    # 2) cross-attention (fused KV projection of encoder output) + residual + LN
    q2 = jnp.dot(x1, wq2, preferred_element_type=jnp.float32) + bq2         # (B*Tq, D)
    kv2 = jnp.dot(encf, wkv2, preferred_element_type=jnp.float32) + bkv2    # (B*Tk, 2D)
    ca = attention(q2, kv2[:, 0:D_MODEL], kv2[:, D_MODEL:2 * D_MODEL],
                   sbias, Tq, Tk, wo2, bo2)
    x2 = _layernorm(x1 + ca, g2, be2)

    # 3) position-wise feed-forward + residual + LayerNorm
    hdn = jnp.maximum(jnp.dot(x2, w1, preferred_element_type=jnp.float32) + b1, 0.0)
    ff = jnp.dot(hdn, w2, preferred_element_type=jnp.float32) + b2
    x3 = _layernorm(x2 + ff, g3, be3)

    # lane-dense 128-wide unmasked store; wrapper slices [:, :D_MODEL]
    pad = jnp.zeros((B * Tq, OUT_LANES - D_MODEL), jnp.float32)
    out_ref[...] = jnp.concatenate([x3, pad], axis=-1).astype(out_ref.dtype)


def _pack_params(p):
    """Fuse QKV / KV projections and pack everything into two dense slabs."""
    wqkv1 = jnp.concatenate([p["wq1"], p["wk1"], p["wv1"]], axis=1)   # (D, 3D)
    bqkv1 = jnp.concatenate([p["bq1"], p["bk1"], p["bv1"]], axis=1)   # (1, 3D)
    wkv2 = jnp.concatenate([p["wk2"], p["wv2"]], axis=1)              # (D, 2D)
    bkv2 = jnp.concatenate([p["bk2"], p["bv2"]], axis=1)              # (1, 2D)

    w_slab = jnp.zeros((W_ROWS, W_COLS), jnp.float32)
    w_slab = w_slab.at[0:D_MODEL, 0:3 * D_MODEL].set(wqkv1)
    w_slab = w_slab.at[0:D_MODEL, 96:96 + D_MODEL].set(p["wo1"])
    w_slab = w_slab.at[D_MODEL:2 * D_MODEL, 0:D_FF].set(p["w1"])
    w_slab = w_slab.at[D_MODEL:2 * D_MODEL, 64:64 + D_MODEL].set(p["wq2"])
    w_slab = w_slab.at[D_MODEL:2 * D_MODEL, 96:96 + D_MODEL].set(p["wo2"])
    w_slab = w_slab.at[0:D_FF, 128:128 + D_MODEL].set(p["w2"])
    w_slab = w_slab.at[0:D_MODEL, 160:160 + 2 * D_MODEL].set(wkv2)

    rows = [bqkv1, p["bo1"], p["bq2"], bkv2, p["bo2"], p["b1"], p["b2"],
            p["g1"], p["be1"], p["g2"], p["be2"], p["g3"], p["be3"]]
    p_slab = jnp.zeros((16, 128), jnp.float32)
    for i, r in enumerate(rows):
        p_slab = p_slab.at[i:i + 1, 0:r.shape[1]].set(r)
    return w_slab, p_slab


def decoder_layer(x, enc, tgt_mask, src_mask, p):
    B, Tq, D = x.shape
    Tk = enc.shape[1]
    w_slab, p_slab = _pack_params(p)

    # additive mask bias: 1 -> 0 (keep), 0 -> -1e9 (masked); replaces in-kernel
    # compare + select.  Numerically identical to where(mask==0, -1e9, s) here.
    tgt_bias = (tgt_mask - 1.0) * 1e9
    src_bias = (src_mask - 1.0) * 1e9

    xf = x.reshape(B * Tq, D)
    encf = enc.reshape(B * Tk, D)

    # Whole problem (<1 MiB) fits in VMEM -> single grid-less invocation.
    # NOTE: for a full N-layer decoder, add a leading layer axis to the slabs and
    # loop layers inside one pallas_call; on v7x at large B*Tq add a leading
    # "parallel" batch grid axis to use the second TensorCore.
    out2d = pl.pallas_call(
        functools.partial(decoder_layer_kernel, B=B, Tq=Tq, Tk=Tk),
        out_shape=jax.ShapeDtypeStruct((B * Tq, OUT_LANES), jnp.float32),
    )(xf, encf, tgt_bias, src_bias, w_slab, p_slab)
    return out2d[:, :D_MODEL].reshape(B, Tq, D)


# ------------------------------ pure-JAX reference ------------------------------
def ref_decoder_layer(x, enc, tgt_mask, src_mask, p):
    def mha_ref(q_in, kv_in, mask, wq, bq, wk, bk, wv, bv, wo, bo):
        Q = q_in @ wq + bq
        K = kv_in @ wk + bk
        V = kv_in @ wv + bv
        B, Tq, D = Q.shape
        Tk = K.shape[1]
        H, dk = NUM_HEADS, D // NUM_HEADS
        Qh = Q.reshape(B, Tq, H, dk).transpose(0, 2, 1, 3)
        Kh = K.reshape(B, Tk, H, dk).transpose(0, 2, 1, 3)
        Vh = V.reshape(B, Tk, H, dk).transpose(0, 2, 1, 3)
        scores = jnp.einsum("bhqd,bhkd->bhqk", Qh, Kh) / math.sqrt(dk)
        scores = jnp.where(mask[:, None, :, :] == 0, -1e9, scores)
        attn = jax.nn.softmax(scores, axis=-1)
        out = jnp.einsum("bhqk,bhkd->bhqd", attn, Vh)
        out = out.transpose(0, 2, 1, 3).reshape(B, Tq, D)
        return out @ wo + bo

    def ln(v, g, b):
        mu = v.mean(-1, keepdims=True)
        var = ((v - mu) ** 2).mean(-1, keepdims=True)
        return (v - mu) / jnp.sqrt(var + EPS) * g + b

    sa = mha_ref(x, x, tgt_mask, p["wq1"], p["bq1"], p["wk1"], p["bk1"],
                 p["wv1"], p["bv1"], p["wo1"], p["bo1"])
    x1 = ln(x + sa, p["g1"], p["be1"])
    ca = mha_ref(x1, enc, src_mask, p["wq2"], p["bq2"], p["wk2"], p["bk2"],
                 p["wv2"], p["bv2"], p["wo2"], p["bo2"])
    x2 = ln(x1 + ca, p["g2"], p["be2"])
    h = jax.nn.relu(x2 @ p["w1"] + p["b1"])
    ff = h @ p["w2"] + p["b2"]
    return ln(x2 + ff, p["g3"], p["be3"])


# ------------------------------ parameter init ------------------------------
def init_params(key):
    keys = jax.random.split(key, 32)
    it = iter(keys)
    p = {}

    def lin(din, dout):
        w = jax.random.normal(next(it), (din, dout), jnp.float32) / math.sqrt(din)
        b = 0.02 * jax.random.normal(next(it), (1, dout), jnp.float32)
        return w, b

    for prefix in ("1", "2"):  # self-attn, cross-attn
        for name in ("q", "k", "v", "o"):
            w, b = lin(D_MODEL, D_MODEL)
            p[f"w{name}{prefix}"], p[f"b{name}{prefix}"] = w, b
    p["w1"], p["b1"] = lin(D_MODEL, D_FF)
    p["w2"], p["b2"] = lin(D_FF, D_MODEL)
    for i in ("1", "2", "3"):
        p[f"g{i}"] = 1.0 + 0.05 * jax.random.normal(next(it), (1, D_MODEL), jnp.float32)
        p[f"be{i}"] = 0.05 * jax.random.normal(next(it), (1, D_MODEL), jnp.float32)
    return p


if __name__ == "__main__":
    B, Tq, Tk = 2, 8, 16
    key = jax.random.PRNGKey(0)
    k_x, k_e, k_p = jax.random.split(key, 3)

    x = jax.random.normal(k_x, (B, Tq, D_MODEL), jnp.float32)
    enc = jax.random.normal(k_e, (B, Tk, D_MODEL), jnp.float32)
    # causal target mask, all-ones source mask (floats: 1 keep, 0 masked)
    tgt_mask = jnp.broadcast_to(
        jnp.tril(jnp.ones((Tq, Tq), jnp.float32)), (B, Tq, Tq))
    src_mask = jnp.ones((B, Tq, Tk), jnp.float32)

    params = init_params(k_p)

    out = decoder_layer(x, enc, tgt_mask, src_mask, params)
    out = jax.block_until_ready(out)

    ref = ref_decoder_layer(x, enc, tgt_mask, src_mask, params)
    assert out.shape == (B, Tq, D_MODEL)
    assert jnp.allclose(out, ref, atol=1e-3, rtol=1e-3), (
        f"max abs err {jnp.max(jnp.abs(out - ref))}")

    print("KERNEL_OK")
</pallas_src>

<mosaic_0001>
module attributes {stable_mosaic.version = 11 : i64} {
  func.func @decoder_layer_kernel(%arg0: memref<16x32xf32, #tpu.memory_space<vmem>>, %arg1: memref<32x32xf32, #tpu.memory_space<vmem>>, %arg2: memref<2x8x8xf32, #tpu.memory_space<vmem>>, %arg3: memref<2x8x16xf32, #tpu.memory_space<vmem>>, %arg4: memref<64x256xf32, #tpu.memory_space<vmem>>, %arg5: memref<16x128xf32, #tpu.memory_space<vmem>>, %arg6: memref<16x128xf32, #tpu.memory_space<vmem>>) attributes {dimension_semantics = [], scalar_prefetch = 0 : i64, scratch_operands = 0 : i64, tpu.core_type = #tpu.core_type<tc>} {
    %c0 = arith.constant 0 : index
    %c0_0 = arith.constant 0 : index
    %0 = vector.load %arg0[%c0, %c0_0] : memref<16x32xf32, #tpu.memory_space<vmem>>, vector<16x32xf32>
    %c0_1 = arith.constant 0 : index
    %c0_2 = arith.constant 0 : index
    %1 = vector.load %arg1[%c0_1, %c0_2] : memref<32x32xf32, #tpu.memory_space<vmem>>, vector<32x32xf32>
    %c0_3 = arith.constant 0 : index
    %c0_4 = arith.constant 0 : index
    %c0_5 = arith.constant 0 : index
    %2 = vector.load %arg2[%c0_3, %c0_4, %c0_5] : memref<2x8x8xf32, #tpu.memory_space<vmem>>, vector<2x8x8xf32>
    %c0_6 = arith.constant 0 : index
    %c0_7 = arith.constant 0 : index
    %c0_8 = arith.constant 0 : index
    %3 = vector.load %arg3[%c0_6, %c0_7, %c0_8] : memref<2x8x16xf32, #tpu.memory_space<vmem>>, vector<2x8x16xf32>
    %c0_9 = arith.constant 0 : index
    %c0_10 = arith.constant 0 : index
    %4 = vector.load %arg4[%c0_9, %c0_10] : memref<64x256xf32, #tpu.memory_space<vmem>>, vector<32x96xf32>
    %c0_11 = arith.constant 0 : index
    %c96 = arith.constant 96 : index
    %5 = vector.load %arg4[%c0_11, %c96] : memref<64x256xf32, #tpu.memory_space<vmem>>, vector<32x32xf32>
    %c32 = arith.constant 32 : index
    %c0_12 = arith.constant 0 : index
    %6 = vector.load %arg4[%c32, %c0_12] : memref<64x256xf32, #tpu.memory_space<vmem>>, vector<32x64xf32>
    %c32_13 = arith.constant 32 : index
    %c64 = arith.constant 64 : index
    %7 = vector.load %arg4[%c32_13, %c64] : memref<64x256xf32, #tpu.memory_space<vmem>>, vector<32x32xf32>
    %c32_14 = arith.constant 32 : index
    %c96_15 = arith.constant 96 : index
    %8 = vector.load %arg4[%c32_14, %c96_15] : memref<64x256xf32, #tpu.memory_space<vmem>>, vector<32x32xf32>
    %c0_16 = arith.constant 0 : index
    %c128 = arith.constant 128 : index
    %9 = vector.load %arg4[%c0_16, %c128] : memref<64x256xf32, #tpu.memory_space<vmem>>, vector<64x32xf32>
    %c0_17 = arith.constant 0 : index
    %c160 = arith.constant 160 : index
    %10 = vector.load %arg4[%c0_17, %c160] : memref<64x256xf32, #tpu.memory_space<vmem>>, vector<32x64xf32>
    %c0_18 = arith.constant 0 : index
    %c0_19 = arith.constant 0 : index
    %11 = vector.load %arg5[%c0_18, %c0_19] : memref<16x128xf32, #tpu.memory_space<vmem>>, vector<1x96xf32>
    %c1 = arith.constant 1 : index
    %c0_20 = arith.constant 0 : index
    %12 = vector.load %arg5[%c1, %c0_20] : memref<16x128xf32, #tpu.memory_space<vmem>>, vector<1x32xf32>
    %c2 = arith.constant 2 : index
    %c0_21 = arith.constant 0 : index
    %13 = vector.load %arg5[%c2, %c0_21] : memref<16x128xf32, #tpu.memory_space<vmem>>, vector<1x32xf32>
    %c3 = arith.constant 3 : index
    %c0_22 = arith.constant 0 : index
    %14 = vector.load %arg5[%c3, %c0_22] : memref<16x128xf32, #tpu.memory_space<vmem>>, vector<1x64xf32>
    %c4 = arith.constant 4 : index
    %c0_23 = arith.constant 0 : index
    %15 = vector.load %arg5[%c4, %c0_23] : memref<16x128xf32, #tpu.memory_space<vmem>>, vector<1x32xf32>
    %c5 = arith.constant 5 : index
    %c0_24 = arith.constant 0 : index
    %16 = vector.load %arg5[%c5, %c0_24] : memref<16x128xf32, #tpu.memory_space<vmem>>, vector<1x64xf32>
    %c6 = arith.constant 6 : index
    %c0_25 = arith.constant 0 : index
    %17 = vector.load %arg5[%c6, %c0_25] : memref<16x128xf32, #tpu.memory_space<vmem>>, vector<1x32xf32>
    %c7 = arith.constant 7 : index
    %c0_26 = arith.constant 0 : index
    %18 = vector.load %arg5[%c7, %c0_26] : memref<16x128xf32, #tpu.memory_space<vmem>>, vector<1x32xf32>
    %c8 = arith.constant 8 : index
    %c0_27 = arith.constant 0 : index
    %19 = vector.load %arg5[%c8, %c0_27] : memref<16x128xf32, #tpu.memory_space<vmem>>, vector<1x32xf32>
    %c9 = arith.constant 9 : index
    %c0_28 = arith.constant 0 : index
    %20 = vector.load %arg5[%c9, %c0_28] : memref<16x128xf32, #tpu.memory_space<vmem>>, vector<1x32xf32>
    %c10 = arith.constant 10 : index
    %c0_29 = arith.constant 0 : index
    %21 = vector.load %arg5[%c10, %c0_29] : memref<16x128xf32, #tpu.memory_space<vmem>>, vector<1x32xf32>
    %c11 = arith.constant 11 : index
    %c0_30 = arith.constant 0 : index
    %22 = vector.load %arg5[%c11, %c0_30] : memref<16x128xf32, #tpu.memory_space<vmem>>, vector<1x32xf32>
    %c12 = arith.constant 12 : index
    %c0_31 = arith.constant 0 : index
    %23 = vector.load %arg5[%c12, %c0_31] : memref<16x128xf32, #tpu.memory_space<vmem>>, vector<1x32xf32>
    %cst = arith.constant dense<0.000000e+00> : vector<16x96xf32>
    %24 = tpu.matmul %0, %4, %cst {dimension_numbers = #tpu.dot_dimension_numbers<[1], [0], [0], [1], [0, 0, 1, 1], [], []>} : vector<16x32xf32>, vector<32x96xf32>, vector<16x96xf32> -> vector<16x96xf32>
    %25 = vector.broadcast %11 : vector<1x96xf32> to vector<16x96xf32>
    %26 = arith.addf %24, %25 : vector<16x96xf32>
    %27 = vector.extract_strided_slice %26 {offsets = [0, 0], sizes = [16, 32], strides = [1, 1]} : vector<16x96xf32> to vector<16x32xf32>
    %28 = vector.extract_strided_slice %26 {offsets = [0, 32], sizes = [16, 32], strides = [1, 1]} : vector<16x96xf32> to vector<16x32xf32>
    %29 = vector.extract_strided_slice %26 {offsets = [0, 64], sizes = [16, 32], strides = [1, 1]} : vector<16x96xf32> to vector<16x32xf32>
    %30 = vector.shape_cast %27 : vector<16x32xf32> to vector<2x8x4x8xf32>
    %31 = tpu.transpose %30, [0, 2, 1, 3] : vector<2x8x4x8xf32> -> vector<2x4x8x8xf32>
    %32 = vector.shape_cast %31 : vector<2x4x8x8xf32> to vector<8x8x8xf32>
    %33 = vector.shape_cast %28 : vector<16x32xf32> to vector<2x8x4x8xf32>
    %34 = tpu.transpose %33, [0, 2, 1, 3] : vector<2x8x4x8xf32> -> vector<2x4x8x8xf32>
    %35 = vector.shape_cast %34 : vector<2x4x8x8xf32> to vector<8x8x8xf32>
    %36 = vector.shape_cast %29 : vector<16x32xf32> to vector<2x8x4x8xf32>
    %37 = tpu.transpose %36, [0, 2, 1, 3] : vector<2x8x4x8xf32> -> vector<2x4x8x8xf32>
    %38 = vector.shape_cast %37 : vector<2x4x8x8xf32> to vector<8x8x8xf32>
    "tpu.trace_start"() <{level = 10 : i32, message = "nqd,nkd->nqk"}> : () -> ()
    %cst_32 = arith.constant dense<0.000000e+00> : vector<8x8x8xf32>
    %39 = tpu.matmul %32, %35, %cst_32 {dimension_numbers = #tpu.dot_dimension_numbers<[2], [2], [1], [1], [0, 0, 0, 1, 1, 1], [0], [0]>} : vector<8x8x8xf32>, vector<8x8x8xf32>, vector<8x8x8xf32> -> vector<8x8x8xf32>
    "tpu.trace_stop"() : () -> ()
    %cst_33 = arith.constant 0.353553385 : f32
    %40 = vector.broadcast %cst_33 : f32 to vector<8x8x8xf32>
    %41 = arith.mulf %39, %40 : vector<8x8x8xf32>
    %42 = vector.shape_cast %41 : vector<8x8x8xf32> to vector<2x4x8x8xf32>
    %43 = vector.shape_cast %2 : vector<2x8x8xf32> to vector<2x1x8x8xf32>
    %44 = vector.broadcast %43 : vector<2x1x8x8xf32> to vector<2x4x8x8xf32>
    %45 = arith.addf %42, %44 : vector<2x4x8x8xf32>
    %cst_34 = arith.constant dense<0xFF800000> : vector<2x4x8xf32>
    %46 = vector.multi_reduction <maximumf>, %45, %cst_34 [3] : vector<2x4x8x8xf32> to vector<2x4x8xf32>
    %47 = vector.shape_cast %46 : vector<2x4x8xf32> to vector<2x4x8x1xf32>
    %48 = vector.broadcast %47 : vector<2x4x8x1xf32> to vector<2x4x8x8xf32>
    %49 = arith.subf %45, %48 : vector<2x4x8x8xf32>
    %50 = math.exp %49 : vector<2x4x8x8xf32>
    %cst_35 = arith.constant dense<0.000000e+00> : vector<2x4x8xf32>
    %51 = vector.multi_reduction <add>, %50, %cst_35 [3] : vector<2x4x8x8xf32> to vector<2x4x8xf32>
    %52 = vector.shape_cast %51 : vector<2x4x8xf32> to vector<2x4x8x1xf32>
    %cst_36 = arith.constant 1.000000e+00 : f32
    %53 = vector.broadcast %cst_36 : f32 to vector<2x4x8x1xf32>
    %54 = arith.divf %53, %52 : vector<2x4x8x1xf32>
    %55 = vector.broadcast %54 : vector<2x4x8x1xf32> to vector<2x4x8x8xf32>
    %56 = arith.mulf %50, %55 : vector<2x4x8x8xf32>
    %57 = vector.shape_cast %56 : vector<2x4x8x8xf32> to vector<8x8x8xf32>
    "tpu.trace_start"() <{level = 10 : i32, message = "nqk,nkd->nqd"}> : () -> ()
    %cst_37 = arith.constant dense<0.000000e+00> : vector<8x8x8xf32>
    %58 = tpu.matmul %57, %38, %cst_37 {dimension_numbers = #tpu.dot_dimension_numbers<[2], [1], [1], [2], [0, 0, 0, 1, 1, 2], [0], [0]>} : vector<8x8x8xf32>, vector<8x8x8xf32>, vector<8x8x8xf32> -> vector<8x8x8xf32>
    "tpu.trace_stop"() : () -> ()
    %59 = vector.shape_cast %58 : vector<8x8x8xf32> to vector<2x4x8x8xf32>
    %60 = tpu.transpose %59, [0, 2, 1, 3] : vector<2x4x8x8xf32> -> vector<2x8x4x8xf32>
    %61 = vector.shape_cast %60 : vector<2x8x4x8xf32> to vector<16x32xf32>
    %cst_38 = arith.constant dense<0.000000e+00> : vector<16x32xf32>
    %62 = tpu.matmul %61, %5, %cst_38 {dimension_numbers = #tpu.dot_dimension_numbers<[1], [0], [0], [1], [0, 0, 1, 1], [], []>} : vector<16x32xf32>, vector<32x32xf32>, vector<16x32xf32> -> vector<16x32xf32>
    %63 = vector.broadcast %12 : vector<1x32xf32> to vector<16x32xf32>
    %64 = arith.addf %62, %63 : vector<16x32xf32>
    %65 = arith.addf %0, %64 : vector<16x32xf32>
    %cst_39 = arith.constant dense<0.000000e+00> : vector<16xf32>
    %66 = vector.multi_reduction <add>, %65, %cst_39 [1] : vector<16x32xf32> to vector<16xf32>
    %67 = vector.shape_cast %66 : vector<16xf32> to vector<16x1xf32>
    %cst_40 = arith.constant 3.200000e+01 : f32
    %68 = vector.broadcast %cst_40 : f32 to vector<16x1xf32>
    %69 = arith.divf %67, %68 : vector<16x1xf32>
    %70 = vector.broadcast %69 : vector<16x1xf32> to vector<16x32xf32>
    %71 = arith.subf %65, %70 : vector<16x32xf32>
    %72 = arith.mulf %71, %71 : vector<16x32xf32>
    %cst_41 = arith.constant dense<0.000000e+00> : vector<16xf32>
    %73 = vector.multi_reduction <add>, %72, %cst_41 [1] : vector<16x32xf32> to vector<16xf32>
    %74 = vector.shape_cast %73 : vector<16xf32> to vector<16x1xf32>
    %cst_42 = arith.constant 3.200000e+01 : f32
    %75 = vector.broadcast %cst_42 : f32 to vector<16x1xf32>
    %76 = arith.divf %74, %75 : vector<16x1xf32>
    %77 = vector.broadcast %69 : vector<16x1xf32> to vector<16x32xf32>
    %78 = arith.subf %65, %77 : vector<16x32xf32>
    %cst_43 = arith.constant 9.99999974E-6 : f32
    %79 = vector.broadcast %cst_43 : f32 to vector<16x1xf32>
    %80 = arith.addf %76, %79 : vector<16x1xf32>
    %81 = math.sqrt %80 : vector<16x1xf32>
    %cst_44 = arith.constant 1.000000e+00 : f32
    %82 = vector.broadcast %cst_44 : f32 to vector<16x1xf32>
    %83 = arith.divf %82, %81 : vector<16x1xf32>
    %84 = vector.broadcast %83 : vector<16x1xf32> to vector<16x32xf32>
    %85 = arith.mulf %78, %84 : vector<16x32xf32>
    %86 = vector.broadcast %18 : vector<1x32xf32> to vector<16x32xf32>
    %87 = arith.mulf %85, %86 : vector<16x32xf32>
    %88 = vector.broadcast %19 : vector<1x32xf32> to vector<16x32xf32>
    %89 = arith.addf %87, %88 : vector<16x32xf32>
    %cst_45 = arith.constant dense<0.000000e+00> : vector<16x32xf32>
    %90 = tpu.matmul %89, %7, %cst_45 {dimension_numbers = #tpu.dot_dimension_numbers<[1], [0], [0], [1], [0, 0, 1, 1], [], []>} : vector<16x32xf32>, vector<32x32xf32>, vector<16x32xf32> -> vector<16x32xf32>
    %91 = vector.broadcast %13 : vector<1x32xf32> to vector<16x32xf32>
    %92 = arith.addf %90, %91 : vector<16x32xf32>
    %cst_46 = arith.constant dense<0.000000e+00> : vector<32x64xf32>
    %93 = tpu.matmul %1, %10, %cst_46 {dimension_numbers = #tpu.dot_dimension_numbers<[1], [0], [0], [1], [0, 0, 1, 1], [], []>} : vector<32x32xf32>, vector<32x64xf32>, vector<32x64xf32> -> vector<32x64xf32>
    %94 = vector.broadcast %14 : vector<1x64xf32> to vector<32x64xf32>
    %95 = arith.addf %93, %94 : vector<32x64xf32>
    %96 = vector.extract_strided_slice %95 {offsets = [0, 0], sizes = [32, 32], strides = [1, 1]} : vector<32x64xf32> to vector<32x32xf32>
    %97 = vector.extract_strided_slice %95 {offsets = [0, 32], sizes = [32, 32], strides = [1, 1]} : vector<32x64xf32> to vector<32x32xf32>
    %98 = vector.shape_cast %92 : vector<16x32xf32> to vector<2x8x4x8xf32>
    %99 = tpu.transpose %98, [0, 2, 1, 3] : vector<2x8x4x8xf32> -> vector<2x4x8x8xf32>
    %100 = vector.shape_cast %99 : vector<2x4x8x8xf32> to vector<8x8x8xf32>
    %101 = vector.shape_cast %96 : vector<32x32xf32> to vector<2x16x4x8xf32>
    %102 = tpu.transpose %101, [0, 2, 1, 3] : vector<2x16x4x8xf32> -> vector<2x4x16x8xf32>
    %103 = vector.shape_cast %102 : vector<2x4x16x8xf32> to vector<8x16x8xf32>
    %104 = vector.shape_cast %97 : vector<32x32xf32> to vector<2x16x4x8xf32>
    %105 = tpu.transpose %104, [0, 2, 1, 3] : vector<2x16x4x8xf32> -> vector<2x4x16x8xf32>
    %106 = vector.shape_cast %105 : vector<2x4x16x8xf32> to vector<8x16x8xf32>
    "tpu.trace_start"() <{level = 10 : i32, message = "nqd,nkd->nqk"}> : () -> ()
    %cst_47 = arith.constant dense<0.000000e+00> : vector<8x8x16xf32>
    %107 = tpu.matmul %100, %103, %cst_47 {dimension_numbers = #tpu.dot_dimension_numbers<[2], [2], [1], [1], [0, 0, 0, 1, 1, 1], [0], [0]>} : vector<8x8x8xf32>, vector<8x16x8xf32>, vector<8x8x16xf32> -> vector<8x8x16xf32>
    "tpu.trace_stop"() : () -> ()
    %cst_48 = arith.constant 0.353553385 : f32
    %108 = vector.broadcast %cst_48 : f32 to vector<8x8x16xf32>
    %109 = arith.mulf %107, %108 : vector<8x8x16xf32>
    %110 = vector.shape_cast %109 : vector<8x8x16xf32> to vector<2x4x8x16xf32>
    %111 = vector.shape_cast %3 : vector<2x8x16xf32> to vector<2x1x8x16xf32>
    %112 = vector.broadcast %111 : vector<2x1x8x16xf32> to vector<2x4x8x16xf32>
    %113 = arith.addf %110, %112 : vector<2x4x8x16xf32>
    %cst_49 = arith.constant dense<0xFF800000> : vector<2x4x8xf32>
    %114 = vector.multi_reduction <maximumf>, %113, %cst_49 [3] : vector<2x4x8x16xf32> to vector<2x4x8xf32>
    %115 = vector.shape_cast %114 : vector<2x4x8xf32> to vector<2x4x8x1xf32>
    %116 = vector.broadcast %115 : vector<2x4x8x1xf32> to vector<2x4x8x16xf32>
    %117 = arith.subf %113, %116 : vector<2x4x8x16xf32>
    %118 = math.exp %117 : vector<2x4x8x16xf32>
    %cst_50 = arith.constant dense<0.000000e+00> : vector<2x4x8xf32>
    %119 = vector.multi_reduction <add>, %118, %cst_50 [3] : vector<2x4x8x16xf32> to vector<2x4x8xf32>
    %120 = vector.shape_cast %119 : vector<2x4x8xf32> to vector<2x4x8x1xf32>
    %cst_51 = arith.constant 1.000000e+00 : f32
    %121 = vector.broadcast %cst_51 : f32 to vector<2x4x8x1xf32>
    %122 = arith.divf %121, %120 : vector<2x4x8x1xf32>
    %123 = vector.broadcast %122 : vector<2x4x8x1xf32> to vector<2x4x8x16xf32>
    %124 = arith.mulf %118, %123 : vector<2x4x8x16xf32>
    %125 = vector.shape_cast %124 : vector<2x4x8x16xf32> to vector<8x8x16xf32>
    "tpu.trace_start"() <{level = 10 : i32, message = "nqk,nkd->nqd"}> : () -> ()
    %cst_52 = arith.constant dense<0.000000e+00> : vector<8x8x8xf32>
    %126 = tpu.matmul %125, %106, %cst_52 {dimension_numbers = #tpu.dot_dimension_numbers<[2], [1], [1], [2], [0, 0, 0, 1, 1, 2], [0], [0]>} : vector<8x8x16xf32>, vector<8x16x8xf32>, vector<8x8x8xf32> -> vector<8x8x8xf32>
    "tpu.trace_stop"() : () -> ()
    %127 = vector.shape_cast %126 : vector<8x8x8xf32> to vector<2x4x8x8xf32>
    %128 = tpu.transpose %127, [0, 2, 1, 3] : vector<2x4x8x8xf32> -> vector<2x8x4x8xf32>
    %129 = vector.shape_cast %128 : vector<2x8x4x8xf32> to vector<16x32xf32>
    %cst_53 = arith.constant dense<0.000000e+00> : vector<16x32xf32>
    %130 = tpu.matmul %129, %8, %cst_53 {dimension_numbers = #tpu.dot_dimension_numbers<[1], [0], [0], [1], [0, 0, 1, 1], [], []>} : vector<16x32xf32>, vector<32x32xf32>, vector<16x32xf32> -> vector<16x32xf32>
    %131 = vector.broadcast %15 : vector<1x32xf32> to vector<16x32xf32>
    %132 = arith.addf %130, %131 : vector<16x32xf32>
    %133 = arith.addf %89, %132 : vector<16x32xf32>
    %cst_54 = arith.constant dense<0.000000e+00> : vector<16xf32>
    %134 = vector.multi_reduction <add>, %133, %cst_54 [1] : vector<16x32xf32> to vector<16xf32>
    %135 = vector.shape_cast %134 : vector<16xf32> to vector<16x1xf32>
    %cst_55 = arith.constant 3.200000e+01 : f32
    %136 = vector.broadcast %cst_55 : f32 to vector<16x1xf32>
    %137 = arith.divf %135, %136 : vector<16x1xf32>
    %138 = vector.broadcast %137 : vector<16x1xf32> to vector<16x32xf32>
    %139 = arith.subf %133, %138 : vector<16x32xf32>
    %140 = arith.mulf %139, %139 : vector<16x32xf32>
    %cst_56 = arith.constant dense<0.000000e+00> : vector<16xf32>
    %141 = vector.multi_reduction <add>, %140, %cst_56 [1] : vector<16x32xf32> to vector<16xf32>
    %142 = vector.shape_cast %141 : vector<16xf32> to vector<16x1xf32>
    %cst_57 = arith.constant 3.200000e+01 : f32
    %143 = vector.broadcast %cst_57 : f32 to vector<16x1xf32>
    %144 = arith.divf %142, %143 : vector<16x1xf32>
    %145 = vector.broadcast %137 : vector<16x1xf32> to vector<16x32xf32>
    %146 = arith.subf %133, %145 : vector<16x32xf32>
    %cst_58 = arith.constant 9.99999974E-6 : f32
    %147 = vector.broadcast %cst_58 : f32 to vector<16x1xf32>
    %148 = arith.addf %144, %147 : vector<16x1xf32>
    %149 = math.sqrt %148 : vector<16x1xf32>
    %cst_59 = arith.constant 1.000000e+00 : f32
    %150 = vector.broadcast %cst_59 : f32 to vector<16x1xf32>
    %151 = arith.divf %150, %149 : vector<16x1xf32>
    %152 = vector.broadcast %151 : vector<16x1xf32> to vector<16x32xf32>
    %153 = arith.mulf %146, %152 : vector<16x32xf32>
    %154 = vector.broadcast %20 : vector<1x32xf32> to vector<16x32xf32>
    %155 = arith.mulf %153, %154 : vector<16x32xf32>
    %156 = vector.broadcast %21 : vector<1x32xf32> to vector<16x32xf32>
    %157 = arith.addf %155, %156 : vector<16x32xf32>
    %cst_60 = arith.constant dense<0.000000e+00> : vector<16x64xf32>
    %158 = tpu.matmul %157, %6, %cst_60 {dimension_numbers = #tpu.dot_dimension_numbers<[1], [0], [0], [1], [0, 0, 1, 1], [], []>} : vector<16x32xf32>, vector<32x64xf32>, vector<16x64xf32> -> vector<16x64xf32>
    %159 = vector.broadcast %16 : vector<1x64xf32> to vector<16x64xf32>
    %160 = arith.addf %158, %159 : vector<16x64xf32>
    %cst_61 = arith.constant 0.000000e+00 : f32
    %161 = vector.broadcast %cst_61 : f32 to vector<16x64xf32>
    %162 = arith.maximumf %160, %161 : vector<16x64xf32>
    %cst_62 = arith.constant dense<0.000000e+00> : vector<16x32xf32>
    %163 = tpu.matmul %162, %9, %cst_62 {dimension_numbers = #tpu.dot_dimension_numbers<[1], [0], [0], [1], [0, 0, 1, 1], [], []>} : vector<16x64xf32>, vector<64x32xf32>, vector<16x32xf32> -> vector<16x32xf32>
    %164 = vector.broadcast %17 : vector<1x32xf32> to vector<16x32xf32>
    %165 = arith.addf %163, %164 : vector<16x32xf32>
    %166 = arith.addf %157, %165 : vector<16x32xf32>
    %cst_63 = arith.constant dense<0.000000e+00> : vector<16xf32>
    %167 = vector.multi_reduction <add>, %166, %cst_63 [1] : vector<16x32xf32> to vector<16xf32>
    %168 = vector.shape_cast %167 : vector<16xf32> to vector<16x1xf32>
    %cst_64 = arith.constant 3.200000e+01 : f32
    %169 = vector.broadcast %cst_64 : f32 to vector<16x1xf32>
    %170 = arith.divf %168, %169 : vector<16x1xf32>
    %171 = vector.broadcast %170 : vector<16x1xf32> to vector<16x32xf32>
    %172 = arith.subf %166, %171 : vector<16x32xf32>
    %173 = arith.mulf %172, %172 : vector<16x32xf32>
    %cst_65 = arith.constant dense<0.000000e+00> : vector<16xf32>
    %174 = vector.multi_reduction <add>, %173, %cst_65 [1] : vector<16x32xf32> to vector<16xf32>
    %175 = vector.shape_cast %174 : vector<16xf32> to vector<16x1xf32>
    %cst_66 = arith.constant 3.200000e+01 : f32
    %176 = vector.broadcast %cst_66 : f32 to vector<16x1xf32>
    %177 = arith.divf %175, %176 : vector<16x1xf32>
    %178 = vector.broadcast %170 : vector<16x1xf32> to vector<16x32xf32>
    %179 = arith.subf %166, %178 : vector<16x32xf32>
    %cst_67 = arith.constant 9.99999974E-6 : f32
    %180 = vector.broadcast %cst_67 : f32 to vector<16x1xf32>
    %181 = arith.addf %177, %180 : vector<16x1xf32>
    %182 = math.sqrt %181 : vector<16x1xf32>
    %cst_68 = arith.constant 1.000000e+00 : f32
    %183 = vector.broadcast %cst_68 : f32 to vector<16x1xf32>
    %184 = arith.divf %183, %182 : vector<16x1xf32>
    %185 = vector.broadcast %184 : vector<16x1xf32> to vector<16x32xf32>
    %186 = arith.mulf %179, %185 : vector<16x32xf32>
    %187 = vector.broadcast %22 : vector<1x32xf32> to vector<16x32xf32>
    %188 = arith.mulf %186, %187 : vector<16x32xf32>
    %189 = vector.broadcast %23 : vector<1x32xf32> to vector<16x32xf32>
    %190 = arith.addf %188, %189 : vector<16x32xf32>
    %cst_69 = arith.constant 0.000000e+00 : f32
    %191 = vector.broadcast %cst_69 : f32 to vector<16x96xf32>
    %192 = tpu.concatenate %190, %191 in 1 : vector<16x32xf32>, vector<16x96xf32> -> vector<16x128xf32>
    %c0_70 = arith.constant 0 : index
    %c0_71 = arith.constant 0 : index
    %193 = vector.load %arg6[%c0_70, %c0_71] : memref<16x128xf32, #tpu.memory_space<vmem>>, vector<16x128xf32>
    tpu.vector_store %arg6[%c0_70, %c0_71], %192 {strides = array<i32>} : memref<16x128xf32, #tpu.memory_space<vmem>>, vector<16x128xf32>,
    return
  }
}

</mosaic_0001>

<bundles_post_ra>
// kernel: tpu_custom_call.1
= control target key start
LH: loop header
LB: loop body
LE: loop exit
PB: predicated region body
PF: predicated region fallthrough
CT: control target
= control target key end

     0   :  { %11 = vsyncpa [#allocation3], 0  ;;  %s6647_s0 = inlined_call_operand.hbm [shape: f32[16,32], index: 0, kind: input, shape index: {}]   ;;  %s6648_s1 = inlined_call_operand.hbm [shape: f32[32,32], index: 1, kind: input, shape index: {}]   ;;  %s6649_s2 = inlined_call_operand.hbm [shape: f32[2,8,8], index: 2, kind: input, shape index: {}]   ;;  %s6650_s3 = inlined_call_operand.hbm [shape: f32[2,8,16], index: 3, kind: input, shape index: {}]   ;;  %s6651_s4 = inlined_call_operand.hbm [shape: f32[64,256], index: 4, kind: input, shape index: {}]   ;;  %s6652_s5 = inlined_call_operand.hbm [shape: f32[16,128], index: 5, kind: input, shape index: {}]   ;;  %s6653_s6 = inlined_call_operand.hbm [shape: f32[16,128], index: 6, kind: output, shape index: {}]  }
   0x1   :  { %12 = vsyncpa [#allocation6], 0 }
   0x2   :  { %13 = vsyncpa [#allocation9], 0 }
   0x3   :  { %14 = vsyncpa [#allocation12], 0 }
   0x4   :  { %15 = vsyncpa [#allocation4], 0  ;;  %s33_s23 = sshll.u32 %s6648_s1, 4  ;;  %s4898_s24 = smov [#allocation5]   ;;  %s34_s23 = int_to_ptr.hbm [resolvable:$true] %s33_s23 }
   0x5   :  { %s35_s25 = sshll.u32 %s4898_s24, 4  ;;  %s59_s28 = sshll.u32 %s6650_s3, 4  ;;  %s36_s25 = int_to_ptr.vmem [resolvable:$true] %s35_s25  ;;  %s60_s28 = int_to_ptr.hbm [resolvable:$true] %s59_s28 }
   0x6   :  { %s4899_s29 = smov 128   ;;  %s4900_s30 = smov 8  }
   0x7   :  { %41 = dma.hbm_to_vmem [thread:$0]  %s34_s23, 512, %s36_s25, [#allocation6], %s4899_s29, %s4899_s29, %s4900_s30  }
   0x8   :  { %s4901_s7 = smov [#allocation8]   ;;  %s20_s1 = sshll.u32 %s6647_s0, 4  ;;  %s21_s1 = int_to_ptr.hbm [resolvable:$true] %s20_s1 }
   0x9   :  { %s61_s8 = sshll.u32 %s4901_s7, 4  ;;  %s46_s12 = sshll.u32 %s6649_s2, 4  ;;  %s62_s8 = int_to_ptr.vmem [resolvable:$true] %s61_s8  ;;  %s47_s12 = int_to_ptr.hbm [resolvable:$true] %s46_s12 }
   0xa   :  { %67 = dma.hbm_to_vmem [thread:$0]  %s60_s28, 256, %s62_s8, [#allocation9], %s4899_s29, %s4899_s29, %s4900_s30  }
   0xb   :  { %s4902_s13 = smov [#allocation2]   ;;  %s4903_s15 = smov [#allocation7]  }
   0xc   :  { %s22_s14 = sshll.u32 %s4902_s13, 4  ;;  %s48_s0 = sshll.u32 %s4903_s15, 4  ;;  %s23_s14 = int_to_ptr.vmem [resolvable:$true] %s22_s14  ;;  %s49_s0 = int_to_ptr.vmem [resolvable:$true] %s48_s0 }
   0xd   :  { %28 = dma.hbm_to_vmem [thread:$0]  %s21_s1, 256, %s23_s14, [#allocation3], %s4899_s29, %s4899_s29, %s4900_s30  }
   0xe   :  { %s72_s18 = sshll.u32 %s6651_s4, 4  ;;  %s4904_s2 = smov [#allocation10]   ;;  %s73_s18 = int_to_ptr.hbm [resolvable:$true] %s72_s18 }
   0xf   :  { %54 = dma.hbm_to_vmem [thread:$0]  %s47_s12, 256, %s49_s0, [#allocation6], %s4899_s29, %s4899_s29, %s4900_s30  }
  0x10   :  { %s74_s19 = sshll.u32 %s4904_s2, 4  ;;  %s85_s22 = sshll.u32 %s6652_s5, 4  ;;  %s75_s19 = int_to_ptr.vmem [resolvable:$true] %s74_s19  ;;  %s86_s22 = int_to_ptr.hbm [resolvable:$true] %s85_s22 }
  0x11   :  { %s4905_s23 = smov 256   ;;  %s4906_s24 = smov 16  }
  0x12   :  { %80 = dma.hbm_to_vmem [thread:$0]  %s73_s18, 2048, %s75_s19, [#allocation9], %s4905_s23, %s4905_s23, %s4906_s24  }
  0x13   :  { %s4907_s25 = smov [#allocation11]  }
  0x14   :  { %s87_s4 = sshll.u32 %s4907_s25, 4  ;;  %s88_s4 = int_to_ptr.vmem [resolvable:$true] %s87_s4 }
  0x15   :  { %93 = dma.hbm_to_vmem [thread:$0]  %s86_s22, 256, %s88_s4, [#allocation12], %s4899_s29, %s4899_s29, %s4900_s30  }
  0x16   :  { %4888 = dma.done.wait [#allocation3], 256  }
  0x17   :  { %4889 = vsyncadd [#allocation3], 4294967040 }
  0x18   :  { %4890 = dma.done.wait [#allocation6], 768  }
  0x19   :  { %4891 = vsyncadd [#allocation6], 4294966528 }
  0x1a   :  { %4892 = dma.done.wait [#allocation9], 2304  }
  0x1b   :  { %4893 = vsyncadd [#allocation9], 4294964992 }
  0x1c   :  { %4894 = dma.done.wait [#allocation12], 256  }
  0x1d   :  { %4895 = vsyncadd [#allocation12], 4294967040  ;;  %v4988_v0 = vld [vmem:[#allocation10 + $0x30] sm:$0xff]  ;;  %v4990_v1 = vld [vmem:[#allocation10 + $0x20] sm:$0xff]  ;;  %vm162_vm0 = vcmask 261120   ;;  %s4908_s5 = smov 104  }
  0x1e   :  { %181 = vmatpush.msra.mxu0 %v4988_v0  ;;  %v4531_v2 = vpack.i.bf16 %v4990_v1, %v4988_v0  ;;  %v4995_v3 = vld [vmem:[#allocation10 + $0x10] sm:$0xff]  ;;  %v4997_v4 = vld [vmem:[#allocation10] sm:$0xff]  ;;  %v119_v7 = vld [vmem:[#allocation2 + $0x8] sm:$0xff]  ;;  %s4909_s26 = smov 120   ;;  %s4910_s27 = smov 112   ;;  %vm213_vm1 = vcmask 1047556  }
  0x1f   :  { %v4536_v5 = vpack.i.bf16 %v4997_v4, %v4995_v3  ;;  %v118_v6 = vld [vmem:[#allocation2] sm:$0xff]  ;;  %v4611_v8 = vld [vmem:[#allocation11] ss:$0 sm:$0xff]  ;;  %s4911_s28 = smov 96   ;;  %v4912_v15 = vmov 1983009808  }
  0x20   :  { %182 = vmatpush.msra.mxu0 %v4990_v1  ;;  %v218_v16 = vunpack.c.l.s4 %v4912_v15  ;;  %v4913_v24 = vmov 1934713408   ;;  %vm921_vm2 = vcmask 64512   ;;  %s4914_s7 = smov 64   ;;  %s4915_s8 = smov 32  }
  0x21   :  { %v242_v25 = vunpack.c.l.s4 %v4913_v24  ;;  %s4916_s9 = smov 24   ;;  %s4918_s10 = smov [#allocation13]  }
  0x22   :  { %183 = vmatpush.msra.mxu0 %v4995_v3  ;;  %v5038_v21 = vunpack.c.0.s8 %v218_v16  ;;  %s4400_s1 = sshll.u32 %s4918_s10, 4  ;;  %s4402_s12 = sshll.u32 %s6653_s6, 4  ;;  %s4401_s1 = int_to_ptr.vmem [resolvable:$true] %s4400_s1  ;;  %s4403_s12 = int_to_ptr.hbm [resolvable:$true] %s4402_s12 }
  0x23   :  { %v5059_v34 = vunpack.c.0.s8 %v242_v25 }
  0x24   :  { %184 = vmatpush.msra.mxu0 %v4997_v4 }
  0x25   :  { %4418 = vmatmul.msk.f32.vlgmr.msra.gmra.mxu0 %vm162_vm0, %v118_v6 }
  0x2d   :  { %4419 = vmatmul.msk.f32.gmra.mxu0 %vm162_vm0, %v119_v7 }
  0xa2   :  { %v186_v9 = vpop.f32.mrf.mxu0 }
  0xa3   :  { %v5006_v10 = vadd.f32 %v4611_v8, %v186_v9 }
  0xa5   :  { %206 = vrot.lane.b32.xlu1 %v5006_v10, %s4908_s5  ;;  %194 = vrot.lane.b32.xlu0 %v5006_v10, %s4909_s26  ;;  %v215_v26 = vrot.slane %v5006_v10, 4 }
  0xaa   :  { %v189_v11 = vpop.f32.mrf.mxu0 }
  0xab   :  { %v5012_v12 = vadd.f32 %v4611_v8, %v189_v11 }
  0xad   :  { %202 = vrot.lane.b32.xlu2 %v5012_v12, %s4910_s27  ;;  %196 = vrot.lane.b32.xlu1 %v5012_v12, %s4909_s26 }
  0xae   :  { %200 = vrot.lane.b32.xlu0 %v5006_v10, %s4910_s27 }
  0xb5   :  { %208 = vrot.lane.b32.xlu2 %v5012_v12, %s4908_s5 }
  0xb6   :  { %433 = vrot.lane.b32.xlu0 %v5006_v10, %s4911_s28 }
 0x107   :  { %v5041_v23 = vpop.permute.xlu2 %202 }
 0x10f   :  { %v5066_v41 = vpop.permute.xlu2 %208 }
 0x117   :  { %v5024_v13 = vpop.permute.xlu1 %206  ;;  %v5026_v14 = vpop.permute.xlu0 %194 }
 0x118   :  { %v225_v17 = vrot.slane %v5024_v13, 4  ;;  %v227_v18 = vrot.slane %v5026_v14, 4  ;;  %445 = vrot.lane.b32.xlu0 %v5024_v13, %s4911_s28  ;;  %437 = vrot.lane.b32.xlu1 %v5026_v14, %s4911_s28 }
 0x11a   :  { %v226_v19 = vsel %vm213_vm1, %v225_v17, %v5026_v14  ;;  %v228_v20 = vsel %vm213_vm1, %v5024_v13, %v227_v18 }
 0x11b   :  { %v236_v22 = vperm.slane %v228_v20, %v5038_v21  ;;  %v232_v27 = vperm.slane %v226_v19, %v5038_v21 }
 0x11d   :  { %v249_v32 = vrot.slane %v236_v22, 4  ;;  %v237_v36 = vrot.slane %v232_v27, 4 }
 0x11f   :  { %v5070_v45 = vpop.permute.xlu1 %196 }
 0x120   :  { %v5045_v28 = vpop.permute.xlu0 %200  ;;  %443 = vrot.lane.b32.xlu0 %v5041_v23, %s4911_s28  ;;  %435 = vrot.lane.b32.xlu1 %v5012_v12, %s4911_s28 }
 0x121   :  { %v212_v29 = vrot.slane %v5045_v28, 4  ;;  %v216_v30 = vsel %vm213_vm1, %v5045_v28, %v215_v26  ;;  %441 = vrot.lane.b32.xlu2 %v5045_v28, %s4911_s28  ;;  %v4516_v31 = vpack.i.bf16 %v5024_v13, %v5045_v28 }
 0x122   :  { %v224_v33 = vperm.slane %v216_v30, %v5038_v21 }
 0x123   :  { %v214_v35 = vsel %vm213_vm1, %v212_v29, %v5006_v10 }
 0x124   :  { %v220_v37 = vperm.slane %v214_v35, %v5038_v21  ;;  %v250_v38 = vsel %vm213_vm1, %v249_v32, %v224_v33  ;;  %v251_v39 = vrot.slane %v224_v33, 4 }
 0x125   :  { %v256_v44 = vperm.slane %v250_v38, %v5059_v34 }
 0x126   :  { %v238_v40 = vsel %vm213_vm1, %v237_v36, %v220_v37  ;;  %v239_v42 = vrot.slane %v220_v37, 4  ;;  %v252_v43 = vsel %vm213_vm1, %v236_v22, %v251_v39  ;;  %v269_v39 = vrot.slane %v5041_v23, 4 }
 0x127   :  { %v244_v46 = vperm.slane %v238_v40, %v5059_v34  ;;  %v260_v48 = vperm.slane %v252_v43, %v5059_v34  ;;  %v265_v50 = vrot.slane %v256_v44, 4  ;;  %v271_v40 = vrot.slane %v5012_v12, 4 }
 0x128   :  { %447 = vrot.lane.b32.xlu1 %v5066_v41, %s4911_s28  ;;  %v240_v47 = vsel %vm213_vm1, %v232_v27, %v239_v42  ;;  %v281_v42 = vrot.slane %v5066_v41, 4  ;;  %v283_v43 = vrot.slane %v5070_v45, 4 }
 0x129   :  { %439 = vrot.lane.b32.xlu2 %v5070_v45, %s4911_s28  ;;  %v248_v49 = vperm.slane %v240_v47, %v5059_v34  ;;  %v267_v51 = vrot.slane %v260_v48, 4  ;;  %v261_v52 = vrot.slane %v244_v46, 4  ;;  %v266_v60 = vsel %vm213_vm1, 0.0, %v265_v50 }
 0x12a   :  { %v282_v47 = vsel %vm213_vm1, %v281_v42, %v5070_v45  ;;  %v284_v48 = vsel %vm213_vm1, %v5066_v41, %v283_v43 }
 0x12b   :  { %v263_v53 = vrot.slane %v248_v49, 4  ;;  %v268_v54 = vsel %vm213_vm1, 0.0, %v267_v51  ;;  %v336_v55 = vsel %vm213_vm1, %v267_v51, %v256_v44  ;;  %v262_v63 = vsel %vm213_vm1, 0.0, %v261_v52 }
 0x12c   :  { %v341_v56 = vrot.slane %v268_v54, 4  ;;  %v340_v59 = vperm.slane %v336_v55, %v5038_v21  ;;  %v270_v44 = vsel %vm213_vm1, %v269_v39, %v5012_v12  ;;  %v288_v51 = vperm.slane %v282_v47, %v5038_v21 }
 0x12d   :  { %v264_v57 = vsel %vm213_vm1, 0.0, %v263_v53  ;;  %v325_v58 = vsel %vm213_vm1, %v263_v53, %v244_v46  ;;  %v272_v46 = vsel %vm213_vm1, %v5041_v23, %v271_v40  ;;  %v276_v49 = vperm.slane %v270_v44, %v5038_v21 }
 0x12e   :  { %v329_v61 = vperm.slane %v325_v58, %v5038_v21  ;;  %v330_v62 = vrot.slane %v264_v57, 4  ;;  %v342_v6 = vsel %vm213_vm1, %v341_v56, %v266_v60  ;;  %v361_v7 = vrot.slane %v340_v59, 4 }
 0x12f   :  { %v346_v9 = vperm.slane %v342_v6, %v5038_v21  ;;  %v280_v50 = vperm.slane %v272_v46, %v5038_v21  ;;  %v292_v52 = vperm.slane %v284_v48, %v5038_v21  ;;  %v295_v53 = vrot.slane %v276_v49, 4  ;;  %v434_v6 = vpop.permute.xlu0 %433 }
 0x130   :  { %v331_v8 = vsel %vm213_vm1, %v330_v62, %v262_v63  ;;  %v349_v11 = vrot.slane %v329_v61, 4  ;;  %v293_v55 = vrot.slane %v288_v51, 4 }
 0x131   :  { %v335_v15 = vperm.slane %v331_v8, %v5038_v21  ;;  %v362_v16 = vsel %vm213_vm1, %v346_v9, %v361_v7  ;;  %v359_v17 = vrot.slane %v346_v9, 4  ;;  %v307_v54 = vrot.slane %v280_v50, 4 }
 0x132   :  { %v370_v19 = vperm.slane %v362_v16, %v5059_v34  ;;  %v296_v56 = vsel %vm213_vm1, %v288_v51, %v295_v53  ;;  %v305_v57 = vrot.slane %v292_v52, 4  ;;  %v294_v62 = vsel %vm213_vm1, %v293_v55, %v276_v49 }
 0x133   :  { %v350_v18 = vsel %vm213_vm1, %v335_v15, %v349_v11  ;;  %v347_v20 = vrot.slane %v335_v15, 4  ;;  %v360_v24 = vsel %vm213_vm1, %v359_v17, %v340_v59  ;;  %v308_v58 = vsel %vm213_vm1, %v292_v52, %v307_v54 }
 0x134   :  { %v358_v22 = vperm.slane %v350_v18, %v5059_v34  ;;  %v375_v25 = vrot.slane %v370_v19, 4  ;;  %v366_v27 = vperm.slane %v360_v24, %v5059_v34  ;;  %v304_v59 = vperm.slane %v296_v56, %v5059_v34 }
 0x135   :  { %v348_v26 = vsel %vm213_vm1, %v347_v20, %v329_v61  ;;  %v316_v60 = vperm.slane %v308_v58, %v5059_v34  ;;  %v306_v63 = vsel %vm213_vm1, %v305_v57, %v280_v50  ;;  %v300_v8 = vperm.slane %v294_v62, %v5059_v34 }
 0x136   :  { %v377_v29 = vrot.slane %v358_v22, 4  ;;  %v354_v30 = vperm.slane %v348_v26, %v5059_v34  ;;  %v5101_v32 = vsel %vm213_vm1, %v375_v25, %v358_v22  ;;  %v371_v33 = vrot.slane %v366_v27, 4 }
 0x137   :  { %v312_v9 = vperm.slane %v306_v63, %v5059_v34  ;;  %v319_v11 = vrot.slane %v304_v59, 4  ;;  %v323_v15 = vrot.slane %v316_v60, 4  ;;  %v459_v16 = vrot.slane %v434_v6, 4 }
 0x138   :  { %v5104_v35 = vsel %vm213_vm1, %v370_v19, %v377_v29  ;;  %v373_v36 = vrot.slane %v354_v30, 4  ;;  %v5107_v37 = vsel %vm213_vm1, %v371_v33, %v354_v30  ;;  %v317_v19 = vrot.slane %v300_v8, 4 }
 0x139   :  { %v320_v20 = vsel %vm213_vm1, 0.0, %v319_v11  ;;  %v324_v22 = vsel %vm213_vm1, 0.0, %v323_v15  ;;  %v321_v24 = vrot.slane %v312_v9, 4  ;;  %v390_v43 = vsel %vm213_vm1, %v323_v15, %v312_v9 }
 0x13a   :  { %v5110_v38 = vsel %vm213_vm1, %v366_v27, %v373_v36  ;;  %v384_v30 = vrot.slane %v320_v20, 4  ;;  %v395_v33 = vrot.slane %v324_v22, 4  ;;  %v318_v40 = vsel %vm213_vm1, 0.0, %v317_v19 }
 0x13b   :  { %v322_v42 = vsel %vm213_vm1, 0.0, %v321_v24  ;;  %v379_v47 = vsel %vm213_vm1, %v319_v11, %v300_v8  ;;  %v5152_v53 = vperm.slane %v390_v43, %v5038_v21 }
 0x13c   :  { %v385_v52 = vsel %vm213_vm1, %v384_v30, %v318_v40  ;;  %v396_v54 = vsel %vm213_vm1, %v395_v33, %v322_v42  ;;  %v5160_v62 = vperm.slane %v379_v47, %v5038_v21 }
 0x13d   :  { %v5165_v9 = vperm.slane %v385_v52, %v5038_v21  ;;  %v5168_v11 = vperm.slane %v396_v54, %v5038_v21  ;;  %v415_v24 = vrot.slane %v5152_v53, 4 }
 0x13f   :  { %v401_v54 = vrot.slane %v5165_v9, 4 }
 0x17b   :  { %v442_v61 = vpop.permute.xlu2 %441 }
 0x17c   :  { %v457_v7 = vrot.slane %v442_v61, 4  ;;  %v460_v18 = vsel %vm213_vm1, %v442_v61, %v459_v16 }
 0x17d   :  { %v468_v26 = vperm.slane %v460_v18, %v5038_v21 }
 0x17e   :  { %v458_v17 = vsel %vm213_vm1, %v457_v7, %v434_v6 }
 0x17f   :  { %v464_v25 = vperm.slane %v458_v17, %v5038_v21  ;;  %v495_v49 = vrot.slane %v468_v26, 4 }
 0x181   :  { %v483_v48 = vrot.slane %v464_v25, 4 }
 0x183   :  { %v440_v61 = vpop.permute.xlu2 %439 }
 0x184   :  { %v527_v22 = vrot.slane %v440_v61, 4 }
 0x18a   :  { %v438_v27 = vpop.permute.xlu1 %437  ;;  %v446_v29 = vpop.permute.xlu0 %445 }
 0x18b   :  { %v471_v36 = vrot.slane %v438_v27, 4  ;;  %v469_v39 = vrot.slane %v446_v29, 4 }
 0x18d   :  { %v470_v44 = vsel %vm213_vm1, %v469_v39, %v438_v27  ;;  %v472_v46 = vsel %vm213_vm1, %v446_v29, %v471_v36 }
 0x18e   :  { %v476_v50 = vperm.slane %v470_v44, %v5038_v21  ;;  %v480_v51 = vperm.slane %v472_v46, %v5038_v21 }
 0x190   :  { %v481_v55 = vrot.slane %v476_v50, 4  ;;  %v484_v56 = vsel %vm213_vm1, %v476_v50, %v483_v48  ;;  %v493_v57 = vrot.slane %v480_v51, 4  ;;  %v496_v58 = vsel %vm213_vm1, %v480_v51, %v495_v49 }
 0x191   :  { %v492_v59 = vperm.slane %v484_v56, %v5059_v34  ;;  %v504_v60 = vperm.slane %v496_v58, %v5059_v34  ;;  %v5191_v58 = vsel %vm213_vm1, %v5168_v11, %v415_v24 }
 0x192   :  { %v482_v63 = vsel %vm213_vm1, %v481_v55, %v464_v25  ;;  %v494_v6 = vsel %vm213_vm1, %v493_v57, %v468_v26  ;;  %v436_v7 = vpop.permute.xlu1 %435  ;;  %v444_v8 = vpop.permute.xlu0 %443 }
 0x193   :  { %v488_v15 = vperm.slane %v482_v63, %v5059_v34  ;;  %v500_v16 = vperm.slane %v494_v6, %v5059_v34  ;;  %v507_v17 = vrot.slane %v492_v59, 4  ;;  %v511_v18 = vrot.slane %v504_v60, 4 }
 0x194   :  { %v515_v19 = vrot.slane %v436_v7, 4  ;;  %v513_v20 = vrot.slane %v444_v8, 4 }
 0x195   :  { %v508_v25 = vsel %vm213_vm1, 0.0, %v507_v17  ;;  %v509_v26 = vrot.slane %v500_v16, 4  ;;  %v512_v27 = vsel %vm213_vm1, 0.0, %v511_v18  ;;  %v580_v29 = vsel %vm213_vm1, %v511_v18, %v500_v16 }
 0x196   :  { %v574_v30 = vrot.slane %v508_v25, 4  ;;  %v584_v33 = vperm.slane %v580_v29, %v5038_v21  ;;  %v585_v36 = vrot.slane %v512_v27, 4  ;;  %v514_v39 = vsel %vm213_vm1, %v513_v20, %v436_v7 }
 0x197   :  { %v510_v40 = vsel %vm213_vm1, 0.0, %v509_v26  ;;  %v516_v42 = vsel %vm213_vm1, %v444_v8, %v515_v19  ;;  %v520_v43 = vperm.slane %v514_v39, %v5038_v21  ;;  %v505_v44 = vrot.slane %v488_v15, 4 }
 0x198   :  { %v524_v46 = vperm.slane %v516_v42, %v5038_v21  ;;  %v569_v47 = vsel %vm213_vm1, %v507_v17, %v488_v15  ;;  %v586_v48 = vsel %vm213_vm1, %v585_v36, %v510_v40  ;;  %v605_v49 = vrot.slane %v584_v33, 4 }
 0x199   :  { %v506_v50 = vsel %vm213_vm1, 0.0, %v505_v44  ;;  %v573_v51 = vperm.slane %v569_v47, %v5038_v21  ;;  %v590_v52 = vperm.slane %v586_v48, %v5038_v21  ;;  %v539_v55 = vrot.slane %v520_v43, 4 }
 0x19a   :  { %v448_v56 = vpop.permute.xlu1 %447  ;;  %v575_v57 = vsel %vm213_vm1, %v574_v30, %v506_v50  ;;  %v551_v7 = vrot.slane %v524_v46, 4 }
 0x19b   :  { %v525_v59 = vrot.slane %v448_v56, 4  ;;  %v528_v60 = vsel %vm213_vm1, %v448_v56, %v527_v22  ;;  %v579_v63 = vperm.slane %v575_v57, %v5038_v21  ;;  %v593_v6 = vrot.slane %v573_v51, 4 }
 0x19c   :  { %v536_v8 = vperm.slane %v528_v60, %v5038_v21  ;;  %v606_v15 = vsel %vm213_vm1, %v590_v52, %v605_v49  ;;  %v603_v16 = vrot.slane %v590_v52, 4 }
 0x19d   :  { %v526_v17 = vsel %vm213_vm1, %v525_v59, %v440_v61  ;;  %v594_v18 = vsel %vm213_vm1, %v579_v63, %v593_v6  ;;  %v614_v19 = vperm.slane %v606_v15, %v5059_v34  ;;  %v591_v20 = vrot.slane %v579_v63, 4 }
 0x19e   :  { %v532_v24 = vperm.slane %v526_v17, %v5038_v21  ;;  %v549_v25 = vrot.slane %v536_v8, 4  ;;  %v552_v22 = vsel %vm213_vm1, %v536_v8, %v551_v7  ;;  %v602_v26 = vperm.slane %v594_v18, %v5059_v34 }
 0x19f   :  { %v560_v27 = vperm.slane %v552_v22, %v5059_v34  ;;  %v619_v29 = vrot.slane %v614_v19, 4  ;;  %v592_v30 = vsel %vm213_vm1, %v591_v20, %v573_v51  ;;  %v604_v36 = vsel %vm213_vm1, %v603_v16, %v584_v33 }
 0x1a0   :  { %v537_v61 = vrot.slane %v532_v24, 4  ;;  %v540_v39 = vsel %vm213_vm1, %v532_v24, %v539_v55  ;;  %v550_v40 = vsel %vm213_vm1, %v549_v25, %v524_v46  ;;  %v621_v42 = vrot.slane %v602_v26, 4 }
 0x1a1   :  { %v548_v44 = vperm.slane %v540_v39, %v5059_v34  ;;  %v556_v47 = vperm.slane %v550_v40, %v5059_v34  ;;  %v567_v48 = vrot.slane %v560_v27, 4  ;;  %v620_v49 = vsel %vm213_vm1, %v619_v29, %v602_v26 }
 0x1a2   :  { %v538_v50 = vsel %vm213_vm1, %v537_v61, %v520_v43  ;;  %4424 = vmatpush.xpose.msk.msra.mxu3 %vm921_vm2, %v620_v49  ;;  %v622_v51 = vsel %vm213_vm1, %v614_v19, %v621_v42  ;;  %v598_v33 = vperm.slane %v592_v30, %v5059_v34  ;;  %v610_v52 = vperm.slane %v604_v36, %v5059_v34 }
 0x1a3   :  { %v544_v46 = vperm.slane %v538_v50, %v5059_v34  ;;  %v563_v55 = vrot.slane %v548_v44, 4  ;;  %v565_v56 = vrot.slane %v556_v47, 4  ;;  %v568_v57 = vsel %vm213_vm1, 0.0, %v567_v48  ;;  %4426 = vmatpush.xpose.msk.msra.mxu1 %vm921_vm2, %v622_v51 }
 0x1a4   :  { %v634_v59 = vsel %vm213_vm1, %v567_v48, %v556_v47  ;;  %v639_v60 = vrot.slane %v568_v57, 4  ;;  %v615_v43 = vrot.slane %v610_v52, 4  ;;  %v617_v63 = vrot.slane %v598_v33, 4 }
 0x1a5   :  { %v561_v6 = vrot.slane %v544_v46, 4  ;;  %v564_v7 = vsel %vm213_vm1, 0.0, %v563_v55  ;;  %v566_v8 = vsel %vm213_vm1, 0.0, %v565_v56  ;;  %v638_v15 = vperm.slane %v634_v59, %v5038_v21  ;;  %4425 = vmatmul.msk.f32.vlgmr.msra.gmra.mxu3 %vm921_vm2, %v5101_v32 }
 0x1a6   :  { %v628_v16 = vrot.slane %v564_v7, 4  ;;  %v616_v17 = vsel %vm213_vm1, %v615_v43, %v598_v33  ;;  %v618_v18 = vsel %vm213_vm1, %v610_v52, %v617_v63  ;;  %4427 = vmatmul.msk.f32.vlgmr.msra.gmra.mxu1 %vm921_vm2, %v5104_v35  ;;  %v623_v19 = vsel %vm213_vm1, %v563_v55, %v544_v46 }
 0x1a7   :  { %4420 = vmatpush.xpose.msk.msra.mxu2 %vm921_vm2, %v616_v17  ;;  %v562_v20 = vsel %vm213_vm1, 0.0, %v561_v6  ;;  %v627_v24 = vperm.slane %v623_v19, %v5038_v21  ;;  %v640_v25 = vsel %vm213_vm1, %v639_v60, %v566_v8  ;;  %v659_v22 = vrot.slane %v638_v15, 4  ;;  %v124_v17 = vld [vmem:[#allocation7] sm:$0xff] }
 0x1a8   :  { %v629_v32 = vsel %vm213_vm1, %v628_v16, %v562_v20  ;;  %v644_v26 = vperm.slane %v640_v25, %v5038_v21  ;;  %v403_v27 = vrot.slane %v5160_v62, 4  ;;  %v413_v30 = vrot.slane %v5168_v11, 4 }
 0x1a9   :  { %v633_v35 = vperm.slane %v629_v32, %v5038_v21  ;;  %v647_v29 = vrot.slane %v627_v24, 4  ;;  %v424_v39 = vperm.slane %v5191_v58, %v5059_v34  ;;  %v402_v47 = vsel %vm213_vm1, %v401_v54, %v5160_v62 }
 0x1aa   :  { %4421 = vmatmul.msk.f32.vlgmr.msra.gmra.mxu2 %vm921_vm2, %v5107_v37  ;;  %v657_v36 = vrot.slane %v644_v26, 4  ;;  %v660_v61 = vsel %vm213_vm1, %v644_v26, %v659_v22  ;;  %v404_v48 = vsel %vm213_vm1, %v5165_v9, %v403_v27  ;;  %v414_v51 = vsel %vm213_vm1, %v413_v30, %v5152_v53  ;;  %v125_v30 = vld [vmem:[#allocation7 + $0x8] sm:$0xff] }
 0x1ab   :  { %4422 = vmatpush.xpose.msk.msrb.mxu2 %vm921_vm2, %v618_v18  ;;  %v645_v40 = vrot.slane %v633_v35, 4  ;;  %v648_v42 = vsel %vm213_vm1, %v633_v35, %v647_v29  ;;  %v668_v44 = vperm.slane %v660_v61, %v5059_v34  ;;  %v429_v46 = vrot.slane %v424_v39, 4 }
 0x1ac   :  { %v656_v11 = vperm.slane %v648_v42, %v5059_v34  ;;  %v658_v37 = vsel %vm213_vm1, %v657_v36, %v638_v15  ;;  %v408_v62 = vperm.slane %v402_v47, %v5059_v34  ;;  %v412_v9 = vperm.slane %v404_v48, %v5059_v34 }
 0x1ad   :  { %v673_v49 = vrot.slane %v668_v44, 4  ;;  %v646_v58 = vsel %vm213_vm1, %v645_v40, %v627_v24  ;;  %v664_v50 = vperm.slane %v658_v37, %v5059_v34  ;;  %v420_v53 = vperm.slane %v414_v51, %v5059_v34 }
 0x1ae   :  { %v675_v33 = vrot.slane %v656_v11, 4  ;;  %v652_v52 = vperm.slane %v646_v58, %v5059_v34  ;;  %v430_v60 = vsel %vm213_vm1, %v429_v46, %v412_v9  ;;  %v427_v63 = vrot.slane %v408_v62, 4 }
 0x1af   :  { %v674_v54 = vsel %vm213_vm1, %v673_v49, %v656_v11  ;;  %v669_v55 = vrot.slane %v664_v50, 4  ;;  %v425_v6 = vrot.slane %v420_v53, 4  ;;  %v431_v8 = vrot.slane %v412_v9, 4 }
 0x1b0   :  { %4432 = vmatpush.xpose.msk.msrb.mxu1 %vm921_vm2, %v674_v54  ;;  %v671_v56 = vrot.slane %v652_v52, 4  ;;  %v676_v59 = vsel %vm213_vm1, %v668_v44, %v675_v33  ;;  %v428_v7 = vsel %vm213_vm1, %v420_v53, %v427_v63  ;;  %v4521_v9 = vpack.i.bf16 %v5070_v45, %v5012_v12 }
 0x1b1   :  { %v670_v57 = vsel %vm213_vm1, %v669_v55, %v652_v52  ;;  %v432_v15 = vsel %vm213_vm1, %v424_v39, %v431_v8 }
 0x1b2   :  { %4423 = vmatmul.msk.f32.vlgmr.msrb.gmra.mxu2 %vm921_vm2, %v5110_v38  ;;  %v672_v43 = vsel %vm213_vm1, %v664_v50, %v671_v56  ;;  %v426_v38 = vsel %vm213_vm1, %v425_v6, %v408_v62  ;;  %v4511_v56 = vpack.i.bf16 %v5026_v14, %v5006_v10 }
 0x1b3   :  { %4428 = vmatpush.xpose.msk.msra.mxu2 %vm921_vm2, %v670_v57  ;;  %4433 = vmatmul.msk.f32.vlgmr.msrb.gmra.mxu1 %vm921_vm2, %v430_v60 }
 0x1b4   :  { %4430 = vmatpush.xpose.msk.msrb.mxu3 %vm921_vm2, %v672_v43 }
 0x1b7   :  { %4434 = vmatpush.xpose.msk.msrb.mxu2 %vm921_vm2, %v676_v59  ;;  %4431 = vmatmul.msk.f32.vlgmr.msrb.gmra.mxu3 %vm921_vm2, %v428_v7 }
 0x1ba   :  { %4429 = vmatmul.msk.f32.vlgmr.msra.gmra.mxu2 %vm921_vm2, %v426_v38 }
 0x1c2   :  { %4435 = vmatmul.msk.f32.vlgmr.msrb.gmra.mxu2 %vm921_vm2, %v432_v15 }
 0x223   :  { %v1023_v16 = vpop.f32.mrf.mxu1 }
 0x224   :  { %v1133_v18 = vmul.f32 0.35355338, %v1023_v16 }
 0x226   :  { %v1141_v19 = vadd.f32 %v1133_v18, %v124_v17 }
 0x228   :  { %v1155_v20 = vsel %vm921_vm2, %v1141_v19, -inf  ;;  %v997_v24 = vpop.f32.mrf.mxu3 }
 0x229   :  { %1156 = vmax.xlane.f32.xlu0 %v1155_v20  ;;  %v1132_v25 = vmul.f32 0.35355338, %v997_v24  ;;  %v4526_v20 = vpack.i.bf16 %v5066_v41, %v5041_v23 }
 0x22b   :  { %v1140_v22 = vadd.f32 %v1132_v25, %v124_v17 }
 0x22d   :  { %v945_v32 = vpop.f32.mrf.mxu2  ;;  %v1152_v26 = vsel %vm921_vm2, %v1140_v22, -inf }
 0x22e   :  { %v1130_v27 = vmul.f32 0.35355338, %v945_v32  ;;  %1153 = vmax.xlane.f32.xlu1 %v1152_v26 }
 0x230   :  { %v1101_v35 = vpop.f32.mrf.mxu1  ;;  %v5283_v29 = vadd.f32 %v1130_v27, %v124_v17 }
 0x231   :  { %v1136_v36 = vmul.f32 0.35355338, %v1101_v35 }
 0x232   :  { %v1146_v61 = vsel %vm921_vm2, %v5283_v29, -inf }
 0x233   :  { %1147 = vmax.xlane.f32.xlu2 %v1146_v61  ;;  %v1144_v39 = vadd.f32 %v1136_v36, %v125_v30 }
 0x235   :  { %v971_v40 = vpop.f32.mrf.mxu2  ;;  %v1164_v42 = vsel %vm921_vm2, %v1144_v39, -inf }
 0x236   :  { %v1131_v44 = vmul.f32 0.35355338, %v971_v40  ;;  %1165 = vmax.xlane.f32.xlu1 %v1164_v42 }
 0x238   :  { %v5288_v47 = vadd.f32 %v1131_v44, %v124_v17 }
 0x23a   :  { %v1149_v11 = vsel %vm921_vm2, %v5288_v47, -inf  ;;  %v1075_v37 = vpop.f32.mrf.mxu3 }
 0x23b   :  { %1150 = vmax.xlane.f32.xlu2 %v1149_v11  ;;  %v1135_v48 = vmul.f32 0.35355338, %v1075_v37 }
 0x23d   :  { %v1049_v49 = vpop.f32.mrf.mxu2  ;;  %v1143_v58 = vadd.f32 %v1135_v48, %v125_v30 }
 0x23e   :  { %v1134_v51 = vmul.f32 0.35355338, %v1049_v49 }
 0x23f   :  { %v1161_v50 = vsel %vm921_vm2, %v1143_v58, -inf }
 0x240   :  { %v1142_v46 = vadd.f32 %v1134_v51, %v125_v30 }
 0x242   :  { %v1158_v54 = vsel %vm921_vm2, %v1142_v46, -inf }
 0x243   :  { %1162 = vmax.xlane.f32.xlu2 %v1161_v50 }
 0x245   :  { %v1127_v33 = vpop.f32.mrf.mxu2 }
 0x246   :  { %v1137_v52 = vmul.f32 0.35355338, %v1127_v33 }
 0x248   :  { %v5293_v62 = vadd.f32 %v1137_v52, %v125_v30 }
 0x24a   :  { %v1167_v55 = vsel %vm921_vm2, %v5293_v62, -inf }
 0x24b   :  { %1159 = vmax.xlane.f32.xlu2 %v1158_v54  ;;  %1168 = vmax.xlane.f32.xlu0 %v1167_v55 }
 0x24f   :  { %4517 = vrot.lane.b32.xlu1 %v4516_v31, %s4914_s7 }
 0x257   :  { %4522 = vrot.lane.b32.xlu1 %v4521_v9, %s4914_s7 }
 0x25f   :  { %4512 = vrot.lane.b32.xlu0 %v4511_v56, %s4914_s7 }
 0x29c   :  { %v1157_v57 = vpop.xlane.xlu0 %1156 }
 0x29d   :  { %v1173_v59 = vsub.f32 %v1141_v19, %v1157_v57 }
 0x29f   :  { %v1184_v53 = vmul.f32 1.442695, %v1173_v59 }
 0x2a1   :  { %4624 = vpow2.f32 %v1184_v53  ;;  %v1154_v60 = vpop.xlane.xlu1 %1153 }
 0x2a2   :  { %v1172_v43 = vsub.f32 %v1140_v22, %v1154_v60 }
 0x2a4   :  { %v1182_v63 = vmul.f32 1.442695, %v1172_v43 }
 0x2a6   :  { %4626 = vpow2.f32 %v1182_v63  ;;  %v1148_v13 = vpop.xlane.xlu2 %1147 }
 0x2a7   :  { %v5308_v28 = vpop.eup %4624 }
 0x2a8   :  { %v1203_v12 = vsel %vm921_vm2, %v5308_v28, 0.0 }
 0x2a9   :  { %1204 = vadd.xlane.f32.xlu2 %v1203_v12  ;;  %v1166_v31 = vpop.xlane.xlu1 %1165 }
 0x2aa   :  { %v1176_v45 = vsub.f32 %v1144_v39, %v1166_v31 }
 0x2ac   :  { %v5312_v10 = vpop.eup %4626  ;;  %v1190_v14 = vmul.f32 1.442695, %v1176_v45 }
 0x2ad   :  { %v1200_v6 = vsel %vm921_vm2, %v5312_v10, 0.0 }
 0x2ae   :  { %4628 = vpow2.f32 %v1190_v14  ;;  %v5316_v7 = vpop.xlane.xlu2 %1150  ;;  %1201 = vadd.xlane.f32.xlu0 %v1200_v6 }
 0x2b4   :  { %v5318_v38 = vpop.eup %4628 }
 0x2b5   :  { %v1212_v8 = vsel %vm921_vm2, %v5318_v38, 0.0 }
 0x2b6   :  { %v1163_v15 = vpop.xlane.xlu2 %1162  ;;  %1213 = vadd.xlane.f32.xlu0 %v1212_v8  ;;  %v1171_v8 = vsub.f32 %v5288_v47, %v5316_v7 }
 0x2b7   :  { %v1175_v16 = vsub.f32 %v1143_v58, %v1163_v15  ;;  %v1170_v58 = vsub.f32 %v5283_v29, %v1148_v13 }
 0x2b9   :  { %v1188_v17 = vmul.f32 1.442695, %v1175_v16  ;;  %v1178_v53 = vmul.f32 1.442695, %v1170_v58 }
 0x2bb   :  { %4630 = vpow2.f32 %v1188_v17 }
 0x2be   :  { %v1160_v18 = vpop.xlane.xlu2 %1159  ;;  %v5331_v26 = vpop.xlane.xlu0 %1168 }
 0x2bf   :  { %v1174_v19 = vsub.f32 %v1142_v46, %v1160_v18 }
 0x2c1   :  { %v5324_v24 = vpop.eup %4630  ;;  %v1186_v25 = vmul.f32 1.442695, %v1174_v19  ;;  %4527 = vrot.lane.b32.xlu2 %v4526_v20, %s4914_s7  ;;  %v4518_v35 = vpop.permute.xlu1 %4517 }
 0x2c2   :  { %v1209_v22 = vsel %vm921_vm2, %v5324_v24, 0.0  ;;  %v4520_v23 = vunpack.i.h.bf16 %v4518_v35  ;;  %v4519_v41 = vunpack.i.l.bf16 %v4518_v35 }
 0x2c3   :  { %4632 = vpow2.f32 %v1186_v25  ;;  %1210 = vadd.xlane.f32.xlu0 %v1209_v22 }
 0x2c4   :  { %v713_v36 = vrot.slane %v4520_v23, 4  ;;  %v701_v61 = vrot.slane %v4519_v41, 4  ;;  %4634 = vpow2.f32 %v1178_v53 }
 0x2c9   :  { %v5329_v32 = vpop.eup %4632 }
 0x2ca   :  { %v1206_v27 = vsel %vm921_vm2, %v5329_v32, 0.0 }
 0x2cb   :  { %1207 = vadd.xlane.f32.xlu1 %v1206_v27 }
 0x2d1   :  { %v4513_v30 = vpop.permute.xlu0 %4512 }
 0x2d2   :  { %v4515_v39 = vunpack.i.h.bf16 %v4513_v30  ;;  %v4514_v40 = vunpack.i.l.bf16 %v4513_v30  ;;  %v1180_v30 = vmul.f32 1.442695, %v1171_v8 }
 0x2d4   :  { %v714_v42 = vsel %vm213_vm1, %v713_v36, %v4515_v39  ;;  %v715_v44 = vrot.slane %v4515_v39, 4  ;;  %v702_v11 = vsel %vm213_vm1, %v701_v61, %v4514_v40  ;;  %v703_v37 = vrot.slane %v4514_v40, 4  ;;  %v5367_v40 = vpop.eup %4634 }
 0x2d5   :  { %v720_v48 = vperm.slane %v714_v42, %v5038_v21  ;;  %v708_v49 = vperm.slane %v702_v11, %v5038_v21  ;;  %4636 = vpow2.f32 %v1180_v30 }
 0x2d6   :  { %v716_v50 = vsel %vm213_vm1, %v4520_v23, %v715_v44  ;;  %v704_v51 = vsel %vm213_vm1, %v4519_v41, %v703_v37 }
 0x2d7   :  { %v724_v33 = vperm.slane %v716_v50, %v5038_v21  ;;  %v725_v52 = vrot.slane %v720_v48, 4  ;;  %v712_v46 = vperm.slane %v704_v51, %v5038_v21  ;;  %v727_v54 = vrot.slane %v708_v49, 4 }
 0x2d8   :  { %v1177_v50 = vsub.f32 %v5293_v62, %v5331_v26  ;;  %v1194_v51 = vsel %vm921_vm2, %v5367_v40, 0.0 }
 0x2d9   :  { %v737_v55 = vrot.slane %v724_v33, 4  ;;  %v726_v9 = vsel %vm213_vm1, %v725_v52, %v708_v49  ;;  %v728_v56 = vsel %vm213_vm1, %v720_v48, %v727_v54  ;;  %v739_v57 = vrot.slane %v712_v46, 4 }
 0x2da   :  { %v732_v59 = vperm.slane %v726_v9, %v5059_v34  ;;  %v736_v29 = vperm.slane %v728_v56, %v5059_v34 }
 0x2db   :  { %v738_v60 = vsel %vm213_vm1, %v737_v55, %v712_v46  ;;  %v740_v43 = vsel %vm213_vm1, %v724_v33, %v739_v57  ;;  %v5384_v26 = vpop.eup %4636 }
 0x2dc   :  { %v744_v63 = vperm.slane %v738_v60, %v5059_v34  ;;  %v748_v13 = vperm.slane %v740_v43, %v5059_v34  ;;  %v749_v12 = vrot.slane %v732_v59, 4  ;;  %v751_v31 = vrot.slane %v736_v29, 4 }
 0x2dd   :  { %v1197_v29 = vsel %vm921_vm2, %v5384_v26, 0.0 }
 0x2de   :  { %v752_v45 = vsel %vm213_vm1, 0.0, %v751_v31  ;;  %v753_v14 = vrot.slane %v744_v63, 4  ;;  %v755_v6 = vrot.slane %v748_v13, 4  ;;  %v813_v15 = vsel %vm213_vm1, %v751_v31, %v732_v59 }
 0x2df   :  { %v818_v16 = vrot.slane %v752_v45, 4  ;;  %v750_v17 = vsel %vm213_vm1, 0.0, %v749_v12  ;;  %v817_v19 = vperm.slane %v813_v15, %v5038_v21  ;;  %v1192_v59 = vmul.f32 1.442695, %v1177_v50 }
 0x2e0   :  { %v756_v18 = vsel %vm213_vm1, 0.0, %v755_v6  ;;  %v824_v20 = vsel %vm213_vm1, %v755_v6, %v744_v63  ;;  %v754_v35 = vsel %vm213_vm1, 0.0, %v753_v14  ;;  %v4523_v63 = vpop.permute.xlu1 %4522 }
 0x2e1   :  { %v829_v25 = vrot.slane %v756_v18, 4  ;;  %v819_v22 = vsel %vm213_vm1, %v818_v16, %v750_v17  ;;  %v828_v27 = vperm.slane %v824_v20, %v5038_v21  ;;  %v837_v7 = vrot.slane %v817_v19, 4 }
 0x2e2   :  { %v823_v47 = vperm.slane %v819_v22, %v5038_v21  ;;  %4638 = vpow2.f32 %v1192_v59  ;;  %v4525_v13 = vunpack.i.h.bf16 %v4523_v63  ;;  %v4524_v12 = vunpack.i.l.bf16 %v4523_v63 }
 0x2e3   :  { %v830_v23 = vsel %vm213_vm1, %v829_v25, %v754_v35  ;;  %v849_v41 = vrot.slane %v828_v27, 4 }
 0x2e4   :  { %v834_v36 = vperm.slane %v830_v23, %v5038_v21  ;;  %v838_v61 = vsel %vm213_vm1, %v823_v47, %v837_v7  ;;  %v835_v39 = vrot.slane %v823_v47, 4  ;;  %v771_v8 = vrot.slane %v4525_v13, 4  ;;  %4532 = vrot.lane.b32.xlu1 %v4531_v2, %s4915_s8 }
 0x2e5   :  { %v846_v42 = vperm.slane %v838_v61, %v5059_v34  ;;  %v759_v17 = vrot.slane %v4524_v12, 4 }
 0x2e6   :  { %v850_v44 = vsel %vm213_vm1, %v834_v36, %v849_v41  ;;  %v836_v11 = vsel %vm213_vm1, %v835_v39, %v817_v19  ;;  %v847_v37 = vrot.slane %v834_v36, 4 }
 0x2e7   :  { %v858_v48 = vperm.slane %v850_v44, %v5059_v34  ;;  %v865_v49 = vrot.slane %v846_v42, 4  ;;  %v842_v58 = vperm.slane %v836_v11, %v5059_v34 }
 0x2e8   :  { %v848_v33 = vsel %vm213_vm1, %v847_v37, %v828_v27  ;;  %v5388_v53 = vpop.eup %4638 }
 0x2e9   :  { %v866_v52 = vsel %vm213_vm1, %v858_v48, %v865_v49  ;;  %v854_v46 = vperm.slane %v848_v33, %v5059_v34  ;;  %v861_v54 = vrot.slane %v842_v58, 4  ;;  %v863_v55 = vrot.slane %v858_v48, 4 }
 0x2ea   :  { %1433 = vmatpush.msra.mxu2 %v866_v52  ;;  %1195 = vadd.xlane.f32.xlu2 %v1194_v51  ;;  %v1215_v60 = vsel %vm921_vm2, %v5388_v53, 0.0 }
 0x2eb   :  { %v859_v9 = vrot.slane %v854_v46, 4  ;;  %v862_v56 = vsel %vm213_vm1, %v854_v46, %v861_v54  ;;  %v864_v57 = vsel %vm213_vm1, %v863_v55, %v846_v42 }
 0x2ec   :  { %1387 = vmatpush.msrb.mxu0 %v862_v56  ;;  %1410 = vmatpush.msra.mxu1 %v864_v57 }
 0x2ed   :  { %v860_v62 = vsel %vm213_vm1, %v859_v9, %v842_v58 }
 0x2ee   :  { %1364 = vmatpush.msra.mxu3 %v860_v62 }
 0x2f2   :  { %1198 = vadd.xlane.f32.xlu2 %v1197_v29 }
 0x2fa   :  { %1216 = vadd.xlane.f32.xlu2 %v1215_v60 }
 0x312   :  { %4537 = vrot.lane.b32.xlu2 %v4536_v5, %s4915_s8 }
 0x31c   :  { %v1205_v43 = vpop.xlane.xlu2 %1204 }
 0x31d   :  { %4640 = vrcp.f32 %v1205_v43  ;;  %v1272_v45 = vand.u32 2147483647, %v1205_v43  ;;  %v1274_v14 = vand.u32 2147483648, %v1205_v43  ;;  %vm1268_vm3 = vweird.f32 %v1205_v43 }
 0x31f   :  { %vm5392_vm4 = vcmp.eq.f32.partialorder %v1272_v45, 8.507059e+37  ;;  %v1275_v22 = vor.u32 1.1754944e-38, %v1274_v14 }
 0x321   :  { %v1202_v31 = vpop.xlane.xlu0 %1201 }
 0x322   :  { %4642 = vrcp.f32 %v1202_v31  ;;  %v1257_v27 = vand.u32 2147483647, %v1202_v31  ;;  %v1259_v42 = vand.u32 2147483648, %v1202_v31  ;;  %vm1253_vm8 = vweird.f32 %v1202_v31 }
 0x323   :  { %v4641_v6 = vpop.eup %4640 }
 0x324   :  { %v1264_v15 = vmul.f32 %v4641_v6, %v1205_v43  ;;  %v4528_v16 = vpop.permute.xlu2 %4527  ;;  %vm1269_vm5 = vweird.f32 %v4641_v6  ;;  %vm1258_vm10 = vcmp.eq.f32.partialorder %v1257_v27, 8.507059e+37  ;;  %v1260_v45 = vor.u32 1.1754944e-38, %v1259_v42 }
 0x325   :  { %v4530_v18 = vunpack.i.h.bf16 %v4528_v16  ;;  %v4529_v19 = vunpack.i.l.bf16 %v4528_v16  ;;  %vm1270_vm6 = vmor %vm1268_vm3, %vm1269_vm5 }
 0x326   :  { %v1265_v20 = vsub.f32 1.0, %v1264_v15 }
 0x327   :  { %v769_v35 = vrot.slane %v4530_v18, 4  ;;  %v772_v47 = vsel %vm213_vm1, %v4530_v18, %v771_v8  ;;  %v757_v7 = vrot.slane %v4529_v19, 4  ;;  %v760_v23 = vsel %vm213_vm1, %v4529_v19, %v759_v17 }
 0x328   :  { %v4643_v41 = vpop.eup %4642  ;;  %v1266_v30 = vmul.f32 %v4641_v6, %v1265_v20  ;;  %v780_v36 = vperm.slane %v772_v47, %v5038_v21  ;;  %v768_v61 = vperm.slane %v760_v23, %v5038_v21 }
 0x329   :  { %v1249_v39 = vmul.f32 %v4643_v41, %v1202_v31  ;;  %v770_v44 = vsel %vm213_vm1, %v769_v35, %v4525_v13  ;;  %v758_v11 = vsel %vm213_vm1, %v757_v7, %v4524_v12  ;;  %v5402_v37 = vpop.xlane.xlu0 %1213  ;;  %vm1254_vm7 = vweird.f32 %v4643_v41 }
 0x32a   :  { %v1267_v48 = vadd.f32 %v4641_v6, %v1266_v30  ;;  %v776_v49 = vperm.slane %v770_v44, %v5038_v21  ;;  %v793_v58 = vrot.slane %v780_v36, 4  ;;  %v764_v50 = vperm.slane %v758_v11, %v5038_v21  ;;  %vm1255_vm9 = vmor %vm1253_vm8, %vm1254_vm7 }
 0x32b   :  { %v1250_v51 = vsub.f32 1.0, %v1249_v39  ;;  %v795_v33 = vrot.slane %v768_v61, 4  ;;  %4644 = vrcp.f32 %v5402_v37  ;;  %v1317_v17 = vand.u32 2147483647, %v5402_v37 }
 0x32c   :  { %v1271_v52 = vsel %vm1270_vm6, %v4641_v6, %v1267_v48  ;;  %v781_v46 = vrot.slane %v776_v49, 4  ;;  %v783_v54 = vrot.slane %v764_v50, 4  ;;  %v794_v55 = vsel %vm213_vm1, %v793_v58, %v768_v61 }
 0x32d   :  { %v1276_v9 = vsel %vm5392_vm4, %v1275_v22, %v1271_v52  ;;  %v1251_v56 = vmul.f32 %v4643_v41, %v1250_v51  ;;  %v796_v57 = vsel %vm213_vm1, %v780_v36, %v795_v33  ;;  %v800_v59 = vperm.slane %v794_v55, %v5059_v34 }
 0x32e   :  { %v782_v62 = vsel %vm213_vm1, %v781_v46, %v764_v50  ;;  %v784_v29 = vsel %vm213_vm1, %v776_v49, %v783_v54  ;;  %v804_v60 = vperm.slane %v796_v57, %v5059_v34  ;;  %v1341_v6 = vmul.f32 %v5308_v28, %v1276_v9 }
 0x32f   :  { %v1252_v43 = vadd.f32 %v4643_v41, %v1251_v56  ;;  %v788_v63 = vperm.slane %v782_v62, %v5059_v34  ;;  %v792_v13 = vperm.slane %v784_v29, %v5059_v34  ;;  %v809_v12 = vrot.slane %v800_v59, 4 }
 0x330   :  { %v811_v14 = vrot.slane %v804_v60, 4  ;;  %4439 = vmatmul.msk.f32.vlgmr.msra.gmra.mxu2 %vm921_vm2, %v1341_v6  ;;  %v1319_v35 = vand.u32 2147483648, %v5402_v37  ;;  %vm1313_vm12 = vweird.f32 %v5402_v37  ;;  %vm1318_vm14 = vcmp.eq.f32.partialorder %v1317_v17, 8.507059e+37 }
 0x331   :  { %v4645_v31 = vpop.eup %4644  ;;  %v1256_v8 = vsel %vm1255_vm9, %v4643_v41, %v1252_v43  ;;  %v805_v15 = vrot.slane %v788_v63, 4  ;;  %v807_v16 = vrot.slane %v792_v13, 4  ;;  %v810_v27 = vsel %vm213_vm1, 0.0, %v809_v12 }
 0x332   :  { %v1261_v18 = vsel %vm1258_vm10, %v1260_v45, %v1256_v8  ;;  %v812_v19 = vsel %vm213_vm1, 0.0, %v811_v14  ;;  %v878_v20 = vsel %vm213_vm1, %v811_v14, %v800_v59  ;;  %v1309_v25 = vmul.f32 %v4645_v31, %v5402_v37 }
 0x333   :  { %v808_v22 = vsel %vm213_vm1, 0.0, %v807_v16  ;;  %v883_v28 = vrot.slane %v812_v19, 4  ;;  %vm1314_vm11 = vweird.f32 %v4645_v31  ;;  %v1340_v23 = vmul.f32 %v5312_v10, %v1261_v18 }
 0x334   :  { %v872_v47 = vrot.slane %v808_v22, 4  ;;  %v1310_v7 = vsub.f32 1.0, %v1309_v25  ;;  %v806_v41 = vsel %vm213_vm1, 0.0, %v805_v15  ;;  %v867_v30 = vsel %vm213_vm1, %v807_v16, %v788_v63  ;;  %vm1315_vm13 = vmor %vm1313_vm12, %vm1314_vm11 }
 0x335   :  { %v882_v36 = vperm.slane %v878_v20, %v5038_v21  ;;  %v884_v61 = vsel %vm213_vm1, %v883_v28, %v810_v27  ;;  %4438 = vmatmul.msk.f32.vlgmr.msra.gmra.mxu1 %vm921_vm2, %v1340_v23  ;;  %v871_v42 = vperm.slane %v867_v30, %v5038_v21  ;;  %v1320_v50 = vor.u32 1.1754944e-38, %v1319_v35 }
 0x336   :  { %v1311_v39 = vmul.f32 %v4645_v31, %v1310_v7  ;;  %v873_v44 = vsel %vm213_vm1, %v872_v47, %v806_v41  ;;  %v888_v11 = vperm.slane %v884_v61, %v5038_v21  ;;  %v5454_v8 = vpop.xlane.xlu0 %1210 }
 0x337   :  { %v877_v48 = vperm.slane %v873_v44, %v5038_v21  ;;  %v891_v49 = vrot.slane %v871_v42, 4  ;;  %v903_v58 = vrot.slane %v882_v36, 4 }
 0x338   :  { %v1312_v10 = vadd.f32 %v4645_v31, %v1311_v39  ;;  %v901_v51 = vrot.slane %v888_v11, 4 }
 0x339   :  { %v892_v52 = vsel %vm213_vm1, %v877_v48, %v891_v49  ;;  %v904_v46 = vsel %vm213_vm1, %v888_v11, %v903_v58  ;;  %v889_v54 = vrot.slane %v877_v48, 4 }
 0x33a   :  { %v1316_v33 = vsel %vm1315_vm13, %v4645_v31, %v1312_v10  ;;  %v900_v9 = vperm.slane %v892_v52, %v5059_v34  ;;  %v912_v37 = vperm.slane %v904_v46, %v5059_v34  ;;  %v902_v56 = vsel %vm213_vm1, %v901_v51, %v882_v36 }
 0x33b   :  { %v1321_v55 = vsel %vm1318_vm14, %v1320_v50, %v1316_v33  ;;  %v890_v57 = vsel %vm213_vm1, %v889_v54, %v871_v42  ;;  %v908_v59 = vperm.slane %v902_v56, %v5059_v34 }
 0x33c   :  { %v917_v62 = vrot.slane %v912_v37, 4  ;;  %v896_v29 = vperm.slane %v890_v57, %v5059_v34  ;;  %v919_v60 = vrot.slane %v900_v9, 4  ;;  %v1344_v43 = vmul.f32 %v5318_v38, %v1321_v55 }
 0x33d   :  { %v913_v63 = vrot.slane %v908_v59, 4 }
 0x33e   :  { %v918_v13 = vsel %vm213_vm1, %v917_v62, %v900_v9  ;;  %v920_v45 = vsel %vm213_vm1, %v912_v37, %v919_v60  ;;  %v915_v14 = vrot.slane %v896_v29, 4  ;;  %v1208_v31 = vpop.xlane.xlu1 %1207  ;;  %v1304_v62 = vand.u32 2147483648, %v5454_v8 }
 0x33f   :  { %v914_v12 = vsel %vm213_vm1, %v913_v63, %v896_v29  ;;  %1502 = vmatpush.msrb.mxu1 %v918_v13  ;;  %1525 = vmatpush.msrb.mxu2 %v920_v45  ;;  %4646 = vrcp.f32 %v1208_v31  ;;  %v1289_v11 = vand.u32 2147483648, %v1208_v31  ;;  %vm1283_vm7 = vweird.f32 %v1208_v31 }
 0x340   :  { %1456 = vmatpush.msrb.mxu3 %v914_v12  ;;  %4442 = vmatmul.msk.f32.vlgmr.msrb.gmra.mxu1 %vm921_vm2, %v1344_v43  ;;  %v916_v6 = vsel %vm213_vm1, %v908_v59, %v915_v14  ;;  %v1287_v48 = vand.u32 2147483647, %v1208_v31  ;;  %v1302_v60 = vand.u32 2147483647, %v5454_v8 }
 0x341   :  { %1479 = vmatpush.msra.mxu0 %v916_v6  ;;  %v1290_v54 = vor.u32 1.1754944e-38, %v1289_v11 }
 0x342   :  { %vm1288_vm10 = vcmp.eq.f32.partialorder %v1287_v48, 8.507059e+37 }
 0x345   :  { %v4647_v15 = vpop.eup %4646 }
 0x346   :  { %v1279_v16 = vmul.f32 %v4647_v15, %v1208_v31  ;;  %vm1284_vm4 = vweird.f32 %v4647_v15  ;;  %v1305_v31 = vor.u32 1.1754944e-38, %v1304_v62 }
 0x347   :  { %vm1285_vm8 = vmor %vm1283_vm7, %vm1284_vm4 }
 0x348   :  { %v1280_v19 = vsub.f32 1.0, %v1279_v16 }
 0x34a   :  { %v1281_v35 = vmul.f32 %v4647_v15, %v1280_v19 }
 0x34c   :  { %v1282_v61 = vadd.f32 %v4647_v15, %v1281_v35 }
 0x34e   :  { %v1286_v33 = vsel %vm1285_vm8, %v4647_v15, %v1282_v61 }
 0x34f   :  { %v1291_v37 = vsel %vm1288_vm10, %v1290_v54, %v1286_v33  ;;  %vm1779_vm10 = vcmask 195584  }
 0x350   :  { %v1342_v13 = vmul.f32 %v5329_v32, %v1291_v37 }
 0x35d   :  { %v1196_v38 = vpop.xlane.xlu2 %1195 }
 0x35e   :  { %4648 = vrcp.f32 %v1196_v38  ;;  %v1229_v28 = vand.u32 2147483648, %v1196_v38  ;;  %v1227_v7 = vand.u32 2147483647, %v1196_v38  ;;  %vm1223_vm3 = vweird.f32 %v1196_v38 }
 0x35f   :  { %4650 = vrcp.f32 %v5454_v8 }
 0x360   :  { %v1230_v36 = vor.u32 1.1754944e-38, %v1229_v28  ;;  %vm1228_vm6 = vcmp.eq.f32.partialorder %v1227_v7, 8.507059e+37 }
 0x364   :  { %v4649_v17 = vpop.eup %4648 }
 0x365   :  { %v5457_v18 = vpop.eup %4650  ;;  %v1219_v20 = vmul.f32 %v4649_v17, %v1196_v38  ;;  %v1199_v25 = vpop.xlane.xlu2 %1198  ;;  %vm1224_vm15 = vweird.f32 %v4649_v17 }
 0x366   :  { %4652 = vrcp.f32 %v1199_v25  ;;  %v1294_v27 = vmul.f32 %v5457_v18, %v5454_v8  ;;  %vm1225_vm5 = vmor %vm1223_vm3, %vm1224_vm15  ;;  %v1244_v51 = vand.u32 2147483648, %v1199_v25  ;;  %v1242_v46 = vand.u32 2147483647, %v1199_v25 }
 0x367   :  { %v1220_v22 = vsub.f32 1.0, %v1219_v20  ;;  %vm1238_vm11 = vweird.f32 %v1199_v25  ;;  %vm1299_vm12 = vweird.f32 %v5457_v18  ;;  %vm1298_vm15 = vweird.f32 %v5454_v8 }
 0x368   :  { %v1295_v30 = vsub.f32 1.0, %v1294_v27  ;;  %vm1243_vm14 = vcmp.eq.f32.partialorder %v1242_v46, 8.507059e+37  ;;  %vm1300_vm3 = vmor %vm1298_vm15, %vm1299_vm12 }
 0x369   :  { %v1221_v47 = vmul.f32 %v4649_v17, %v1220_v22 }
 0x36a   :  { %v1296_v50 = vmul.f32 %v5457_v18, %v1295_v30 }
 0x36b   :  { %v1222_v23 = vadd.f32 %v4649_v17, %v1221_v47 }
 0x36c   :  { %v4653_v41 = vpop.eup %4652  ;;  %v1297_v56 = vadd.f32 %v5457_v18, %v1296_v50 }
 0x36d   :  { %v1226_v39 = vsel %vm1225_vm5, %v4649_v17, %v1222_v23  ;;  %v1234_v42 = vmul.f32 %v4653_v41, %v1199_v25  ;;  %v1217_v44 = vpop.xlane.xlu2 %1216  ;;  %vm1239_vm9 = vweird.f32 %v4653_v41  ;;  %vm1303_vm5 = vcmp.eq.f32.partialorder %v1302_v60, 8.507059e+37 }
 0x36e   :  { %v1231_v10 = vsel %vm1228_vm6, %v1230_v36, %v1226_v39  ;;  %4654 = vrcp.f32 %v1217_v44  ;;  %vm1240_vm13 = vmor %vm1238_vm11, %vm1239_vm9  ;;  %v1334_v12 = vand.u32 2147483648, %v1217_v44  ;;  %v1301_v45 = vsel %vm1300_vm3, %v5457_v18, %v1297_v56 }
 0x36f   :  { %v1235_v49 = vsub.f32 1.0, %v1234_v42  ;;  %v1338_v58 = vmul.f32 %v5367_v40, %v1231_v10  ;;  %v1245_v40 = vor.u32 1.1754944e-38, %v1244_v51  ;;  %v1332_v6 = vand.u32 2147483647, %v1217_v44 }
 0x370   :  { %vm1328_vm6 = vweird.f32 %v1217_v44  ;;  %v1335_v32 = vor.u32 1.1754944e-38, %v1334_v12  ;;  %vm1776_vm9 = vcmask 130048  }
 0x371   :  { %v1236_v52 = vmul.f32 %v4653_v41, %v1235_v49  ;;  %4436 = vmatmul.msk.f32.vlgmr.msra.gmra.mxu3 %vm921_vm2, %v1338_v58  ;;  %vm1333_vm8 = vcmp.eq.f32.partialorder %v1332_v6, 8.507059e+37 }
 0x373   :  { %v1237_v55 = vadd.f32 %v4653_v41, %v1236_v52 }
 0x374   :  { %v4655_v9 = vpop.eup %4654 }
 0x375   :  { %v1324_v57 = vmul.f32 %v4655_v9, %v1217_v44  ;;  %v1241_v59 = vsel %vm1240_vm13, %v4653_v41, %v1237_v55  ;;  %vm1329_vm4 = vweird.f32 %v4655_v9 }
 0x376   :  { %v1246_v29 = vsel %vm1243_vm14, %v1245_v40, %v1241_v59  ;;  %vm1330_vm7 = vmor %vm1328_vm6, %vm1329_vm4 }
 0x377   :  { %v1325_v43 = vsub.f32 1.0, %v1324_v57  ;;  %v1339_v63 = vmul.f32 %v5384_v26, %v1246_v29  ;;  %v1306_v26 = vsel %vm1303_vm5, %v1305_v31, %v1301_v45 }
 0x378   :  { %v1343_v16 = vmul.f32 %v5324_v24, %v1306_v26 }
 0x379   :  { %v1326_v14 = vmul.f32 %v4655_v9, %v1325_v43  ;;  %4437 = vmatmul.msk.f32.vlgmr.msrb.gmra.mxu0 %vm921_vm2, %v1339_v63  ;;  %4440 = vmatmul.msk.f32.vlgmr.msrb.gmra.mxu3 %vm921_vm2, %v1342_v13 }
 0x37b   :  { %v1327_v8 = vadd.f32 %v4655_v9, %v1326_v14 }
 0x37d   :  { %v1331_v38 = vsel %vm1330_vm7, %v4655_v9, %v1327_v8 }
 0x37e   :  { %v1336_v15 = vsel %vm1333_vm8, %v1335_v32, %v1331_v38 }
 0x37f   :  { %v1345_v17 = vmul.f32 %v5388_v53, %v1336_v15 }
 0x381   :  { %4441 = vmatmul.msk.f32.vlgmr.msra.gmra.mxu0 %vm921_vm2, %v1343_v16  ;;  %4443 = vmatmul.msk.f32.vlgmr.msrb.gmra.mxu2 %vm921_vm2, %v1345_v17 }
 0x3b2   :  { %v1412_v18 = vpop.f32.mrf.mxu1 }
 0x3b3   :  { %v1435_v19 = vpop.f32.mrf.mxu2  ;;  %v1530_v24 = vrot.slane %v1412_v18, 4 }
 0x3b4   :  { %v1542_v53 = vrot.slane %v1435_v19, 4 }
 0x3bd   :  { %v1504_v2 = vpop.f32.mrf.mxu1 }
 0x3be   :  { %v1586_v36 = vrot.slane %v1504_v2, 4 }
 0x3f4   :  { %v1366_v20 = vpop.f32.mrf.mxu3 }
 0x3f5   :  { %v1531_v25 = vsel %vm213_vm1, %v1530_v24, %v1366_v20  ;;  %v1532_v22 = vrot.slane %v1366_v20, 4 }
 0x3f6   :  { %v1537_v27 = vperm.slane %v1531_v25, %v5038_v21  ;;  %v1389_v28 = vpop.f32.mrf.mxu0 }
 0x3f7   :  { %v1533_v35 = vsel %vm213_vm1, %v1412_v18, %v1532_v22  ;;  %v1543_v0 = vsel %vm213_vm1, %v1542_v53, %v1389_v28  ;;  %v1544_v1 = vrot.slane %v1389_v28, 4 }
 0x3f8   :  { %v1541_v3 = vperm.slane %v1533_v35, %v5038_v21  ;;  %v1556_v4 = vrot.slane %v1537_v27, 4  ;;  %v1549_v5 = vperm.slane %v1543_v0, %v5038_v21 }
 0x3f9   :  { %v1545_v47 = vsel %vm213_vm1, %v1435_v19, %v1544_v1 }
 0x3fa   :  { %v1568_v7 = vrot.slane %v1541_v3, 4  ;;  %v1553_v23 = vperm.slane %v1545_v47, %v5038_v21  ;;  %v1554_v41 = vrot.slane %v1549_v5, 4  ;;  %v1557_v30 = vsel %vm213_vm1, %v1549_v5, %v1556_v4 }
 0x3fb   :  { %v1565_v61 = vperm.slane %v1557_v30, %v5059_v34 }
 0x3fc   :  { %v1555_v39 = vsel %vm213_vm1, %v1554_v41, %v1537_v27  ;;  %v1566_v42 = vrot.slane %v1553_v23, 4  ;;  %v1569_v44 = vsel %vm213_vm1, %v1553_v23, %v1568_v7  ;;  %v1458_v11 = vpop.f32.mrf.mxu3 }
 0x3fd   :  { %v1561_v10 = vperm.slane %v1555_v39, %v5059_v34  ;;  %v1577_v48 = vperm.slane %v1569_v44, %v5059_v34  ;;  %v1580_v49 = vrot.slane %v1565_v61, 4  ;;  %v1587_v58 = vsel %vm213_vm1, %v1586_v36, %v1458_v11 }
 0x3fe   :  { %v1567_v50 = vsel %vm213_vm1, %v1566_v42, %v1541_v3  ;;  %v1588_v51 = vrot.slane %v1458_v11, 4  ;;  %v1481_v55 = vpop.f32.mrf.mxu0  ;;  %v1593_v56 = vperm.slane %v1587_v58, %v5038_v21 }
 0x3ff   :  { %v1573_v33 = vperm.slane %v1567_v50, %v5059_v34  ;;  %v1578_v52 = vrot.slane %v1561_v10, 4  ;;  %v1581_v46 = vsel %vm213_vm1, 0.0, %v1580_v49  ;;  %v1584_v54 = vrot.slane %v1577_v48, 4 }
 0x400   :  { %v1642_v9 = vsel %vm213_vm1, %v1580_v49, %v1561_v10  ;;  %v1647_v37 = vrot.slane %v1581_v46, 4  ;;  %v1589_v40 = vsel %vm213_vm1, %v1504_v2, %v1588_v51  ;;  %v1600_v63 = vrot.slane %v1481_v55, 4 }
 0x401   :  { %v1579_v57 = vsel %vm213_vm1, 0.0, %v1578_v52  ;;  %v1582_v59 = vrot.slane %v1573_v33, 4  ;;  %v1585_v62 = vsel %vm213_vm1, 0.0, %v1584_v54  ;;  %v1646_v29 = vperm.slane %v1642_v9, %v5038_v21 }
 0x402   :  { %v1658_v60 = vrot.slane %v1585_v62, 4  ;;  %v1597_v43 = vperm.slane %v1589_v40, %v5038_v21  ;;  %v1648_v13 = vsel %vm213_vm1, %v1647_v37, %v1579_v57  ;;  %v1653_v14 = vsel %vm213_vm1, %v1584_v54, %v1573_v33 }
 0x403   :  { %v1583_v12 = vsel %vm213_vm1, 0.0, %v1582_v59  ;;  %v1652_v45 = vperm.slane %v1648_v13, %v5038_v21  ;;  %v1666_v6 = vrot.slane %v1646_v29, 4  ;;  %v1657_v26 = vperm.slane %v1653_v14, %v5038_v21 }
 0x404   :  { %v1624_v31 = vrot.slane %v1597_v43, 4  ;;  %v1527_v8 = vpop.f32.mrf.mxu2  ;;  %v1659_v32 = vsel %vm213_vm1, %v1658_v60, %v1583_v12  ;;  %v1612_v53 = vrot.slane %v1593_v56, 4 }
 0x405   :  { %v1598_v38 = vrot.slane %v1527_v8, 4  ;;  %v1601_v15 = vsel %vm213_vm1, %v1527_v8, %v1600_v63  ;;  %v1663_v16 = vperm.slane %v1659_v32, %v5038_v21  ;;  %v1667_v17 = vsel %vm213_vm1, %v1652_v45, %v1666_v6 }
 0x406   :  { %v1609_v18 = vperm.slane %v1601_v15, %v5038_v21  ;;  %v5525_v19 = vperm.slane %v1667_v17, %v5059_v34  ;;  %v1678_v24 = vrot.slane %v1657_v26, 4  ;;  %v1664_v20 = vrot.slane %v1652_v45, 4 }
 0x407   :  { %v1599_v25 = vsel %vm213_vm1, %v1598_v38, %v1481_v55  ;;  %v1676_v22 = vrot.slane %v1663_v16, 4 }
 0x408   :  { %v1605_v27 = vperm.slane %v1599_v25, %v5038_v21  ;;  %v1622_v28 = vrot.slane %v1609_v18, 4  ;;  %v1625_v35 = vsel %vm213_vm1, %v1609_v18, %v1624_v31  ;;  %v1679_v0 = vsel %vm213_vm1, %v1663_v16, %v1678_v24 }
 0x409   :  { %v1633_v1 = vperm.slane %v1625_v35, %v5059_v34  ;;  %v1687_v2 = vperm.slane %v1679_v0, %v5059_v34  ;;  %v1694_v3 = vrot.slane %v5525_v19, 4  ;;  %v1665_v4 = vsel %vm213_vm1, %v1664_v20, %v1646_v29  ;;  %v4533_v29 = vpop.permute.xlu1 %4532 }
 0x40a   :  { %v1610_v5 = vrot.slane %v1605_v27, 4  ;;  %v1613_v47 = vsel %vm213_vm1, %v1605_v27, %v1612_v53  ;;  %v1623_v7 = vsel %vm213_vm1, %v1622_v28, %v1597_v43  ;;  %v1671_v23 = vperm.slane %v1665_v4, %v5059_v34 }
 0x40b   :  { %v1621_v41 = vperm.slane %v1613_v47, %v5059_v34  ;;  %v1629_v30 = vperm.slane %v1623_v7, %v5059_v34  ;;  %v1640_v36 = vrot.slane %v1633_v1, 4  ;;  %v1695_v61 = vsel %vm213_vm1, %v1687_v2, %v1694_v3 }
 0x40c   :  { %v1611_v39 = vsel %vm213_vm1, %v1610_v5, %v1593_v56  ;;  %1768 = vrot.lane.b32.xlu1 %v1695_v61, %s4916_s9  ;;  %v1677_v42 = vsel %vm213_vm1, %v1676_v22, %v1657_v26  ;;  %v1690_v44 = vrot.slane %v1671_v23, 4  ;;  %v4535_v63 = vunpack.i.h.bf16 %v4533_v29 }
 0x40d   :  { %v1617_v11 = vperm.slane %v1611_v39, %v5059_v34  ;;  %v1636_v10 = vrot.slane %v1621_v41, 4  ;;  %v1638_v48 = vrot.slane %v1629_v30, 4  ;;  %v1641_v49 = vsel %vm213_vm1, 0.0, %v1640_v36 }
 0x40e   :  { %v1707_v58 = vsel %vm213_vm1, %v1640_v36, %v1629_v30  ;;  %v1712_v50 = vrot.slane %v1641_v49, 4  ;;  %v1683_v51 = vperm.slane %v1677_v42, %v5059_v34  ;;  %v4534_v13 = vunpack.i.l.bf16 %v4533_v29  ;;  %v4714_v49 = vld [vmem:[#allocation2] sm:$0xff] }
 0x40f   :  { %v1637_v33 = vsel %vm213_vm1, 0.0, %v1636_v10  ;;  %v1639_v52 = vsel %vm213_vm1, 0.0, %v1638_v48  ;;  %v1711_v46 = vperm.slane %v1707_v58, %v5038_v21  ;;  %v1634_v54 = vrot.slane %v1617_v11, 4 }
 0x410   :  { %v1701_v55 = vrot.slane %v1637_v33, 4  ;;  %v1688_v9 = vrot.slane %v1683_v51, 4  ;;  %v1691_v37 = vsel %vm213_vm1, %v1683_v51, %v1690_v44  ;;  %v1696_v40 = vsel %vm213_vm1, %v1636_v10, %v1617_v11  ;;  %1817 = vmatpush.msra.mxu3 %v4534_v13  ;;  %v4612_v11 = vld [vmem:[#allocation11 + $0x1] ss:$0 sm:$0xff] }
 0x411   :  { %1752 = vrot.lane.b32.xlu0 %v1691_v37, %s4900_s30  ;;  %v1635_v56 = vsel %vm213_vm1, 0.0, %v1634_v54  ;;  %v1700_v57 = vperm.slane %v1696_v40, %v5038_v21  ;;  %v1713_v59 = vsel %vm213_vm1, %v1712_v50, %v1639_v52  ;;  %v1732_v62 = vrot.slane %v1711_v46, 4  ;;  %v4715_v52 = vld [vmem:[#allocation2 + $0x8] sm:$0xff] }
 0x412   :  { %v1702_v60 = vsel %vm213_vm1, %v1701_v55, %v1635_v56  ;;  %v1717_v43 = vperm.slane %v1713_v59, %v5038_v21  ;;  %v1689_v14 = vsel %vm213_vm1, %v1688_v9, %v1671_v23  ;;  %v1692_v6 = vrot.slane %v1687_v2, 4  ;;  %1818 = vmatpush.msra.mxu3 %v4535_v63  ;;  %v146_v59 = vld [vmem:[#allocation10 + $0x28] sm:$0xff] }
 0x413   :  { %v1706_v12 = vperm.slane %v1702_v60, %v5038_v21  ;;  %v1720_v45 = vrot.slane %v1700_v57, 4  ;;  %v4917_v55 = vmov 32.0  }
 0x414   :  { %v1733_v31 = vsel %vm213_vm1, %v1717_v43, %v1732_v62  ;;  %v1730_v8 = vrot.slane %v1717_v43, 4  ;;  %v1693_v20 = vsel %vm213_vm1, %v1692_v6, %v5525_v19  ;;  %v4538_v19 = vpop.permute.xlu2 %4537  ;;  %4656 = vrcp.f32 %v4917_v55  ;;  %v147_v62 = vld [vmem:[#allocation10 + $0x38] sm:$0xff] }
 0x415   :  { %v1721_v26 = vsel %vm213_vm1, %v1706_v12, %v1720_v45  ;;  %v1741_v32 = vperm.slane %v1733_v31, %v5059_v34  ;;  %v1718_v38 = vrot.slane %v1706_v12, 4  ;;  %v4540_v2 = vunpack.i.h.bf16 %v4538_v19 }
 0x416   :  { %v1729_v15 = vperm.slane %v1721_v26, %v5059_v34  ;;  %v1731_v16 = vsel %vm213_vm1, %v1730_v8, %v1711_v46  ;;  %v4539_v3 = vunpack.i.l.bf16 %v4538_v19  ;;  %v4541_v29 = vpack.i.bf16 %v146_v59, %v147_v62  ;;  %v144_v26 = vld [vmem:[#allocation10 + $0x8] sm:$0xff] }
 0x417   :  { %v1746_v17 = vrot.slane %v1741_v32, 4  ;;  %v1719_v18 = vsel %vm213_vm1, %v1718_v38, %v1700_v57  ;;  %v1737_v24 = vperm.slane %v1731_v16, %v5059_v34  ;;  %v132_v16 = vld [vmem:[#allocation10 + $0x40] sm:$0xff] }
 0x418   :  { %v1725_v53 = vperm.slane %v1719_v18, %v5059_v34  ;;  %v1748_v0 = vrot.slane %v1729_v15, 4  ;;  %1819 = vmatpush.msra.mxu3 %v4539_v3 }
 0x419   :  { %1760 = vrot.lane.b32.xlu0 %v1693_v20, %s4906_s24  ;;  %v1747_v25 = vsel %vm213_vm1, %v1746_v17, %v1729_v15  ;;  %v1742_v22 = vrot.slane %v1737_v24, 4  ;;  %v133_v17 = vld [vmem:[#allocation10 + $0x50] sm:$0xff] }
 0x41a   :  { %1762 = vrot.lane.b32.xlu1 %v1747_v25, %s4906_s24  ;;  %v1744_v27 = vrot.slane %v1725_v53, 4  ;;  %v1749_v1 = vsel %vm213_vm1, %v1741_v32, %v1748_v0  ;;  %1820 = vmatpush.msra.mxu3 %v4540_v2  ;;  %v4657_v9 = vpop.eup %4656  ;;  %v145_v32 = vld [vmem:[#allocation10 + $0x18] sm:$0xff]  ;;  %v4556_v18 = vpack.i.bf16 %v132_v16, %v133_v17  ;;  %v135_v20 = vld [vmem:[#allocation10 + $0x70] sm:$0xff] }
 0x41b   :  { %v1743_v28 = vsel %vm213_vm1, %v1742_v22, %v1725_v53  ;;  %v1837_v37 = vmul.f32 32.0, %v4657_v9  ;;  %vm1841_vm11 = vweird.f32 %v4657_v9  ;;  %v4546_v15 = vpack.i.bf16 %v144_v26, %v145_v32 }
 0x41c   :  { %v1745_v35 = vsel %vm213_vm1, %v1737_v24, %v1744_v27  ;;  %v134_v24 = vld [vmem:[#allocation10 + $0x60] sm:$0xff] }
 0x41d   :  { %v1838_v40 = vsub.f32 1.0, %v1837_v37  ;;  %v4551_v53 = vpack.i.bf16 %v134_v24, %v135_v20 }
 0x41f   :  { %v1839_v56 = vmul.f32 %v4657_v9, %v1838_v40 }
 0x421   :  { %1754 = vrot.lane.b32.xlu0 %v1745_v35, %s4900_s30  ;;  %v1840_v57 = vadd.f32 %v4657_v9, %v1839_v56  ;;  %v122_v56 = vld [vmem:[#allocation5 + $0x10] sm:$0xff] }
 0x423   :  { %v5589_v60 = vsel %vm1841_vm11, %v4657_v9, %v1840_v57 }
 0x429   :  { %1770 = vrot.lane.b32.xlu0 %v1749_v1, %s4916_s9 }
 0x47e   :  { %v1769_v7 = vpop.permute.xlu1 %1768 }
 0x483   :  { %v1753_v4 = vpop.permute.xlu0 %1752 }
 0x484   :  { %v1774_v5 = vsel %vm921_vm2, %v1689_v14, %v1753_v4 }
 0x48b   :  { %v1761_v47 = vpop.permute.xlu0 %1760 }
 0x48c   :  { %v1777_v23 = vsel %vm1776_vm9, %v1774_v5, %v1761_v47  ;;  %v1763_v61 = vpop.permute.xlu1 %1762 }
 0x48d   :  { %v1780_v41 = vsel %vm1779_vm10, %v1777_v23, %v1769_v7 }
 0x48e   :  { %4444 = vmatmul.msk.f32.vlgmr.msra.gmra.mxu3 %vm162_vm0, %v1780_v41 }
 0x493   :  { %v1755_v30 = vpop.permute.xlu0 %1754 }
 0x494   :  { %v1775_v36 = vsel %vm921_vm2, %v1743_v28, %v1755_v30 }
 0x495   :  { %v1778_v42 = vsel %vm1776_vm9, %v1775_v36, %v1763_v61 }
 0x49b   :  { %v1771_v39 = vpop.permute.xlu0 %1770 }
 0x49c   :  { %v1781_v44 = vsel %vm1779_vm10, %v1778_v42, %v1771_v39  ;;  %v120_v39 = vld [vmem:[#allocation5] sm:$0xff] }
 0x49d   :  { %4445 = vmatmul.msk.f32.gmra.mxu3 %vm162_vm0, %v1781_v44 }
 0x511   :  { %v1822_v10 = vpop.f32.mrf.mxu3 }
 0x512   :  { %v1823_v48 = vadd.f32 %v4612_v11, %v1822_v10 }
 0x514   :  { %v1828_v58 = vadd.f32 %v4714_v49, %v1823_v48 }
 0x516   :  { %v1830_v50 = vsel %vm162_vm0, %v1828_v58, 0.0 }
 0x517   :  { %1831 = vadd.xlane.f32.xlu1 %v1830_v50 }
 0x520   :  { %v1825_v51 = vpop.f32.mrf.mxu3 }
 0x521   :  { %v1826_v33 = vadd.f32 %v4612_v11, %v1825_v51 }
 0x523   :  { %v1829_v46 = vadd.f32 %v4715_v52, %v1826_v33 }
 0x525   :  { %v1833_v54 = vsel %vm162_vm0, %v1829_v46, 0.0 }
 0x526   :  { %1834 = vadd.xlane.f32.xlu2 %v1833_v54 }
 0x53e   :  { %4542 = vrot.lane.b32.xlu2 %v4541_v29, %s4911_s28 }
 0x58a   :  { %v1832_v43 = vpop.xlane.xlu1 %1831 }
 0x58b   :  { %v1843_v63 = vmul.f32 %v5589_v60, %v1832_v43 }
 0x58d   :  { %v5593_v13 = vsub.f32 %v1828_v58, %v1843_v63  ;;  %v121_v58 = vld [vmem:[#allocation5 + $0x8] sm:$0xff] }
 0x58f   :  { %v1847_v12 = vmul.f32 %v5593_v13, %v5593_v13 }
 0x591   :  { %v1849_v45 = vsel %vm162_vm0, %v1847_v12, 0.0 }
 0x592   :  { %1850 = vadd.xlane.f32.xlu0 %v1849_v45 }
 0x599   :  { %v1835_v14 = vpop.xlane.xlu2 %1834 }
 0x59a   :  { %v1844_v6 = vmul.f32 %v5589_v60, %v1835_v14 }
 0x59c   :  { %v5599_v31 = vsub.f32 %v1829_v46, %v1844_v6 }
 0x59e   :  { %v1848_v8 = vmul.f32 %v5599_v31, %v5599_v31 }
 0x5a0   :  { %v1852_v38 = vsel %vm162_vm0, %v1848_v8, 0.0  ;;  %v4613_v8 = vld [vmem:[#allocation11 + $0x7] ss:$0 sm:$0xff] }
 0x5a1   :  { %1853 = vadd.xlane.f32.xlu1 %v1852_v38  ;;  %v4543_v25 = vpop.permute.xlu2 %4542 }
 0x5a2   :  { %v4544_v22 = vunpack.i.l.bf16 %v4543_v25  ;;  %v4545_v27 = vunpack.i.h.bf16 %v4543_v25 }
 0x5a4   :  { %2008 = vmatpush.msra.mxu1 %v4544_v22 }
 0x5a6   :  { %4547 = vrot.lane.b32.xlu0 %v4546_v15, %s4911_s28  ;;  %2009 = vmatpush.msra.mxu1 %v4545_v27  ;;  %v4614_v15 = vld [vmem:[#allocation11 + $0x8] ss:$0 sm:$0xff] }
 0x5ae   :  { %4557 = vrot.lane.b32.xlu0 %v4556_v18, %s4914_s7  ;;  %v123_v18 = vld [vmem:[#allocation5 + $0x18] sm:$0xff] }
 0x5ba   :  { %4552 = vrot.lane.b32.xlu1 %v4551_v53, %s4914_s7 }
 0x605   :  { %v1851_v28 = vpop.xlane.xlu0 %1850 }
 0x606   :  { %v1855_v35 = vmul.f32 %v1851_v28, %v5589_v60 }
 0x608   :  { %v1857_v0 = vadd.f32 1e-05, %v1855_v35 }
 0x60a   :  { %4658 = vrsqrt.f32 %v1857_v0  ;;  %vm1866_vm12 = vcmp.eq.f32.partialorder %v1857_v0, inf  ;;  %v1869_v42 = vand.u32 2147483648, %v1857_v0  ;;  %vm1868_vm13 = vcmp.eq.f32.partialorder %v1857_v0, 0.0 }
 0x610   :  { %v4659_v1 = vpop.eup %4658 }
 0x611   :  { %v1860_v19 = vmul.f32 %v4659_v1, %v1857_v0 }
 0x613   :  { %v1861_v2 = vmul.f32 %v4659_v1, %v1860_v19 }
 0x614   :  { %v1854_v3 = vpop.xlane.xlu1 %1853 }
 0x615   :  { %v1862_v4 = vmul.f32 0.5, %v1861_v2  ;;  %v1856_v5 = vmul.f32 %v1854_v3, %v5589_v60 }
 0x617   :  { %v1863_v47 = vsub.f32 1.5, %v1862_v4  ;;  %v1858_v7 = vadd.f32 1e-05, %v1856_v5  ;;  %v4615_v5 = vld [vmem:[#allocation11 + $0x3] ss:$0 sm:$0xff] }
 0x618   :  { %v4548_v23 = vpop.permute.xlu0 %4547 }
 0x619   :  { %v1864_v41 = vmul.f32 %v4659_v1, %v1863_v47  ;;  %4660 = vrsqrt.f32 %v1858_v7  ;;  %v4549_v30 = vunpack.i.l.bf16 %v4548_v23  ;;  %v4550_v61 = vunpack.i.h.bf16 %v4548_v23 }
 0x61a   :  { %vm1878_vm15 = vcmp.eq.f32.partialorder %v1858_v7, inf  ;;  %v1881_v57 = vand.u32 2147483648, %v1858_v7  ;;  %vm1880_vm4 = vcmp.eq.f32.partialorder %v1858_v7, 0.0 }
 0x61b   :  { %v1865_v36 = vmul.f32 %v1864_v41, %v1857_v0  ;;  %2010 = vmatpush.msra.mxu1 %v4549_v30 }
 0x61d   :  { %v1867_v44 = vsel %vm1866_vm12, %v1857_v0, %v1865_v36  ;;  %2011 = vmatpush.msra.mxu1 %v4550_v61  ;;  %v4616_v36 = vld [vmem:[#allocation11 + $0x2] ss:$0 sm:$0xff] }
 0x61e   :  { %4448 = vmatmul.msk.f32.vlgmr.msra.gmra.mxu1 %vm162_vm0, %v120_v39  ;;  %v1870_v11 = vsel %vm1868_vm13, %v1869_v42, %v1867_v44 }
 0x61f   :  { %v4661_v10 = vpop.eup %4660  ;;  %4662 = vrcp.f32 %v1870_v11  ;;  %v1894_v55 = vand.u32 2147483648, %v1870_v11  ;;  %v1892_v37 = vand.u32 2147483647, %v1870_v11  ;;  %vm1888_vm3 = vweird.f32 %v1870_v11 }
 0x620   :  { %v1872_v48 = vmul.f32 %v4661_v10, %v1858_v7  ;;  %v4558_v62 = vpop.permute.xlu0 %4557 }
 0x621   :  { %v1895_v45 = vor.u32 1.1754944e-38, %v1894_v55  ;;  %vm1893_vm6 = vcmp.eq.f32.partialorder %v1892_v37, 8.507059e+37  ;;  %v4559_v26 = vunpack.i.l.bf16 %v4558_v62  ;;  %v4560_v16 = vunpack.i.h.bf16 %v4558_v62 }
 0x622   :  { %v1873_v49 = vmul.f32 %v4661_v10, %v1872_v48 }
 0x624   :  { %v1874_v50 = vmul.f32 0.5, %v1873_v49 }
 0x625   :  { %v4663_v51 = vpop.eup %4662 }
 0x626   :  { %v1875_v33 = vsub.f32 1.5, %v1874_v50  ;;  %4449 = vmatmul.msk.f32.gmra.mxu1 %vm162_vm0, %v121_v58  ;;  %v1884_v52 = vmul.f32 %v4663_v51, %v1870_v11  ;;  %vm1889_vm14 = vweird.f32 %v4663_v51 }
 0x627   :  { %vm1890_vm5 = vmor %vm1888_vm3, %vm1889_vm14 }
 0x628   :  { %v1885_v46 = vsub.f32 1.0, %v1884_v52  ;;  %v1876_v54 = vmul.f32 %v4661_v10, %v1875_v33 }
 0x62a   :  { %v1886_v9 = vmul.f32 %v4663_v51, %v1885_v46  ;;  %v1877_v40 = vmul.f32 %v1876_v54, %v1858_v7 }
 0x62c   :  { %v4553_v59 = vpop.permute.xlu1 %4552  ;;  %v1887_v29 = vadd.f32 %v4663_v51, %v1886_v9  ;;  %v1879_v43 = vsel %vm1878_vm15, %v1858_v7, %v1877_v40 }
 0x62d   :  { %v4555_v63 = vunpack.i.h.bf16 %v4553_v59  ;;  %v4554_v12 = vunpack.i.l.bf16 %v4553_v59  ;;  %v1882_v14 = vsel %vm1880_vm4, %v1881_v57, %v1879_v43 }
 0x62e   :  { %4450 = vmatmul.msk.f32.gmra.mxu1 %vm162_vm0, %v122_v56  ;;  %v1891_v6 = vsel %vm1890_vm5, %v4663_v51, %v1887_v29  ;;  %4664 = vrcp.f32 %v1882_v14  ;;  %v1909_v22 = vand.u32 2147483648, %v1882_v14  ;;  %vm1903_vm8 = vweird.f32 %v1882_v14 }
 0x62f   :  { %1956 = vmatpush.msrb.mxu0 %v4554_v12  ;;  %v1896_v32 = vsel %vm1893_vm6, %v1895_v45, %v1891_v6 }
 0x630   :  { %v1913_v38 = vmul.f32 %v1896_v32, %v5593_v13  ;;  %v1907_v13 = vand.u32 2147483647, %v1882_v14  ;;  %v1910_v35 = vor.u32 1.1754944e-38, %v1909_v22 }
 0x631   :  { %1957 = vmatpush.msrb.mxu0 %v4555_v63 }
 0x632   :  { %v1916_v17 = vmul.f32 %v4613_v8, %v1913_v38  ;;  %vm1908_vm12 = vcmp.eq.f32.partialorder %v1907_v13, 8.507059e+37 }
 0x633   :  { %1958 = vmatpush.msrb.mxu0 %v4559_v26 }
 0x634   :  { %v4665_v24 = vpop.eup %4664  ;;  %v5613_v20 = vadd.f32 %v4614_v15, %v1916_v17 }
 0x635   :  { %1959 = vmatpush.msrb.mxu0 %v4560_v16  ;;  %v1899_v53 = vmul.f32 %v4665_v24, %v1882_v14  ;;  %vm1904_vm7 = vweird.f32 %v4665_v24 }
 0x636   :  { %4446 = vmatmul.msk.f32.vlgmr.msrb.gmra.mxu0 %vm162_vm0, %v5613_v20  ;;  %4451 = vmatmul.msk.f32.gmra.mxu1 %vm162_vm0, %v123_v18  ;;  %vm1905_vm11 = vmor %vm1903_vm8, %vm1904_vm7 }
 0x637   :  { %v1900_v25 = vsub.f32 1.0, %v1899_v53 }
 0x639   :  { %v1901_v27 = vmul.f32 %v4665_v24, %v1900_v25 }
 0x63b   :  { %v1902_v28 = vadd.f32 %v4665_v24, %v1901_v27 }
 0x63d   :  { %v1906_v0 = vsel %vm1905_vm11, %v4665_v24, %v1902_v28 }
 0x63e   :  { %v1911_v1 = vsel %vm1908_vm12, %v1910_v35, %v1906_v0 }
 0x63f   :  { %v1914_v19 = vmul.f32 %v1911_v1, %v5599_v31 }
 0x641   :  { %v1917_v2 = vmul.f32 %v4613_v8, %v1914_v19 }
 0x643   :  { %v5619_v3 = vadd.f32 %v4614_v15, %v1917_v2 }
 0x645   :  { %4447 = vmatmul.msk.f32.gmra.mxu0 %vm162_vm0, %v5619_v3 }
 0x69b   :  { %v2013_v4 = vpop.f32.mrf.mxu1 }
 0x69c   :  { %v5626_v41 = vadd.f32 %v4615_v5, %v2013_v4 }
 0x69e   :  { %v2307_v1 = vrot.slane %v5626_v41, 4 }
 0x6a3   :  { %v2016_v47 = vpop.f32.mrf.mxu1 }
 0x6a4   :  { %v2017_v7 = vadd.f32 %v4615_v5, %v2016_v47 }
 0x6a6   :  { %2295 = vrot.lane.b32.xlu0 %v2017_v7, %s4908_s5  ;;  %2283 = vrot.lane.b32.xlu1 %v2017_v7, %s4910_s27  ;;  %v4561_v10 = vpack.i.bf16 %v5626_v41, %v2017_v7  ;;  %v2363_v52 = vrot.slane %v2017_v7, 4 }
 0x6a7   :  { %2271 = vrot.lane.b32.xlu2 %v2017_v7, %s4909_s26 }
 0x6ab   :  { %v2019_v23 = vpop.f32.mrf.mxu1 }
 0x6ac   :  { %v5650_v42 = vadd.f32 %v4615_v5, %v2019_v23 }
 0x6ae   :  { %2293 = vrot.lane.b32.xlu0 %v5626_v41, %s4908_s5  ;;  %2281 = vrot.lane.b32.xlu1 %v5626_v41, %s4910_s27  ;;  %v2419_v2 = vrot.slane %v5650_v42, 4 }
 0x6af   :  { %2269 = vrot.lane.b32.xlu2 %v5626_v41, %s4909_s26 }
 0x6b3   :  { %v2022_v31 = vpop.f32.mrf.mxu1  ;;  %v1961_v61 = vpop.f32.mrf.mxu0 }
 0x6b4   :  { %v5634_v30 = vadd.f32 %v4615_v5, %v2022_v31  ;;  %v5642_v39 = vadd.f32 %v4616_v36, %v1961_v61 }
 0x6b6   :  { %2299 = vrot.lane.b32.xlu0 %v5634_v30, %s4908_s5  ;;  %2287 = vrot.lane.b32.xlu1 %v5634_v30, %s4910_s27  ;;  %v2475_v19 = vrot.slane %v5634_v30, 4 }
 0x6b7   :  { %2275 = vrot.lane.b32.xlu2 %v5634_v30, %s4909_s26 }
 0x6be   :  { %2039 = vrot.lane.b32.xlu0 %v5642_v39, %s4908_s5  ;;  %2033 = vrot.lane.b32.xlu1 %v5642_v39, %s4910_s27 }
 0x6bf   :  { %2027 = vrot.lane.b32.xlu2 %v5642_v39, %s4909_s26 }
 0x6c2   :  { %v1964_v44 = vpop.f32.mrf.mxu0 }
 0x6c3   :  { %v5658_v11 = vadd.f32 %v4616_v36, %v1964_v44  ;;  %v2047_v36 = vrot.slane %v5642_v39, 4 }
 0x6c5   :  { %v2103_v61 = vrot.slane %v5658_v11, 4 }
 0x6c6   :  { %2297 = vrot.lane.b32.xlu0 %v5650_v42, %s4908_s5  ;;  %2285 = vrot.lane.b32.xlu1 %v5650_v42, %s4910_s27 }
 0x6c7   :  { %2273 = vrot.lane.b32.xlu2 %v5650_v42, %s4909_s26 }
 0x6ce   :  { %2041 = vrot.lane.b32.xlu0 %v5658_v11, %s4908_s5  ;;  %2035 = vrot.lane.b32.xlu1 %v5658_v11, %s4910_s27 }
 0x6cf   :  { %2029 = vrot.lane.b32.xlu2 %v5658_v11, %s4909_s26 }
 0x6d6   :  { %4562 = vrot.lane.b32.xlu0 %v4561_v10, %s4911_s28 }
 0x701   :  { %v2272_v48 = vpop.permute.xlu2 %2271 }
 0x702   :  { %v2375_v50 = vrot.slane %v2272_v48, 4 }
 0x709   :  { %v5668_v49 = vpop.permute.xlu2 %2269 }
 0x70a   :  { %v2319_v32 = vrot.slane %v5668_v49, 4 }
 0x711   :  { %v5670_v58 = vpop.permute.xlu2 %2275 }
 0x712   :  { %v2487_v23 = vrot.slane %v5670_v58, 4 }
 0x718   :  { %v5672_v51 = vpop.permute.xlu0 %2295  ;;  %v2284_v33 = vpop.permute.xlu1 %2283 }
 0x719   :  { %v2373_v46 = vrot.slane %v5672_v51, 4  ;;  %v2376_v54 = vsel %vm213_vm1, %v5672_v51, %v2375_v50  ;;  %v2361_v55 = vrot.slane %v2284_v33, 4  ;;  %v4566_v9 = vpack.i.bf16 %v2284_v33, %v2272_v48  ;;  %v5688_v26 = vpop.permute.xlu2 %2027 }
 0x71a   :  { %v2384_v37 = vperm.slane %v2376_v54, %v5038_v21  ;;  %v2364_v40 = vsel %vm213_vm1, %v2284_v33, %v2363_v52  ;;  %v2059_v10 = vrot.slane %v5688_v26, 4 }
 0x71b   :  { %v2374_v56 = vsel %vm213_vm1, %v2373_v46, %v2272_v48  ;;  %v2362_v57 = vsel %vm213_vm1, %v2361_v55, %v2017_v7  ;;  %v2372_v59 = vperm.slane %v2364_v40, %v5038_v21  ;;  %4567 = vrot.lane.b32.xlu2 %v4566_v9, %s4911_s28 }
 0x71c   :  { %v2380_v62 = vperm.slane %v2374_v56, %v5038_v21  ;;  %v2397_v29 = vrot.slane %v2384_v37, 4  ;;  %v2368_v43 = vperm.slane %v2362_v57, %v5038_v21 }
 0x71d   :  { %v2399_v63 = vrot.slane %v2372_v59, 4 }
 0x71e   :  { %v2385_v12 = vrot.slane %v2380_v62, 4  ;;  %v2387_v45 = vrot.slane %v2368_v43, 4  ;;  %v2398_v14 = vsel %vm213_vm1, %v2397_v29, %v2372_v59 }
 0x71f   :  { %v2400_v6 = vsel %vm213_vm1, %v2384_v37, %v2399_v63  ;;  %v2404_v8 = vperm.slane %v2398_v14, %v5059_v34 }
 0x720   :  { %v2386_v38 = vsel %vm213_vm1, %v2385_v12, %v2368_v43  ;;  %v2388_v15 = vsel %vm213_vm1, %v2380_v62, %v2387_v45  ;;  %v2408_v16 = vperm.slane %v2400_v6, %v5059_v34  ;;  %v5694_v17 = vpop.permute.xlu0 %2293  ;;  %v5696_v18 = vpop.permute.xlu1 %2281 }
 0x721   :  { %v5699_v24 = vperm.slane %v2386_v38, %v5059_v34  ;;  %v2396_v53 = vperm.slane %v2388_v15, %v5059_v34  ;;  %v2413_v25 = vrot.slane %v2404_v8, 4  ;;  %v2317_v22 = vrot.slane %v5694_v17, 4  ;;  %v5742_v63 = vpop.permute.xlu2 %2273 }
 0x722   :  { %v2415_v27 = vrot.slane %v2408_v16, 4  ;;  %v4576_v13 = vpack.i.bf16 %v5694_v17, %v5672_v51  ;;  %v2320_v28 = vsel %vm213_vm1, %v5694_v17, %v2319_v32  ;;  %v2305_v35 = vrot.slane %v5696_v18, 4 }
 0x723   :  { %v2318_v0 = vsel %vm213_vm1, %v2317_v22, %v5668_v49  ;;  %v2409_v4 = vrot.slane %v5699_v24, 4  ;;  %v2411_v5 = vrot.slane %v2396_v53, 4  ;;  %v2328_v7 = vperm.slane %v2320_v28, %v5038_v21 }
 0x724   :  { %v2324_v47 = vperm.slane %v2318_v0, %v5038_v21  ;;  %v2416_v31 = vsel %vm213_vm1, 0.0, %v2415_v27  ;;  %v2414_v44 = vsel %vm213_vm1, 0.0, %v2413_v25  ;;  %v2306_v50 = vsel %vm213_vm1, %v2305_v35, %v5626_v41 }
 0x725   :  { %v2594_v33 = vsel %vm213_vm1, %v2415_v27, %v2404_v8  ;;  %v2341_v52 = vrot.slane %v2328_v7, 4  ;;  %v2312_v46 = vperm.slane %v2306_v50, %v5038_v21  ;;  %v2410_v55 = vsel %vm213_vm1, 0.0, %v2409_v4 }
 0x726   :  { %v2329_v48 = vrot.slane %v2324_v47, 4  ;;  %v2412_v9 = vsel %vm213_vm1, 0.0, %v2411_v5  ;;  %v2599_v37 = vrot.slane %v2416_v31, 4  ;;  %v2308_v40 = vsel %vm213_vm1, %v5696_v18, %v2307_v1 }
 0x727   :  { %v2331_v59 = vrot.slane %v2312_v46, 4  ;;  %v2316_v62 = vperm.slane %v2308_v40, %v5038_v21  ;;  %v5740_v43 = vperm.slane %v2594_v33, %v5038_v21  ;;  %v2588_v15 = vrot.slane %v2412_v9, 4 }
 0x728   :  { %v5732_v56 = vpop.permute.xlu0 %2299  ;;  %v5734_v57 = vpop.permute.xlu1 %2287  ;;  %v2330_v41 = vsel %vm213_vm1, %v2329_v48, %v2312_v46  ;;  %v2600_v16 = vsel %vm213_vm1, %v2599_v37, %v2414_v44  ;;  %v2583_v33 = vsel %vm213_vm1, %v2411_v5, %v5699_v24 }
 0x729   :  { %v2485_v29 = vrot.slane %v5732_v56, 4  ;;  %v2488_v12 = vsel %vm213_vm1, %v5732_v56, %v2487_v23  ;;  %v2473_v45 = vrot.slane %v5734_v57, 4  ;;  %v2476_v14 = vsel %vm213_vm1, %v5734_v57, %v2475_v19 }
 0x72a   :  { %v2332_v6 = vsel %vm213_vm1, %v2324_v47, %v2331_v59  ;;  %v2342_v8 = vsel %vm213_vm1, %v2341_v52, %v2316_v62  ;;  %v2343_v32 = vrot.slane %v2316_v62, 4  ;;  %v5755_v53 = vperm.slane %v2330_v41, %v5059_v34 }
 0x72b   :  { %v2486_v38 = vsel %vm213_vm1, %v2485_v29, %v5670_v58  ;;  %v2496_v27 = vperm.slane %v2488_v12, %v5038_v21  ;;  %v2474_v28 = vsel %vm213_vm1, %v2473_v45, %v5634_v30  ;;  %v2484_v35 = vperm.slane %v2476_v14, %v5038_v21 }
 0x72c   :  { %v2492_v25 = vperm.slane %v2486_v38, %v5038_v21  ;;  %v2344_v22 = vsel %vm213_vm1, %v2328_v7, %v2343_v32  ;;  %v2340_v0 = vperm.slane %v2332_v6, %v5059_v34  ;;  %v2348_v1 = vperm.slane %v2342_v8, %v5059_v34  ;;  %v5790_v8 = vpop.permute.xlu2 %2029 }
 0x72d   :  { %v2352_v19 = vperm.slane %v2344_v22, %v5059_v34  ;;  %v2509_v47 = vrot.slane %v2496_v27, 4  ;;  %v2480_v23 = vperm.slane %v2474_v28, %v5038_v21  ;;  %v2511_v31 = vrot.slane %v2484_v35, 4 }
 0x72e   :  { %v2497_v4 = vrot.slane %v2492_v25, 4  ;;  %v4586_v7 = vpack.i.bf16 %v5734_v57, %v5670_v58  ;;  %v5770_v44 = vperm.slane %v2600_v16, %v5038_v21  ;;  %v2619_v48 = vrot.slane %v5740_v43, 4 }
 0x72f   :  { %v2359_v50 = vrot.slane %v2352_v19, 4  ;;  %v2499_v46 = vrot.slane %v2480_v23, 4  ;;  %v2510_v9 = vsel %vm213_vm1, %v2509_v47, %v2484_v35  ;;  %v2512_v37 = vsel %vm213_vm1, %v2496_v27, %v2511_v31 }
 0x730   :  { %v2498_v52 = vsel %vm213_vm1, %v2497_v4, %v2480_v23  ;;  %v5778_v40 = vrot.slane %v2340_v0, 4  ;;  %v2357_v41 = vrot.slane %v2348_v1, 4  ;;  %v2516_v62 = vperm.slane %v2510_v9, %v5059_v34  ;;  %v2040_v27 = vpop.permute.xlu0 %2039 }
 0x731   :  { %v2360_v59 = vsel %vm213_vm1, 0.0, %v2359_v50  ;;  %v2353_v29 = vrot.slane %v5755_v53, 4  ;;  %v2431_v12 = vrot.slane %v5742_v63, 4  ;;  %v2500_v24 = vsel %vm213_vm1, %v2492_v25, %v2499_v46 }
 0x732   :  { %v2520_v5 = vperm.slane %v2512_v37, %v5059_v34  ;;  %v2540_v45 = vsel %vm213_vm1, %v2359_v50, %v2348_v1  ;;  %v2545_v14 = vrot.slane %v2360_v59, 4  ;;  %v5788_v6 = vperm.slane %v2498_v52, %v5059_v34  ;;  %v2034_v50 = vpop.permute.xlu1 %2033 }
 0x733   :  { %v2587_v32 = vperm.slane %v2583_v33, %v5038_v21  ;;  %v2508_v38 = vperm.slane %v2500_v24, %v5059_v34  ;;  %v2589_v22 = vsel %vm213_vm1, %v2588_v15, %v2410_v55  ;;  %v2620_v25 = vsel %vm213_vm1, %v5770_v44, %v2619_v48 }
 0x734   :  { %v2527_v16 = vrot.slane %v2520_v5, 4  ;;  %v5799_v28 = vsel %vm213_vm1, 0.0, %v5778_v40  ;;  %v2358_v35 = vsel %vm213_vm1, 0.0, %v2357_v41  ;;  %v2525_v0 = vrot.slane %v2516_v62, 4 }
 0x735   :  { %v2593_v1 = vperm.slane %v2589_v22, %v5038_v21  ;;  %v5804_v19 = vperm.slane %v2540_v45, %v5038_v21  ;;  %v2115_v4 = vrot.slane %v5790_v8, 4  ;;  %v2607_v47 = vrot.slane %v2587_v32, 4 }
 0x736   :  { %v2628_v55 = vperm.slane %v2620_v25, %v5059_v34  ;;  %v2546_v15 = vsel %vm213_vm1, %v2545_v14, %v2358_v35  ;;  %v2521_v23 = vrot.slane %v5788_v6, 4  ;;  %v2528_v31 = vsel %vm213_vm1, 0.0, %v2527_v16 }
 0x737   :  { %v2057_v48 = vrot.slane %v2040_v27, 4  ;;  %v5811_v33 = vrot.slane %v2508_v38, 4  ;;  %v2608_v52 = vsel %vm213_vm1, %v2593_v1, %v2607_v47  ;;  %v2060_v9 = vsel %vm213_vm1, %v2040_v27, %v2059_v10 }
 0x738   :  { %v2633_v46 = vrot.slane %v2628_v55, 4  ;;  %v2526_v37 = vsel %vm213_vm1, 0.0, %v2525_v0  ;;  %v2702_v41 = vsel %vm213_vm1, %v2527_v16, %v2516_v62  ;;  %v2616_v59 = vperm.slane %v2608_v52, %v5059_v34 }
 0x739   :  { %v2058_v24 = vsel %vm213_vm1, %v2057_v48, %v5688_v26  ;;  %v2707_v5 = vrot.slane %v2528_v31, 4  ;;  %v2068_v14 = vperm.slane %v2060_v9, %v5038_v21  ;;  %v2045_v38 = vrot.slane %v2034_v50, 4 }
 0x73a   :  { %v2064_v45 = vperm.slane %v2058_v24, %v5038_v21  ;;  %v2634_v22 = vsel %vm213_vm1, %v2633_v46, %v2616_v59  ;;  %v2048_v10 = vsel %vm213_vm1, %v2034_v50, %v2047_v36  ;;  %v2605_v25 = vrot.slane %v2593_v1, 4 }
 0x73b   :  { %v2617_v62 = vrot.slane %v5770_v44, 4  ;;  %4458 = vmatpush.xpose.msk.msrb.mxu3 %vm921_vm2, %v2634_v22  ;;  %v2081_v27 = vrot.slane %v2068_v14, 4  ;;  %v2046_v26 = vsel %vm213_vm1, %v2045_v38, %v5642_v39  ;;  %v2056_v35 = vperm.slane %v2048_v10, %v5038_v21 }
 0x73c   :  { %v2069_v16 = vrot.slane %v2064_v45, 4  ;;  %v2052_v0 = vperm.slane %v2046_v26, %v5038_v21  ;;  %v2606_v47 = vsel %vm213_vm1, %v2605_v25, %v2587_v32  ;;  %v2635_v36 = vrot.slane %v2616_v59, 4 }
 0x73d   :  { %v2618_v31 = vsel %vm213_vm1, %v2617_v62, %v5740_v43  ;;  %v2082_v1 = vsel %vm213_vm1, %v2081_v27, %v2056_v35  ;;  %v2083_v44 = vrot.slane %v2056_v35, 4  ;;  %v5839_v48 = vperm.slane %v2606_v47, %v5059_v34  ;;  %v5867_v27 = vpop.permute.xlu0 %2297 }
 0x73e   :  { %v5842_v50 = vperm.slane %v2618_v31, %v5059_v34  ;;  %v2070_v39 = vsel %vm213_vm1, %v2069_v16, %v2052_v0  ;;  %v2071_v52 = vrot.slane %v2052_v0, 4  ;;  %v2088_v46 = vperm.slane %v2082_v1, %v5059_v34 }
 0x73f   :  { %v2636_v32 = vsel %vm213_vm1, %v2628_v55, %v2635_v36  ;;  %v5849_v43 = vsel %vm213_vm1, 0.0, %v5811_v33  ;;  %v2076_v9 = vperm.slane %v2070_v39, %v5059_v34  ;;  %v2084_v59 = vsel %vm213_vm1, %v2068_v14, %v2083_v44 }
 0x740   :  { %v2629_v24 = vrot.slane %v5842_v50, 4  ;;  %4461 = vmatpush.xpose.msk.msra.mxu0 %vm921_vm2, %v2636_v32  ;;  %v5856_v38 = vperm.slane %v2702_v41, %v5038_v21  ;;  %v2072_v22 = vsel %vm213_vm1, %v2064_v45, %v2071_v52  ;;  %v2092_v10 = vperm.slane %v2084_v59, %v5059_v34  ;;  %v5893_v32 = vpop.permute.xlu1 %2285 }
 0x741   :  { %v2529_v55 = vsel %vm213_vm1, %v5778_v40, %v5755_v53  ;;  %v2708_v25 = vsel %vm213_vm1, %v2707_v5, %v2526_v37  ;;  %v2097_v62 = vrot.slane %v2088_v46, 4  ;;  %v2080_v41 = vperm.slane %v2072_v22, %v5059_v34 }
 0x742   :  { %v2630_v14 = vsel %vm213_vm1, %v2629_v24, %v5839_v48  ;;  %v2533_v16 = vperm.slane %v2529_v55, %v5038_v21  ;;  %v2099_v26 = vrot.slane %v2092_v10, 4  ;;  %v2534_v45 = vrot.slane %v5799_v28, 4 }
 0x743   :  { %4452 = vmatpush.xpose.msk.msra.mxu2 %vm921_vm2, %v2630_v14  ;;  %v2550_v35 = vperm.slane %v2546_v15, %v5038_v21  ;;  %v5874_v40 = vsel %vm213_vm1, 0.0, %v2521_v23  ;;  %v2093_v37 = vrot.slane %v2076_v9, 4  ;;  %v2354_v5 = vsel %vm213_vm1, 0.0, %v2353_v29 }
 0x744   :  { %v2565_v0 = vrot.slane %v5804_v19, 4  ;;  %v2696_v47 = vrot.slane %v5849_v43, 4  ;;  %v2535_v31 = vsel %vm213_vm1, %v2534_v45, %v2354_v5  ;;  %v2553_v36 = vrot.slane %v2533_v16, 4 }
 0x745   :  { %v2429_v1 = vrot.slane %v5867_v27, 4  ;;  %v5884_v28 = vperm.slane %v2708_v25, %v5038_v21  ;;  %v2727_v15 = vrot.slane %v5856_v38, 4  ;;  %v2098_v23 = vsel %vm213_vm1, 0.0, %v2097_v62 }
 0x746   :  { %v2100_v53 = vsel %vm213_vm1, 0.0, %v2099_v26  ;;  %v2095_v44 = vrot.slane %v2080_v41, 4  ;;  %v2539_v29 = vperm.slane %v2535_v31, %v5038_v21  ;;  %v2566_v39 = vsel %vm213_vm1, %v2550_v35, %v2565_v0 }
 0x747   :  { %v5896_v59 = vsel %vm213_vm1, 0.0, %v2093_v37  ;;  %v2168_v24 = vsel %vm213_vm1, %v2099_v26, %v2088_v46  ;;  %v2574_v22 = vperm.slane %v2566_v39, %v5059_v34  ;;  %v2430_v10 = vsel %vm213_vm1, %v2429_v1, %v5742_v63 }
 0x748   :  { %v2173_v55 = vrot.slane %v2100_v53, 4  ;;  %v2554_v25 = vsel %vm213_vm1, %v2539_v29, %v2553_v36  ;;  %v2432_v62 = vsel %vm213_vm1, %v5867_v27, %v2431_v12  ;;  %v2436_v14 = vperm.slane %v2430_v10, %v5038_v21 }
 0x749   :  { %v2562_v41 = vperm.slane %v2554_v25, %v5059_v34  ;;  %v2579_v45 = vrot.slane %v2574_v22, 4  ;;  %v2440_v46 = vperm.slane %v2432_v62, %v5038_v21  ;;  %v2417_v26 = vrot.slane %v5893_v32, 4 }
 0x74a   :  { %v5912_v37 = vsel %vm213_vm1, 0.0, %v2095_v44  ;;  %v2441_v5 = vrot.slane %v2436_v14, 4  ;;  %v2420_v0 = vsel %vm213_vm1, %v5893_v32, %v2419_v2  ;;  %v2174_v39 = vsel %vm213_vm1, %v2173_v55, %v2098_v23 }
 0x74b   :  { %v2580_v31 = vsel %vm213_vm1, %v2579_v45, %v2562_v41  ;;  %v2453_v36 = vrot.slane %v2440_v46, 4  ;;  %v2418_v1 = vsel %vm213_vm1, %v2417_v26, %v5650_v42  ;;  %v2428_v53 = vperm.slane %v2420_v0, %v5038_v21 }
 0x74c   :  { %4459 = vmatpush.xpose.msk.msrb.mxu3 %vm921_vm2, %v2580_v31  ;;  %v2424_v10 = vperm.slane %v2418_v1, %v5038_v21  ;;  %v2551_v25 = vrot.slane %v2539_v29, 4  ;;  %v2563_v62 = vrot.slane %v2550_v35, 4  ;;  %v5928_v2 = vsel %vm213_vm1, %v2095_v44, %v2076_v9 }
 0x74d   :  { %v2454_v52 = vsel %vm213_vm1, %v2453_v36, %v2428_v53  ;;  %v2455_v45 = vrot.slane %v2428_v53, 4  ;;  %v2581_v12 = vrot.slane %v2562_v41, 4  ;;  %v5932_v54 = vperm.slane %v2168_v24, %v5038_v21 }
 0x74e   :  { %v2442_v26 = vsel %vm213_vm1, %v2441_v5, %v2424_v10  ;;  %v2443_v0 = vrot.slane %v2424_v10, 4  ;;  %v2552_v23 = vsel %vm213_vm1, %v2551_v25, %v2533_v16  ;;  %v5937_v55 = vperm.slane %v2174_v39, %v5038_v21 }
 0x74f   :  { %v2456_v35 = vsel %vm213_vm1, %v2440_v46, %v2455_v45  ;;  %v2558_v9 = vperm.slane %v2552_v23, %v5059_v34  ;;  %v2564_v44 = vsel %vm213_vm1, %v2563_v62, %v5804_v19  ;;  %v5944_v29 = vperm.slane %v2454_v52, %v5059_v34  ;;  %v2036_v62 = vpop.permute.xlu1 %2035 }
 0x750   :  { %v2464_v24 = vperm.slane %v2456_v35, %v5059_v34  ;;  %v2570_v41 = vperm.slane %v2564_v44, %v5059_v34  ;;  %v2691_v16 = vsel %vm213_vm1, %v5811_v33, %v5788_v6  ;;  %v5952_v5 = vsel %vm213_vm1, %v2436_v14, %v2443_v0 }
 0x751   :  { %v5955_v46 = vperm.slane %v2442_v26, %v5059_v34  ;;  %v2582_v31 = vsel %vm213_vm1, %v2574_v22, %v2581_v12  ;;  %v2631_v19 = vrot.slane %v5839_v48, 4  ;;  %v2162_v52 = vrot.slane %v5912_v37, 4  ;;  %v2042_v22 = vpop.permute.xlu0 %2041 }
 0x752   :  { %v2193_v36 = vrot.slane %v5932_v54, 4  ;;  %v5961_v1 = vrot.slane %v2464_v24, 4  ;;  %v2575_v53 = vrot.slane %v2570_v41, 4  ;;  %4462 = vmatpush.xpose.msk.msra.mxu0 %vm921_vm2, %v2582_v31  ;;  %v2577_v6 = vrot.slane %v2558_v9, 4 }
 0x753   :  { %v2695_v33 = vperm.slane %v2691_v16, %v5038_v21  ;;  %v2697_v14 = vsel %vm213_vm1, %v2696_v47, %v5874_v40  ;;  %v2728_v48 = vsel %vm213_vm1, %v5884_v28, %v2727_v15  ;;  %v2191_v12 = vrot.slane %v5937_v55, 4 }
 0x754   :  { %v2452_v39 = vperm.slane %v5952_v5, %v5059_v34  ;;  %v2469_v10 = vrot.slane %v5944_v29, 4  ;;  %v2576_v25 = vsel %vm213_vm1, %v2575_v53, %v2558_v9  ;;  %v2465_v45 = vrot.slane %v5955_v46, 4 }
 0x755   :  { %v5979_v43 = vsel %vm213_vm1, 0.0, %v5961_v1  ;;  %4453 = vmatpush.xpose.msk.msra.mxu2 %vm921_vm2, %v2576_v25  ;;  %v2632_v40 = vsel %vm213_vm1, %v5842_v50, %v2631_v19  ;;  %v2701_v47 = vperm.slane %v2697_v14, %v5038_v21  ;;  %v2715_v15 = vrot.slane %v2695_v33, 4 }
 0x756   :  { %v5987_v26 = vperm.slane %v2728_v48, %v5059_v34  ;;  %v2113_v0 = vrot.slane %v2042_v22, 4  ;;  %v2116_v23 = vsel %vm213_vm1, %v2042_v22, %v2115_v4  ;;  %v2578_v35 = vsel %vm213_vm1, %v2570_v41, %v2577_v6 }
 0x757   :  { %v2124_v9 = vperm.slane %v2116_v23, %v5038_v21  ;;  %v2101_v44 = vrot.slane %v2036_v62, 4  ;;  %v2104_v50 = vsel %vm213_vm1, %v2036_v62, %v2103_v61  ;;  %v2716_v24 = vsel %vm213_vm1, %v2701_v47, %v2715_v15 }
 0x758   :  { %v2741_v16 = vrot.slane %v5987_v26, 4  ;;  %v2114_v5 = vsel %vm213_vm1, %v2113_v0, %v5790_v8  ;;  %v2112_v31 = vperm.slane %v2104_v50, %v5038_v21  ;;  %v6003_v4 = vperm.slane %v2716_v24, %v5059_v34 }
 0x759   :  { %4455 = vmatpush.xpose.msk.msrb.mxu2 %vm921_vm2, %v2632_v40  ;;  %v2120_v41 = vperm.slane %v2114_v5, %v5038_v21  ;;  %v2137_v19 = vrot.slane %v2124_v9, 4  ;;  %v2102_v53 = vsel %vm213_vm1, %v2101_v44, %v5658_v11  ;;  %v2713_v14 = vrot.slane %v2701_v47, 4  ;;  %v6167_v51 = vpop.permute.xlu0 %4562 }
 0x75a   :  { %v2108_v61 = vperm.slane %v2102_v53, %v5038_v21  ;;  %v2139_v6 = vrot.slane %v2112_v31, 4  ;;  %v2725_v48 = vrot.slane %v5884_v28, 4  ;;  %v2742_v8 = vsel %vm213_vm1, %v2741_v16, %v6003_v4 }
 0x75b   :  { %v2125_v22 = vrot.slane %v2120_v41, 4  ;;  %v2138_v25 = vsel %vm213_vm1, %v2137_v19, %v2112_v31  ;;  %v2161_v62 = vperm.slane %v5928_v2, %v5038_v21  ;;  %4470 = vmatpush.xpose.msk.msrb.mxu0 %vm921_vm2, %v2742_v8  ;;  %v2714_v47 = vsel %vm213_vm1, %v2713_v14, %v2695_v33 }
 0x75c   :  { %v2127_v11 = vrot.slane %v2108_v61, 4  ;;  %v2140_v40 = vsel %vm213_vm1, %v2124_v9, %v2139_v6  ;;  %v2144_v15 = vperm.slane %v2138_v25, %v5059_v34  ;;  %v6023_v23 = vperm.slane %v2714_v47, %v5059_v34 }
 0x75d   :  { %4456 = vmatpush.xpose.msk.msrb.mxu2 %vm921_vm2, %v2578_v35  ;;  %v2126_v28 = vsel %vm213_vm1, %v2125_v22, %v2108_v61  ;;  %v2148_v0 = vperm.slane %v2140_v40, %v5059_v34  ;;  %v2726_v35 = vsel %vm213_vm1, %v2725_v48, %v5856_v38  ;;  %v2163_v5 = vsel %vm213_vm1, %v2162_v52, %v5896_v59 }
 0x75e   :  { %v2128_v2 = vsel %vm213_vm1, %v2120_v41, %v2127_v11  ;;  %v2132_v44 = vperm.slane %v2126_v28, %v5059_v34  ;;  %v2153_v50 = vrot.slane %v2144_v15, 4  ;;  %v6030_v9 = vperm.slane %v2726_v35, %v5059_v34 }
 0x75f   :  { %v2136_v33 = vperm.slane %v2128_v2, %v5059_v34  ;;  %v2155_v24 = vrot.slane %v2148_v0, 4  ;;  %v2739_v16 = vrot.slane %v6023_v23, 4  ;;  %v2467_v31 = vrot.slane %v2452_v39, 4 }
 0x760   :  { %v2653_v38 = vrot.slane %v5979_v43, 4  ;;  %v2167_v41 = vperm.slane %v2163_v5, %v5038_v21  ;;  %v2181_v19 = vrot.slane %v2161_v62, 4  ;;  %v2149_v53 = vrot.slane %v2132_v44, 4 }
 0x761   :  { %v2151_v61 = vrot.slane %v2136_v33, 4  ;;  %v2156_v6 = vsel %vm213_vm1, 0.0, %v2155_v24  ;;  %v2740_v14 = vsel %vm213_vm1, %v6030_v9, %v2739_v16  ;;  %v2470_v48 = vsel %vm213_vm1, 0.0, %v2469_v10 }
 0x762   :  { %v2648_v37 = vsel %vm213_vm1, %v5961_v1, %v5944_v29  ;;  %v2227_v59 = vrot.slane %v2156_v6, 4  ;;  %4467 = vmatpush.xpose.msk.msra.mxu3 %vm921_vm2, %v2740_v14  ;;  %v2182_v52 = vsel %vm213_vm1, %v2167_v41, %v2181_v19  ;;  %v2154_v39 = vsel %vm213_vm1, 0.0, %v2153_v50 }
 0x763   :  { %v2222_v43 = vsel %vm213_vm1, %v2155_v24, %v2144_v15  ;;  %v2190_v8 = vperm.slane %v2182_v52, %v5059_v34  ;;  %v2194_v10 = vsel %vm213_vm1, %v5937_v55, %v2193_v36  ;;  %v2468_v22 = vsel %vm213_vm1, 0.0, %v2467_v31 }
 0x764   :  { %v2152_v29 = vsel %vm213_vm1, 0.0, %v2151_v61  ;;  %v2228_v1 = vsel %vm213_vm1, %v2227_v59, %v2154_v39  ;;  %v2202_v25 = vperm.slane %v2194_v10, %v5059_v34  ;;  %v2652_v11 = vperm.slane %v2648_v37, %v5038_v21 }
 0x765   :  { %v2654_v40 = vsel %vm213_vm1, %v2653_v38, %v2470_v48  ;;  %v2150_v15 = vsel %vm213_vm1, 0.0, %v2149_v53  ;;  %v2179_v47 = vrot.slane %v2167_v41, 4  ;;  %v2226_v28 = vperm.slane %v2222_v43, %v5038_v21 }
 0x766   :  { %v2207_v0 = vrot.slane %v2202_v25, 4  ;;  %v2192_v36 = vsel %vm213_vm1, %v2191_v12, %v5932_v54  ;;  %v2209_v35 = vrot.slane %v2190_v8, 4  ;;  %v2211_v2 = vsel %vm213_vm1, %v2151_v61, %v2132_v44 }
 0x767   :  { %v2216_v50 = vrot.slane %v2152_v29, 4  ;;  %v2232_v33 = vperm.slane %v2228_v1, %v5038_v21  ;;  %v2180_v24 = vsel %vm213_vm1, %v2179_v47, %v2161_v62  ;;  %v2198_v38 = vperm.slane %v2192_v36, %v5059_v34 }
 0x768   :  { %v2208_v16 = vsel %vm213_vm1, %v2207_v0, %v2190_v8  ;;  %v2186_v5 = vperm.slane %v2180_v24, %v5059_v34  ;;  %v2210_v41 = vsel %vm213_vm1, %v2202_v25, %v2209_v35  ;;  %v2737_v54 = vrot.slane %v6030_v9, 4 }
 0x769   :  { %4460 = vmatmul.msk.f32.vlgmr.msrb.gmra.mxu3 %vm921_vm2, %v2208_v16  ;;  %4463 = vmatmul.msk.f32.vlgmr.msra.gmra.mxu0 %vm921_vm2, %v2210_v41  ;;  %v2466_v55 = vsel %vm213_vm1, 0.0, %v2465_v45  ;;  %v2637_v12 = vsel %vm213_vm1, %v2467_v31, %v5955_v46  ;;  %v2642_v62 = vrot.slane %v2468_v22, 4  ;;  %v2203_v44 = vrot.slane %v2198_v38, 4 }
 0x76a   :  { %v2641_v19 = vperm.slane %v2637_v12, %v5038_v21  ;;  %v2658_v53 = vperm.slane %v2654_v40, %v5038_v21  ;;  %v2673_v61 = vrot.slane %v2652_v11, 4  ;;  %v2245_v6 = vrot.slane %v2232_v33, 4 }
 0x76b   :  { %v2247_v14 = vrot.slane %v2226_v28, 4  ;;  %v2643_v48 = vsel %vm213_vm1, %v2642_v62, %v2466_v55  ;;  %v2215_v9 = vperm.slane %v2211_v2, %v5038_v21  ;;  %v2204_v37 = vsel %vm213_vm1, %v2203_v44, %v2186_v5 }
 0x76c   :  { %v2647_v45 = vperm.slane %v2643_v48, %v5038_v21  ;;  %v2661_v59 = vrot.slane %v2641_v19, 4  ;;  %v2674_v46 = vsel %vm213_vm1, %v2658_v53, %v2673_v61  ;;  %4454 = vmatmul.msk.f32.vlgmr.msra.gmra.mxu2 %vm921_vm2, %v2204_v37  ;;  %v2738_v31 = vsel %vm213_vm1, %v2737_v54, %v6023_v23 }
 0x76d   :  { %v2682_v52 = vperm.slane %v2674_v46, %v5059_v34  ;;  %v2205_v39 = vrot.slane %v2186_v5, 4  ;;  %v2671_v43 = vrot.slane %v2658_v53, 4  ;;  %4464 = vmatpush.xpose.msk.msra.mxu2 %vm921_vm2, %v2738_v31  ;;  %v2217_v22 = vsel %vm213_vm1, %v2216_v50, %v2150_v15 }
 0x76e   :  { %v2662_v8 = vsel %vm213_vm1, %v2647_v45, %v2661_v59  ;;  %v2659_v10 = vrot.slane %v2647_v45, 4  ;;  %v2235_v29 = vrot.slane %v2215_v9, 4  ;;  %v2221_v47 = vperm.slane %v2217_v22, %v5038_v21  ;;  %v126_v59 = vld [vmem:[#allocation8] sm:$0xff] }
 0x76f   :  { %v2670_v1 = vperm.slane %v2662_v8, %v5059_v34  ;;  %v2687_v25 = vrot.slane %v2682_v52, 4  ;;  %v2672_v40 = vsel %vm213_vm1, %v2671_v43, %v2652_v11  ;;  %v2248_v36 = vsel %vm213_vm1, %v2232_v33, %v2247_v14 }
 0x770   :  { %v2660_v23 = vsel %vm213_vm1, %v2659_v10, %v2641_v19  ;;  %v2678_v0 = vperm.slane %v2672_v40, %v5059_v34  ;;  %v2246_v35 = vsel %vm213_vm1, %v2245_v6, %v2226_v28  ;;  %v2743_v50 = vrot.slane %v6003_v4, 4 }
 0x771   :  { %v2688_v2 = vsel %vm213_vm1, %v2687_v25, %v2670_v1  ;;  %v2666_v15 = vperm.slane %v2660_v23, %v5059_v34  ;;  %v2236_v24 = vsel %vm213_vm1, %v2221_v47, %v2235_v29  ;;  %v2256_v5 = vperm.slane %v2248_v36, %v5059_v34 }
 0x772   :  { %4471 = vmatpush.xpose.msk.msrb.mxu0 %vm921_vm2, %v2688_v2  ;;  %v2683_v11 = vrot.slane %v2678_v0, 4  ;;  %v2244_v16 = vperm.slane %v2236_v24, %v5059_v34  ;;  %v2233_v41 = vrot.slane %v2221_v47, 4  ;;  %v2252_v33 = vperm.slane %v2246_v35, %v5059_v34  ;;  %v127_v2 = vld [vmem:[#allocation8 + $0x8] sm:$0xff] }
 0x773   :  { %v2685_v54 = vrot.slane %v2666_v15, 4  ;;  %v2206_v28 = vsel %vm213_vm1, %v2198_v38, %v2205_v39  ;;  %v2261_v12 = vrot.slane %v2256_v5, 4  ;;  %v2744_v19 = vsel %vm213_vm1, %v5987_v26, %v2743_v50 }
 0x774   :  { %v2684_v55 = vsel %vm213_vm1, %v2683_v11, %v2666_v15  ;;  %v2234_v4 = vsel %vm213_vm1, %v2233_v41, %v2215_v9  ;;  %4457 = vmatmul.msk.f32.vlgmr.msrb.gmra.mxu2 %vm921_vm2, %v2206_v28  ;;  %v2689_v53 = vrot.slane %v2670_v1, 4  ;;  %v2257_v61 = vrot.slane %v2252_v33, 4 }
 0x775   :  { %v2686_v62 = vsel %vm213_vm1, %v2678_v0, %v2685_v54  ;;  %v2240_v44 = vperm.slane %v2234_v4, %v5059_v34  ;;  %4465 = vmatpush.xpose.msk.msra.mxu2 %vm921_vm2, %v2684_v55  ;;  %v2262_v38 = vsel %vm213_vm1, %v2261_v12, %v2244_v16  ;;  %v2263_v26 = vrot.slane %v2244_v16, 4 }
 0x776   :  { %4468 = vmatpush.xpose.msk.msra.mxu3 %vm921_vm2, %v2686_v62  ;;  %4472 = vmatmul.msk.f32.vlgmr.msrb.gmra.mxu0 %vm921_vm2, %v2262_v38  ;;  %v2690_v48 = vsel %vm213_vm1, %v2682_v52, %v2689_v53 }
 0x777   :  { %v2259_v6 = vrot.slane %v2240_v44, 4  ;;  %v2258_v9 = vsel %vm213_vm1, %v2257_v61, %v2240_v44  ;;  %v2264_v37 = vsel %vm213_vm1, %v2256_v5, %v2263_v26  ;;  %v4581_v44 = vpack.i.bf16 %v5650_v42, %v5634_v30 }
 0x778   :  { %v6657_v30 = vpack.i.bf16 %v5893_v32, %v5742_v63  ;;  %v6658_v42 = vpack.i.bf16 %v5867_v27, %v5732_v56 }
 0x779   :  { %4473 = vmatpush.xpose.msk.msrb.mxu2 %vm921_vm2, %v2744_v19  ;;  %v2260_v14 = vsel %vm213_vm1, %v2252_v33, %v2259_v6  ;;  %v6656_v19 = vpack.i.bf16 %v5696_v18, %v5668_v49 }
 0x77a   :  { %4469 = vmatmul.msk.f32.vlgmr.msra.gmra.mxu3 %vm921_vm2, %v2260_v14 }
 0x77c   :  { %4466 = vmatmul.msk.f32.vlgmr.msra.gmra.mxu2 %vm921_vm2, %v2258_v9 }
 0x77d   :  { %4474 = vmatpush.xpose.msk.msrb.mxu2 %vm921_vm2, %v2690_v48 }
 0x784   :  { %4475 = vmatmul.msk.f32.vlgmr.msrb.gmra.mxu2 %vm921_vm2, %v2264_v37 }
 0x7e6   :  { %v3346_v45 = vpop.f32.mrf.mxu0 }
 0x7e7   :  { %v3468_v46 = vmul.f32 0.35355338, %v3346_v45 }
 0x7e9   :  { %v3476_v31 = vadd.f32 %v3468_v46, %v126_v59 }
 0x7eb   :  { %v3490_v39 = vsel %vm1776_vm9, %v3476_v31, -inf }
 0x7ec   :  { %v3317_v52 = vpop.f32.mrf.mxu3  ;;  %3491 = vmax.xlane.f32.xlu1 %v3490_v39 }
 0x7ed   :  { %v3467_v43 = vmul.f32 0.35355338, %v3317_v52 }
 0x7ef   :  { %v3475_v8 = vadd.f32 %v3467_v43, %v126_v59  ;;  %v3259_v10 = vpop.f32.mrf.mxu2 }
 0x7f0   :  { %v3465_v22 = vmul.f32 0.35355338, %v3259_v10 }
 0x7f1   :  { %v3487_v29 = vsel %vm1776_vm9, %v3475_v8, -inf }
 0x7f2   :  { %3488 = vmax.xlane.f32.xlu0 %v3487_v29  ;;  %v3473_v1 = vadd.f32 %v3465_v22, %v126_v59 }
 0x7f3   :  { %v3433_v23 = vpop.f32.mrf.mxu0 }
 0x7f4   :  { %v3481_v25 = vsel %vm1776_vm9, %v3473_v1, -inf  ;;  %v3471_v36 = vmul.f32 0.35355338, %v3433_v23 }
 0x7f5   :  { %3482 = vmax.xlane.f32.xlu2 %v3481_v25 }
 0x7f6   :  { %v3479_v24 = vadd.f32 %v3471_v36, %v127_v2 }
 0x7f7   :  { %v3288_v40 = vpop.f32.mrf.mxu2 }
 0x7f8   :  { %v3466_v47 = vmul.f32 0.35355338, %v3288_v40  ;;  %v3499_v41 = vsel %vm1776_vm9, %v3479_v24, -inf }
 0x7fa   :  { %v3474_v0 = vadd.f32 %v3466_v47, %v126_v59 }
 0x7fc   :  { %v3484_v35 = vsel %vm1776_vm9, %v3474_v0, -inf }
 0x7fd   :  { %3485 = vmax.xlane.f32.xlu2 %v3484_v35  ;;  %v3404_v11 = vpop.f32.mrf.mxu3 }
 0x7fe   :  { %v3470_v5 = vmul.f32 0.35355338, %v3404_v11 }
 0x7ff   :  { %v3375_v15 = vpop.f32.mrf.mxu2 }
 0x800   :  { %v3469_v50 = vmul.f32 0.35355338, %v3375_v15  ;;  %v6139_v55 = vadd.f32 %v3470_v5, %v127_v2 }
 0x802   :  { %v3477_v16 = vadd.f32 %v3469_v50, %v127_v2  ;;  %v3496_v4 = vsel %vm1776_vm9, %v6139_v55, -inf }
 0x804   :  { %v3493_v54 = vsel %vm1776_vm9, %v3477_v16, -inf }
 0x805   :  { %3500 = vmax.xlane.f32.xlu2 %v3499_v41  ;;  %3494 = vmax.xlane.f32.xlu1 %v3493_v54 }
 0x807   :  { %v3462_v33 = vpop.f32.mrf.mxu2 }
 0x808   :  { %v3472_v28 = vmul.f32 0.35355338, %v3462_v33 }
 0x80a   :  { %v3480_v12 = vadd.f32 %v3472_v28, %v127_v2 }
 0x80c   :  { %v3502_v62 = vsel %vm1776_vm9, %v3480_v12, -inf }
 0x80d   :  { %3497 = vmax.xlane.f32.xlu1 %v3496_v4  ;;  %3503 = vmax.xlane.f32.xlu0 %v3502_v62  ;;  %v4565_v62 = vunpack.i.h.bf16 %v6167_v51 }
 0x81d   :  { %4582 = vrot.lane.b32.xlu2 %v4581_v44, %s4911_s28 }
 0x821   :  { %4577 = vrot.lane.b32.xlu0 %v4576_v13, %s4911_s28  ;;  %v6169_v13 = vpop.permute.xlu2 %4567 }
 0x822   :  { %v4570_v23 = vunpack.i.h.bf16 %v6169_v13 }
 0x825   :  { %4587 = vrot.lane.b32.xlu2 %v4586_v7, %s4911_s28 }
 0x826   :  { %4572 = vrot.lane.b32.xlu1 %v6656_v19, %s4911_s28 }
 0x82d   :  { %4592 = vrot.lane.b32.xlu2 %v6657_v30, %s4911_s28 }
 0x835   :  { %4597 = vrot.lane.b32.xlu2 %v6658_v42, %s4911_s28  ;;  %v4569_v42 = vunpack.i.l.bf16 %v6169_v13  ;;  %v6227_v13 = vrot.slane %v4565_v62, 4 }
 0x85f   :  { %v3492_v17 = vpop.xlane.xlu1 %3491 }
 0x860   :  { %v3508_v58 = vsub.f32 %v3476_v31, %v3492_v17 }
 0x862   :  { %v3519_v57 = vmul.f32 1.442695, %v3508_v58 }
 0x864   :  { %4666 = vpow2.f32 %v3519_v57 }
 0x865   :  { %v3489_v49 = vpop.xlane.xlu0 %3488 }
 0x866   :  { %v3507_v18 = vsub.f32 %v3475_v8, %v3489_v49 }
 0x868   :  { %v3517_v7 = vmul.f32 1.442695, %v3507_v18  ;;  %v3483_v53 = vpop.xlane.xlu2 %3482 }
 0x869   :  { %v3505_v63 = vsub.f32 %v3473_v1, %v3483_v53 }
 0x86a   :  { %v6171_v38 = vpop.eup %4666  ;;  %4668 = vpow2.f32 %v3517_v7 }
 0x86b   :  { %v3538_v56 = vsel %vm1776_vm9, %v6171_v38, 0.0  ;;  %v3513_v27 = vmul.f32 1.442695, %v3505_v63 }
 0x86c   :  { %3539 = vadd.xlane.f32.xlu1 %v3538_v56 }
 0x86d   :  { %4670 = vpow2.f32 %v3513_v27 }
 0x870   :  { %v6175_v32 = vpop.eup %4668  ;;  %v3486_v61 = vpop.xlane.xlu2 %3485 }
 0x871   :  { %v3535_v6 = vsel %vm1776_vm9, %v6175_v32, 0.0  ;;  %v3506_v14 = vsub.f32 %v3474_v0, %v3486_v61  ;;  %v4564_v0 = vunpack.i.l.bf16 %v6167_v51 }
 0x872   :  { %3536 = vadd.xlane.f32.xlu2 %v3535_v6 }
 0x873   :  { %v6179_v48 = vpop.eup %4670  ;;  %v3515_v9 = vmul.f32 1.442695, %v3506_v14 }
 0x874   :  { %v3529_v26 = vsel %vm1776_vm9, %v6179_v48, 0.0 }
 0x875   :  { %4672 = vpow2.f32 %v3515_v9  ;;  %3530 = vadd.xlane.f32.xlu0 %v3529_v26 }
 0x878   :  { %v3501_v37 = vpop.xlane.xlu2 %3500  ;;  %v3495_v45 = vpop.xlane.xlu1 %3494 }
 0x879   :  { %v3509_v59 = vsub.f32 %v3477_v16, %v3495_v45  ;;  %v3511_v39 = vsub.f32 %v3479_v24, %v3501_v37  ;;  %v2849_v24 = vrot.slane %v4570_v23, 4  ;;  %v2851_v16 = vrot.slane %v4564_v0, 4 }
 0x87a   :  { %v2863_v37 = vrot.slane %v4569_v42, 4 }
 0x87b   :  { %v6183_v46 = vpop.eup %4672  ;;  %v3521_v31 = vmul.f32 1.442695, %v3509_v59  ;;  %v3525_v43 = vmul.f32 1.442695, %v3511_v39 }
 0x87c   :  { %v3532_v52 = vsel %vm1776_vm9, %v6183_v46, 0.0 }
 0x87d   :  { %3533 = vadd.xlane.f32.xlu0 %v3532_v52  ;;  %4674 = vpow2.f32 %v3521_v31 }
 0x87e   :  { %4676 = vpow2.f32 %v3525_v43 }
 0x880   :  { %v4583_v8 = vpop.permute.xlu2 %4582  ;;  %v3498_v10 = vpop.xlane.xlu1 %3497 }
 0x881   :  { %v3504_v22 = vpop.xlane.xlu0 %3503  ;;  %v3510_v25 = vsub.f32 %v6139_v55, %v3498_v10  ;;  %v4584_v2 = vunpack.i.l.bf16 %v4583_v8  ;;  %v4585_v41 = vunpack.i.h.bf16 %v4583_v8  ;;  %v2852_v55 = vsel %vm213_vm1, %v4570_v23, %v2851_v16 }
 0x882   :  { %v3512_v29 = vsub.f32 %v3480_v12, %v3504_v22  ;;  %v2850_v12 = vsel %vm213_vm1, %v2849_v24, %v4564_v0  ;;  %v2860_v30 = vperm.slane %v2852_v55, %v5038_v21 }
 0x883   :  { %v6187_v1 = vpop.eup %4674  ;;  %v3523_v36 = vmul.f32 1.442695, %v3510_v25  ;;  %v2963_v54 = vrot.slane %v4584_v2, 4  ;;  %v2907_v17 = vrot.slane %v4585_v41, 4  ;;  %v2856_v49 = vperm.slane %v2850_v12, %v5038_v21 }
 0x884   :  { %v3527_v40 = vmul.f32 1.442695, %v3512_v29  ;;  %v3541_v47 = vsel %vm1776_vm9, %v6187_v1, 0.0  ;;  %v6197_v50 = vpop.eup %4676  ;;  %v2887_v26 = vrot.slane %v2860_v30, 4 }
 0x885   :  { %3542 = vadd.xlane.f32.xlu1 %v3541_v47  ;;  %v3547_v33 = vsel %vm1776_vm9, %v6197_v50, 0.0  ;;  %v2875_v31 = vrot.slane %v2856_v49, 4 }
 0x886   :  { %4678 = vpow2.f32 %v3527_v40 }
 0x887   :  { %4680 = vpow2.f32 %v3523_v36 }
 0x888   :  { %v6194_v35 = vpop.permute.xlu2 %4587 }
 0x889   :  { %v4590_v15 = vunpack.i.h.bf16 %v6194_v35  ;;  %v4589_v18 = vunpack.i.l.bf16 %v6194_v35 }
 0x88b   :  { %v2961_v5 = vrot.slane %v4590_v15, 4  ;;  %v2964_v4 = vsel %vm213_vm1, %v4590_v15, %v2963_v54  ;;  %v2975_v39 = vrot.slane %v4589_v18, 4 }
 0x88c   :  { %v6199_v11 = vpop.eup %4678  ;;  %v6217_v7 = vperm.slane %v2964_v4, %v5038_v21 }
 0x88d   :  { %v3550_v28 = vsel %vm1776_vm9, %v6199_v11, 0.0  ;;  %3548 = vadd.xlane.f32.xlu1 %v3547_v33  ;;  %v2962_v44 = vsel %vm213_vm1, %v2961_v5, %v4584_v2  ;;  %v6212_v57 = vpop.eup %4680 }
 0x88e   :  { %3551 = vadd.xlane.f32.xlu0 %v3550_v28  ;;  %v6220_v53 = vperm.slane %v2962_v44, %v5038_v21  ;;  %v3544_v59 = vsel %vm1776_vm9, %v6212_v57, 0.0  ;;  %v2999_v10 = vrot.slane %v6217_v7, 4 }
 0x890   :  { %v4593_v19 = vpop.permute.xlu2 %4592  ;;  %v2987_v8 = vrot.slane %v6220_v53, 4 }
 0x891   :  { %v4595_v58 = vunpack.i.h.bf16 %v4593_v19  ;;  %v4594_v56 = vunpack.i.l.bf16 %v4593_v19 }
 0x893   :  { %v2905_v63 = vrot.slane %v4595_v58, 4  ;;  %v2908_v27 = vsel %vm213_vm1, %v4595_v58, %v2907_v17  ;;  %v6223_v61 = vpop.permute.xlu0 %4577  ;;  %v2919_v22 = vrot.slane %v4594_v56, 4 }
 0x894   :  { %v6230_v6 = vperm.slane %v2908_v27, %v5038_v21  ;;  %v4580_v14 = vunpack.i.h.bf16 %v6223_v61  ;;  %v4579_v9 = vunpack.i.l.bf16 %v6223_v61 }
 0x895   :  { %v2906_v45 = vsel %vm213_vm1, %v2905_v63, %v4585_v41 }
 0x896   :  { %v2912_v52 = vperm.slane %v2906_v45, %v5038_v21  ;;  %v2861_v43 = vrot.slane %v4579_v9, 4  ;;  %3545 = vadd.xlane.f32.xlu0 %v3544_v59  ;;  %v2864_v29 = vsel %vm213_vm1, %v4579_v9, %v2863_v37  ;;  %v2943_v25 = vrot.slane %v6230_v6, 4 }
 0x897   :  { %v6244_v40 = vrot.slane %v4580_v14, 4  ;;  %v2872_v23 = vperm.slane %v2864_v29, %v5038_v21 }
 0x898   :  { %v2862_v47 = vsel %vm213_vm1, %v2861_v43, %v4569_v42  ;;  %v4598_v0 = vpop.permute.xlu2 %4597  ;;  %v6248_v36 = vpop.permute.xlu1 %4572  ;;  %v2931_v35 = vrot.slane %v2912_v52, 4 }
 0x899   :  { %v2868_v2 = vperm.slane %v2862_v47, %v5038_v21  ;;  %v4600_v15 = vunpack.i.h.bf16 %v4598_v0  ;;  %v4599_v24 = vunpack.i.l.bf16 %v4598_v0  ;;  %v2885_v16 = vrot.slane %v2872_v23, 4 }
 0x89a   :  { %v2888_v5 = vsel %vm213_vm1, %v2872_v23, %v2887_v26  ;;  %v4575_v41 = vunpack.i.h.bf16 %v6248_v36  ;;  %v4574_v54 = vunpack.i.l.bf16 %v6248_v36 }
 0x89b   :  { %v2873_v33 = vrot.slane %v2868_v2, 4  ;;  %v2876_v28 = vsel %vm213_vm1, %v2868_v2, %v2875_v31  ;;  %v2896_v55 = vperm.slane %v2888_v5, %v5059_v34  ;;  %v2917_v12 = vrot.slane %v4600_v15, 4 }
 0x89c   :  { %v2884_v4 = vperm.slane %v2876_v28, %v5059_v34  ;;  %v2886_v44 = vsel %vm213_vm1, %v2885_v16, %v2860_v30  ;;  %v2920_v19 = vsel %vm213_vm1, %v4600_v15, %v2919_v22  ;;  %v2973_v42 = vrot.slane %v4599_v24, 4 }
 0x89d   :  { %v2874_v17 = vsel %vm213_vm1, %v2873_v33, %v2856_v49  ;;  %v6261_v58 = vperm.slane %v2886_v44, %v5059_v34  ;;  %v2903_v63 = vrot.slane %v2896_v55, 4  ;;  %v2918_v27 = vsel %vm213_vm1, %v2917_v12, %v4594_v56 }
 0x89e   :  { %v6265_v9 = vperm.slane %v2874_v17, %v5059_v34  ;;  %v2899_v26 = vrot.slane %v2884_v4, 4  ;;  %v2924_v37 = vperm.slane %v2918_v27, %v5038_v21  ;;  %v2928_v45 = vperm.slane %v2920_v19, %v5038_v21 }
 0x89f   :  { %v2901_v30 = vrot.slane %v6261_v58, 4  ;;  %v6271_v59 = vsel %vm213_vm1, 0.0, %v2903_v63  ;;  %v3082_v49 = vsel %vm213_vm1, %v2903_v63, %v6261_v58  ;;  %v2974_v31 = vsel %vm213_vm1, %v2973_v42, %v4589_v18 }
 0x8a0   :  { %v6277_v56 = vsel %vm213_vm1, 0.0, %v2899_v26  ;;  %v3087_v43 = vrot.slane %v6271_v59, 4  ;;  %v2929_v22 = vrot.slane %v2924_v37, 4  ;;  %v2932_v29 = vsel %vm213_vm1, %v2924_v37, %v2931_v35 }
 0x8a1   :  { %v3076_v47 = vrot.slane %v6277_v56, 4  ;;  %v2940_v23 = vperm.slane %v2932_v29, %v5059_v34  ;;  %v2941_v0 = vrot.slane %v2928_v45, 4  ;;  %v2944_v36 = vsel %vm213_vm1, %v2928_v45, %v2943_v25 }
 0x8a2   :  { %v2930_v2 = vsel %vm213_vm1, %v2929_v22, %v2912_v52  ;;  %v2952_v15 = vperm.slane %v2944_v36, %v5059_v34  ;;  %v2976_v18 = vsel %vm213_vm1, %v4599_v24, %v2975_v39  ;;  %v2980_v16 = vperm.slane %v2974_v31, %v5038_v21 }
 0x8a3   :  { %v6289_v5 = vperm.slane %v2930_v2, %v5059_v34  ;;  %v2942_v35 = vsel %vm213_vm1, %v2941_v0, %v6230_v6  ;;  %v6293_v33 = vrot.slane %v2940_v23, 4  ;;  %v2984_v28 = vperm.slane %v2976_v18, %v5038_v21 }
 0x8a4   :  { %v6297_v25 = vperm.slane %v2942_v35, %v5059_v34  ;;  %v6299_v52 = vrot.slane %v2952_v15, 4  ;;  %v2985_v55 = vrot.slane %v2980_v16, 4  ;;  %v2988_v39 = vsel %vm213_vm1, %v2980_v16, %v2987_v8 }
 0x8a5   :  { %v6304_v24 = vsel %vm213_vm1, 0.0, %v6293_v33  ;;  %v2996_v12 = vperm.slane %v2988_v39, %v5059_v34  ;;  %v2997_v4 = vrot.slane %v2984_v28, 4  ;;  %v3000_v6 = vsel %vm213_vm1, %v2984_v28, %v2999_v10 }
 0x8a6   :  { %v2957_v44 = vrot.slane %v6297_v25, 4  ;;  %v6311_v19 = vsel %vm213_vm1, 0.0, %v6299_v52  ;;  %v2986_v42 = vsel %vm213_vm1, %v2985_v55, %v6220_v53  ;;  %v3008_v8 = vperm.slane %v3000_v6, %v5059_v34 }
 0x8a7   :  { %v6317_v17 = vperm.slane %v2986_v42, %v5059_v34  ;;  %v2998_v58 = vsel %vm213_vm1, %v2997_v4, %v6217_v7  ;;  %v6321_v63 = vrot.slane %v2996_v12, 4  ;;  %v3141_v10 = vrot.slane %v6311_v19, 4 }
 0x8a8   :  { %v6325_v27 = vperm.slane %v2998_v58, %v5059_v34  ;;  %v3015_v37 = vrot.slane %v3008_v8, 4  ;;  %v2793_v45 = vrot.slane %v4575_v41, 4  ;;  %v2796_v53 = vsel %vm213_vm1, %v4575_v41, %v6227_v13 }
 0x8a9   :  { %v6331_v31 = vsel %vm213_vm1, 0.0, %v6321_v63  ;;  %v2804_v22 = vperm.slane %v2796_v53, %v5038_v21  ;;  %v2806_v7 = vsel %vm213_vm1, %v6244_v40, %v4574_v54  ;;  %v2807_v29 = vrot.slane %v4574_v54, 4 }
 0x8aa   :  { %v3013_v23 = vrot.slane %v6325_v27, 4  ;;  %v6338_v0 = vsel %vm213_vm1, 0.0, %v3015_v37  ;;  %v3184_v36 = vrot.slane %v6331_v31, 4  ;;  %v6343_v13 = vsel %vm213_vm1, %v3015_v37, %v6325_v27 }
 0x8ab   :  { %v3195_v41 = vrot.slane %v6338_v0, 4  ;;  %v2794_v2 = vsel %vm213_vm1, %v2793_v45, %v4565_v62  ;;  %v2831_v15 = vrot.slane %v2804_v22, 4  ;;  %v2808_v40 = vsel %vm213_vm1, %v4580_v14, %v2807_v29 }
 0x8ac   :  { %v2800_v54 = vperm.slane %v2794_v2, %v5038_v21  ;;  %v2812_v18 = vperm.slane %v2806_v7, %v5038_v21  ;;  %v2816_v16 = vperm.slane %v2808_v40, %v5038_v21  ;;  %v2897_v35 = vrot.slane %v6265_v9, 4 }
 0x8ad   :  { %v2902_v28 = vsel %vm213_vm1, 0.0, %v2901_v30  ;;  %v3071_v51 = vsel %vm213_vm1, %v2899_v26, %v6265_v9  ;;  %v3086_v62 = vperm.slane %v3082_v49, %v5038_v21  ;;  %v3009_v55 = vrot.slane %v6317_v17, 4 }
 0x8ae   :  { %v2819_v61 = vrot.slane %v2800_v54, 4  ;;  %v2817_v39 = vrot.slane %v2812_v18, 4  ;;  %v2829_v14 = vrot.slane %v2816_v16, 4  ;;  %v2832_v12 = vsel %vm213_vm1, %v2816_v16, %v2831_v15 }
 0x8af   :  { %v2840_v4 = vperm.slane %v2832_v12, %v5059_v34  ;;  %v2898_v6 = vsel %vm213_vm1, 0.0, %v2897_v35  ;;  %v3075_v42 = vperm.slane %v3071_v51, %v5038_v21  ;;  %v3088_v30 = vsel %vm213_vm1, %v3087_v43, %v2902_v28 }
 0x8b0   :  { %v2818_v9 = vsel %vm213_vm1, %v2817_v39, %v2800_v54  ;;  %v2820_v26 = vsel %vm213_vm1, %v2812_v18, %v2819_v61  ;;  %v2830_v49 = vsel %vm213_vm1, %v2829_v14, %v2804_v22  ;;  %v3077_v8 = vsel %vm213_vm1, %v3076_v47, %v2898_v6 }
 0x8b1   :  { %v2824_v58 = vperm.slane %v2818_v9, %v5059_v34  ;;  %v2828_v37 = vperm.slane %v2820_v26, %v5059_v34  ;;  %v2836_v45 = vperm.slane %v2830_v49, %v5059_v34  ;;  %v2847_v53 = vrot.slane %v2840_v4, 4 }
 0x8b2   :  { %v3081_v59 = vperm.slane %v3077_v8, %v5038_v21  ;;  %v3092_v43 = vperm.slane %v3088_v30, %v5038_v21  ;;  %v3095_v7 = vrot.slane %v3075_v42, 4  ;;  %v3107_v29 = vrot.slane %v3086_v62, 4 }
 0x8b3   :  { %v2841_v2 = vrot.slane %v2824_v58, 4  ;;  %v2843_v15 = vrot.slane %v2828_v37, 4  ;;  %v2845_v22 = vrot.slane %v2836_v45, 4  ;;  %v2848_v56 = vsel %vm213_vm1, 0.0, %v2847_v53 }
 0x8b4   :  { %v3033_v40 = vrot.slane %v2848_v56, 4  ;;  %v3096_v47 = vsel %vm213_vm1, %v3081_v59, %v3095_v7  ;;  %v3108_v54 = vsel %vm213_vm1, %v3092_v43, %v3107_v29  ;;  %v3093_v18 = vrot.slane %v3081_v59, 4 }
 0x8b5   :  { %v2844_v16 = vsel %vm213_vm1, 0.0, %v2843_v15  ;;  %v2846_v35 = vsel %vm213_vm1, 0.0, %v2845_v22  ;;  %v3104_v28 = vperm.slane %v3096_v47, %v5059_v34  ;;  %v3116_v51 = vperm.slane %v3108_v54, %v5059_v34 }
 0x8b6   :  { %v3022_v61 = vrot.slane %v2844_v16, 4  ;;  %v3094_v39 = vsel %vm213_vm1, %v3093_v18, %v3075_v42  ;;  %v3105_v14 = vrot.slane %v3092_v43, 4  ;;  %v2842_v12 = vsel %vm213_vm1, 0.0, %v2841_v2 }
 0x8b7   :  { %v3121_v4 = vrot.slane %v3116_v51, 4  ;;  %v3100_v6 = vperm.slane %v3094_v39, %v5059_v34  ;;  %v3123_v30 = vrot.slane %v3104_v28, 4  ;;  %v3017_v9 = vsel %vm213_vm1, %v2843_v15, %v2824_v58 }
 0x8b8   :  { %v3106_v26 = vsel %vm213_vm1, %v3105_v14, %v3086_v62  ;;  %v3021_v49 = vperm.slane %v3017_v9, %v5038_v21  ;;  %v3023_v8 = vsel %vm213_vm1, %v3022_v61, %v2842_v12  ;;  %v3028_v37 = vsel %vm213_vm1, %v2847_v53, %v2836_v45 }
 0x8b9   :  { %v3122_v59 = vsel %vm213_vm1, %v3121_v4, %v3104_v28  ;;  %v3112_v42 = vperm.slane %v3106_v26, %v5059_v34  ;;  %v3124_v43 = vsel %vm213_vm1, %v3116_v51, %v3123_v30  ;;  %v3119_v7 = vrot.slane %v3100_v6, 4 }
 0x8ba   :  { %3744 = vmatpush.msrb.mxu1 %v3122_v59  ;;  %3767 = vmatpush.msra.mxu2 %v3124_v43  ;;  %v3027_v29 = vperm.slane %v3023_v8, %v5038_v21  ;;  %v3032_v58 = vperm.slane %v3028_v37, %v5038_v21  ;;  %v3034_v62 = vsel %vm213_vm1, %v3033_v40, %v2846_v35  ;;  %v3041_v2 = vrot.slane %v3021_v49, 4 }
 0x8bb   :  { %v3117_v15 = vrot.slane %v3112_v42, 4  ;;  %v3120_v22 = vsel %vm213_vm1, %v3112_v42, %v3119_v7  ;;  %v3038_v45 = vperm.slane %v3034_v62, %v5038_v21  ;;  %v3010_v53 = vsel %vm213_vm1, 0.0, %v3009_v55 }
 0x8bc   :  { %3721 = vmatpush.msra.mxu0 %v3120_v22  ;;  %v3042_v56 = vsel %vm213_vm1, %v3027_v29, %v3041_v2  ;;  %v3053_v47 = vrot.slane %v3032_v58, 4  ;;  %v3014_v54 = vsel %vm213_vm1, 0.0, %v3013_v23  ;;  %v3179_v40 = vsel %vm213_vm1, %v6321_v63, %v6317_v17 }
 0x8bd   :  { %v3118_v18 = vsel %vm213_vm1, %v3117_v15, %v3100_v6  ;;  %v3050_v16 = vperm.slane %v3042_v56, %v5059_v34  ;;  %v3183_v35 = vperm.slane %v3179_v40, %v5038_v21  ;;  %v3185_v55 = vsel %vm213_vm1, %v3184_v36, %v3010_v53 }
 0x8be   :  { %3698 = vmatpush.msrb.mxu3 %v3118_v18  ;;  %v3054_v28 = vsel %vm213_vm1, %v3038_v45, %v3053_v47  ;;  %v3189_v27 = vperm.slane %v3185_v55, %v5038_v21  ;;  %v3194_v23 = vperm.slane %v6343_v13, %v5038_v21  ;;  %v3196_v17 = vsel %vm213_vm1, %v3195_v41, %v3014_v54 }
 0x8bf   :  { %v3062_v63 = vperm.slane %v3054_v28, %v5059_v34  ;;  %v3200_v51 = vperm.slane %v3196_v17, %v5038_v21  ;;  %v3203_v61 = vrot.slane %v3183_v35, 4  ;;  %v3039_v31 = vrot.slane %v3027_v29, 4 }
 0x8c0   :  { %v3215_v39 = vrot.slane %v3194_v23, 4  ;;  %v3051_v36 = vrot.slane %v3038_v45, 4  ;;  %v3069_v14 = vrot.slane %v3050_v16, 4  ;;  %v3201_v12 = vrot.slane %v3189_v27, 4 }
 0x8c1   :  { %v3067_v4 = vrot.slane %v3062_v63, 4  ;;  %v3204_v6 = vsel %vm213_vm1, %v3189_v27, %v3203_v61  ;;  %v3040_v30 = vsel %vm213_vm1, %v3039_v31, %v3021_v49  ;;  %v3213_v13 = vrot.slane %v3200_v51, 4 }
 0x8c2   :  { %v3212_v0 = vperm.slane %v3204_v6, %v5059_v34  ;;  %v3216_v41 = vsel %vm213_vm1, %v3200_v51, %v3215_v39  ;;  %v3046_v9 = vperm.slane %v3040_v30, %v5059_v34  ;;  %v3052_v26 = vsel %vm213_vm1, %v3051_v36, %v3032_v58 }
 0x8c3   :  { %v3068_v8 = vsel %vm213_vm1, %v3067_v4, %v3050_v16  ;;  %v3224_v37 = vperm.slane %v3216_v41, %v5059_v34  ;;  %v3058_v59 = vperm.slane %v3052_v26, %v5059_v34  ;;  %v3070_v42 = vsel %vm213_vm1, %v3062_v63, %v3069_v14 }
 0x8c4   :  { %3745 = vmatpush.msrb.mxu1 %v3068_v8  ;;  %3768 = vmatpush.msra.mxu2 %v3070_v42  ;;  %v3202_v49 = vsel %vm213_vm1, %v3201_v12, %v3183_v35  ;;  %v3214_v43 = vsel %vm213_vm1, %v3213_v13, %v3194_v23  ;;  %v2953_v7 = vrot.slane %v6289_v5, 4  ;;  %v2958_v29 = vsel %vm213_vm1, 0.0, %v2957_v44 }
 0x8c5   :  { %v3229_v58 = vrot.slane %v3224_v37, 4  ;;  %v3063_v62 = vrot.slane %v3058_v59, 4  ;;  %v3208_v2 = vperm.slane %v3202_v49, %v5059_v34  ;;  %v3220_v15 = vperm.slane %v3214_v43, %v5059_v34 }
 0x8c6   :  { %v2954_v22 = vsel %vm213_vm1, 0.0, %v2953_v7  ;;  %v3125_v45 = vsel %vm213_vm1, %v6293_v33, %v6289_v5  ;;  %v3130_v53 = vrot.slane %v6304_v24, 4  ;;  %v3136_v56 = vsel %vm213_vm1, %v6299_v52, %v6297_v25 }
 0x8c7   :  { %v3230_v44 = vsel %vm213_vm1, %v3229_v58, %v3212_v0  ;;  %v3064_v47 = vsel %vm213_vm1, %v3063_v62, %v3046_v9  ;;  %v3225_v54 = vrot.slane %v3220_v15, 4  ;;  %v3129_v40 = vperm.slane %v3125_v45, %v5038_v21 }
 0x8c8   :  { %3836 = vmatpush.msra.mxu1 %v3230_v44  ;;  %3699 = vmatpush.msrb.mxu3 %v3064_v47  ;;  %v3131_v18 = vsel %vm213_vm1, %v3130_v53, %v2954_v22  ;;  %v3140_v16 = vperm.slane %v3136_v56, %v5038_v21  ;;  %v3142_v5 = vsel %vm213_vm1, %v3141_v10, %v2958_v29  ;;  %v3231_v33 = vrot.slane %v3212_v0, 4 }
 0x8c9   :  { %v3226_v25 = vsel %vm213_vm1, %v3225_v54, %v3208_v2  ;;  %v3135_v52 = vperm.slane %v3131_v18, %v5038_v21  ;;  %v3146_v24 = vperm.slane %v3142_v5, %v5038_v21  ;;  %v3149_v35 = vrot.slane %v3129_v40, 4 }
 0x8ca   :  { %3790 = vmatpush.msra.mxu3 %v3226_v25  ;;  %v3161_v55 = vrot.slane %v3140_v16, 4  ;;  %v3232_v28 = vsel %vm213_vm1, %v3224_v37, %v3231_v33  ;;  %v3065_v27 = vrot.slane %v3046_v9, 4  ;;  %v3227_v23 = vrot.slane %v3208_v2, 4 }
 0x8cb   :  { %v3150_v17 = vsel %vm213_vm1, %v3135_v52, %v3149_v35  ;;  %3859 = vmatpush.msrb.mxu2 %v3232_v28  ;;  %v3147_v19 = vrot.slane %v3135_v52, 4  ;;  %v3159_v63 = vrot.slane %v3146_v24, 4 }
 0x8cc   :  { %v3158_v10 = vperm.slane %v3150_v17, %v5059_v34  ;;  %v3162_v51 = vsel %vm213_vm1, %v3146_v24, %v3161_v55  ;;  %v3066_v61 = vsel %vm213_vm1, %v3058_v59, %v3065_v27  ;;  %v3228_v14 = vsel %vm213_vm1, %v3220_v15, %v3227_v23 }
 0x8cd   :  { %v3170_v31 = vperm.slane %v3162_v51, %v5059_v34  ;;  %3722 = vmatpush.msra.mxu0 %v3066_v61  ;;  %v3148_v39 = vsel %vm213_vm1, %v3147_v19, %v3129_v40  ;;  %v3160_v36 = vsel %vm213_vm1, %v3159_v63, %v3140_v16 }
 0x8ce   :  { %v3154_v12 = vperm.slane %v3148_v39, %v5059_v34  ;;  %v3166_v4 = vperm.slane %v3160_v36, %v5059_v34  ;;  %v3177_v6 = vrot.slane %v3158_v10, 4 }
 0x8cf   :  { %3813 = vmatpush.msrb.mxu0 %v3228_v14  ;;  %v3175_v30 = vrot.slane %v3170_v31, 4 }
 0x8d0   :  { %v3171_v13 = vrot.slane %v3166_v4, 4  ;;  %v3178_v0 = vsel %vm213_vm1, %v3170_v31, %v3177_v6  ;;  %v3173_v41 = vrot.slane %v3154_v12, 4 }
 0x8d1   :  { %v3176_v9 = vsel %vm213_vm1, %v3175_v30, %v3158_v10  ;;  %3860 = vmatpush.msrb.mxu2 %v3178_v0 }
 0x8d2   :  { %3837 = vmatpush.msra.mxu1 %v3176_v9  ;;  %v3172_v26 = vsel %vm213_vm1, %v3171_v13, %v3154_v12  ;;  %v3174_v8 = vsel %vm213_vm1, %v3166_v4, %v3173_v41 }
 0x8d3   :  { %3791 = vmatpush.msra.mxu3 %v3172_v26  ;;  %3814 = vmatpush.msrb.mxu0 %v3174_v8 }
 0x8df   :  { %v3540_v37 = vpop.xlane.xlu1 %3539 }
 0x8e0   :  { %4682 = vrcp.f32 %v3540_v37  ;;  %v3609_v29 = vand.u32 2147483648, %v3540_v37  ;;  %v3607_v62 = vand.u32 2147483647, %v3540_v37  ;;  %vm3603_vm14 = vweird.f32 %v3540_v37 }
 0x8e2   :  { %v3610_v45 = vor.u32 1.1754944e-38, %v3609_v29  ;;  %vm3608_vm3 = vcmp.eq.f32.partialorder %v3607_v62, 8.507059e+37 }
 0x8e5   :  { %v3537_v59 = vpop.xlane.xlu2 %3536 }
 0x8e6   :  { %v4683_v42 = vpop.eup %4682  ;;  %4684 = vrcp.f32 %v3537_v59  ;;  %v3592_v54 = vand.u32 2147483647, %v3537_v59  ;;  %v3594_v40 = vand.u32 2147483648, %v3537_v59  ;;  %vm3588_vm5 = vweird.f32 %v3537_v59 }
 0x8e7   :  { %v3599_v49 = vmul.f32 %v4683_v42, %v3540_v37  ;;  %vm3604_vm13 = vweird.f32 %v4683_v42 }
 0x8e8   :  { %v3531_v7 = vpop.xlane.xlu0 %3530  ;;  %vm3605_vm15 = vmor %vm3603_vm14, %vm3604_vm13  ;;  %vm3593_vm7 = vcmp.eq.f32.partialorder %v3592_v54, 8.507059e+37  ;;  %v3595_v24 = vor.u32 1.1754944e-38, %v3594_v40 }
 0x8e9   :  { %v3600_v43 = vsub.f32 1.0, %v3599_v49  ;;  %4686 = vrcp.f32 %v3531_v7  ;;  %v3564_v35 = vand.u32 2147483648, %v3531_v7  ;;  %v3562_v27 = vand.u32 2147483647, %v3531_v7 }
 0x8ea   :  { %vm3558_vm11 = vweird.f32 %v3531_v7 }
 0x8eb   :  { %v3601_v58 = vmul.f32 %v4683_v42, %v3600_v43  ;;  %v3565_v63 = vor.u32 1.1754944e-38, %v3564_v35  ;;  %vm3563_vm13 = vcmp.eq.f32.partialorder %v3562_v27, 8.507059e+37  ;;  %v6485_v43 = vld [vmem:[#allocation10 + $0x70] sm:$0xff] }
 0x8ec   :  { %v4685_v2 = vpop.eup %4684 }
 0x8ed   :  { %v3602_v15 = vadd.f32 %v4683_v42, %v3601_v58  ;;  %v3584_v22 = vmul.f32 %v4685_v2, %v3537_v59  ;;  %vm3589_vm4 = vweird.f32 %v4685_v2 }
 0x8ee   :  { %vm3590_vm6 = vmor %vm3588_vm5, %vm3589_vm4 }
 0x8ef   :  { %v3606_v53 = vsel %vm3605_vm15, %v4683_v42, %v3602_v15  ;;  %v3585_v56 = vsub.f32 1.0, %v3584_v22  ;;  %v4687_v44 = vpop.eup %4686 }
 0x8f0   :  { %v3611_v47 = vsel %vm3608_vm3, %v3610_v45, %v3606_v53  ;;  %v3554_v16 = vmul.f32 %v4687_v44, %v3531_v7  ;;  %v3534_v5 = vpop.xlane.xlu0 %3533  ;;  %vm3559_vm8 = vweird.f32 %v4687_v44 }
 0x8f1   :  { %v3586_v18 = vmul.f32 %v4685_v2, %v3585_v56  ;;  %v3676_v33 = vmul.f32 %v6171_v38, %v3611_v47  ;;  %4688 = vrcp.f32 %v3534_v5  ;;  %vm3560_vm12 = vmor %vm3558_vm11, %vm3559_vm8  ;;  %v3579_v36 = vand.u32 2147483648, %v3534_v5  ;;  %v6488_v56 = vld [vmem:[#allocation10 + $0x50] sm:$0xff] }
 0x8f2   :  { %v3555_v52 = vsub.f32 1.0, %v3554_v16  ;;  %v3577_v4 = vand.u32 2147483647, %v3534_v5  ;;  %vm3573_vm15 = vweird.f32 %v3534_v5 }
 0x8f3   :  { %v3587_v25 = vadd.f32 %v4685_v2, %v3586_v18  ;;  %4479 = vmatmul.msk.f32.vlgmr.msra.gmra.mxu2 %vm1776_vm9, %v3676_v33  ;;  %v3580_v6 = vor.u32 1.1754944e-38, %v3579_v36 }
 0x8f4   :  { %v3556_v28 = vmul.f32 %v4687_v44, %v3555_v52  ;;  %vm3578_vm4 = vcmp.eq.f32.partialorder %v3577_v4, 8.507059e+37 }
 0x8f5   :  { %v3591_v55 = vsel %vm3590_vm6, %v4685_v2, %v3587_v25 }
 0x8f6   :  { %v3596_v23 = vsel %vm3593_vm7, %v3595_v24, %v3591_v55  ;;  %v3557_v17 = vadd.f32 %v4687_v44, %v3556_v28 }
 0x8f7   :  { %v3675_v19 = vmul.f32 %v6175_v32, %v3596_v23  ;;  %v4689_v38 = vpop.eup %4688 }
 0x8f8   :  { %v3561_v10 = vsel %vm3560_vm12, %v4687_v44, %v3557_v17  ;;  %v3569_v51 = vmul.f32 %v4689_v38, %v3534_v5  ;;  %v3543_v31 = vpop.xlane.xlu1 %3542  ;;  %vm3574_vm14 = vweird.f32 %v4689_v38  ;;  %v6492_v5 = vld [vmem:[#allocation10 + $0x40] sm:$0xff] }
 0x8f9   :  { %4478 = vmatmul.msk.f32.vlgmr.msrb.gmra.mxu1 %vm1776_vm9, %v3675_v19  ;;  %v3566_v61 = vsel %vm3563_vm13, %v3565_v63, %v3561_v10  ;;  %4690 = vrcp.f32 %v3543_v31  ;;  %vm3575_vm3 = vmor %vm3573_vm15, %vm3574_vm14  ;;  %v3622_v42 = vand.u32 2147483647, %v3543_v31  ;;  %vm3618_vm6 = vweird.f32 %v3543_v31 }
 0x8fa   :  { %v3570_v39 = vsub.f32 1.0, %v3569_v51  ;;  %v3673_v14 = vmul.f32 %v6179_v48, %v3566_v61  ;;  %v3624_v48 = vand.u32 2147483648, %v3543_v31 }
 0x8fb   :  { %vm3623_vm8 = vcmp.eq.f32.partialorder %v3622_v42, 8.507059e+37 }
 0x8fc   :  { %v3571_v12 = vmul.f32 %v4689_v38, %v3570_v39  ;;  %4476 = vmatmul.msk.f32.vlgmr.msrb.gmra.mxu3 %vm1776_vm9, %v3673_v14  ;;  %v3625_v29 = vor.u32 1.1754944e-38, %v3624_v48 }
 0x8fe   :  { %v3572_v32 = vadd.f32 %v4689_v38, %v3571_v12 }
 0x8ff   :  { %v4691_v30 = vpop.eup %4690 }
 0x900   :  { %v3576_v13 = vsel %vm3575_vm3, %v4689_v38, %v3572_v32  ;;  %v3614_v41 = vmul.f32 %v4691_v30, %v3543_v31  ;;  %v3549_v9 = vpop.xlane.xlu1 %3548  ;;  %vm3619_vm5 = vweird.f32 %v4691_v30 }
 0x901   :  { %v3581_v0 = vsel %vm3578_vm4, %v3580_v6, %v3576_v13  ;;  %v3552_v26 = vpop.xlane.xlu0 %3551  ;;  %4692 = vrcp.f32 %v3549_v9  ;;  %vm3620_vm7 = vmor %vm3618_vm6, %vm3619_vm5  ;;  %v3654_v44 = vand.u32 2147483648, %v3549_v9  ;;  %v3652_v18 = vand.u32 2147483647, %v3549_v9 }
 0x902   :  { %v3615_v8 = vsub.f32 1.0, %v3614_v41  ;;  %4694 = vrcp.f32 %v3552_v26  ;;  %v3674_v37 = vmul.f32 %v6183_v46, %v3581_v0  ;;  %v4717_v46 = vld [vmem:[#allocation10 + $0x60] sm:$0xff]  ;;  %v3669_v16 = vand.u32 2147483648, %v3552_v26 }
 0x903   :  { %v3667_v25 = vand.u32 2147483647, %v3552_v26  ;;  %vm3648_vm13 = vweird.f32 %v3549_v9  ;;  %v3655_v35 = vor.u32 1.1754944e-38, %v3654_v44  ;;  %vm3663_vm15 = vweird.f32 %v3552_v26 }
 0x904   :  { %v3616_v59 = vmul.f32 %v4691_v30, %v3615_v8  ;;  %4477 = vmatmul.msk.f32.vlgmr.msra.gmra.mxu0 %vm1776_vm9, %v3674_v37  ;;  %vm3653_vm3 = vcmp.eq.f32.partialorder %v3652_v18, 8.507059e+37  ;;  %v3670_v28 = vor.u32 1.1754944e-38, %v3669_v16 }
 0x905   :  { %4262 = vmatpush.msra.mxu0 %v6485_v43  ;;  %vm3668_vm5 = vcmp.eq.f32.partialorder %v3667_v25, 8.507059e+37 }
 0x906   :  { %v3617_v49 = vadd.f32 %v4691_v30, %v3616_v59 }
 0x907   :  { %v4693_v7 = vpop.eup %4692  ;;  %4263 = vmatpush.msra.mxu0 %v4717_v46 }
 0x908   :  { %v4695_v58 = vpop.eup %4694  ;;  %v3621_v62 = vsel %vm3620_vm7, %v4691_v30, %v3617_v49  ;;  %v3644_v2 = vmul.f32 %v4693_v7, %v3549_v9  ;;  %vm3649_vm11 = vweird.f32 %v4693_v7 }
 0x909   :  { %v3546_v15 = vpop.xlane.xlu0 %3545  ;;  %v3626_v22 = vsel %vm3623_vm8, %v3625_v29, %v3621_v62  ;;  %v3659_v45 = vmul.f32 %v4695_v58, %v3552_v26  ;;  %4264 = vmatpush.msra.mxu0 %v6488_v56  ;;  %vm3664_vm12 = vweird.f32 %v4695_v58  ;;  %vm3650_vm14 = vmor %vm3648_vm13, %vm3649_vm11 }
 0x90a   :  { %4696 = vrcp.f32 %v3546_v15  ;;  %v3645_v53 = vsub.f32 1.0, %v3644_v2  ;;  %v3677_v54 = vmul.f32 %v6187_v1, %v3626_v22  ;;  %vm3665_vm4 = vmor %vm3663_vm15, %vm3664_vm12  ;;  %v3639_v10 = vand.u32 2147483648, %v3546_v15 }
 0x90b   :  { %v3660_v47 = vsub.f32 1.0, %v3659_v45  ;;  %4265 = vmatpush.msra.mxu0 %v6492_v5  ;;  %v3637_v31 = vand.u32 2147483647, %v3546_v15  ;;  %vm3633_vm7 = vweird.f32 %v3546_v15 }
 0x90c   :  { %v3646_v40 = vmul.f32 %v4693_v7, %v3645_v53  ;;  %4480 = vmatmul.msk.f32.vlgmr.msra.gmra.mxu3 %vm1776_vm9, %v3677_v54  ;;  %v3640_v36 = vor.u32 1.1754944e-38, %v3639_v10 }
 0x90d   :  { %v3661_v33 = vmul.f32 %v4695_v58, %v3660_v47  ;;  %vm3638_vm11 = vcmp.eq.f32.partialorder %v3637_v31, 8.507059e+37 }
 0x90e   :  { %v3647_v52 = vadd.f32 %v4693_v7, %v3646_v40 }
 0x90f   :  { %v3662_v55 = vadd.f32 %v4695_v58, %v3661_v33 }
 0x910   :  { %v4697_v24 = vpop.eup %4696  ;;  %v3651_v1 = vsel %vm3650_vm14, %v4693_v7, %v3647_v52  ;;  %v4606_v7 = vpack.i.bf16 %v6492_v5, %v6488_v56 }
 0x911   :  { %v3629_v27 = vmul.f32 %v4697_v24, %v3546_v15  ;;  %v3656_v23 = vsel %vm3653_vm3, %v3655_v35, %v3651_v1  ;;  %v3666_v17 = vsel %vm3665_vm4, %v4695_v58, %v3662_v55  ;;  %vm3634_vm6 = vweird.f32 %v4697_v24 }
 0x912   :  { %v3671_v19 = vsel %vm3668_vm5, %v3670_v28, %v3666_v17  ;;  %v3679_v63 = vmul.f32 %v6197_v50, %v3656_v23  ;;  %vm3635_vm8 = vmor %vm3633_vm7, %vm3634_vm6  ;;  %v4601_v50 = vpack.i.bf16 %v4717_v46, %v6485_v43  ;;  %4607 = vrot.lane.b32.xlu2 %v4606_v7, %s4915_s8  ;;  %vm4276_vm7 = vcmask 523264  }
 0x913   :  { %v3630_v38 = vsub.f32 1.0, %v3629_v27  ;;  %v3680_v51 = vmul.f32 %v6199_v11, %v3671_v19 }
 0x914   :  { %4482 = vmatmul.msk.f32.vlgmr.msra.gmra.mxu1 %vm1776_vm9, %v3679_v63  ;;  %4602 = vrot.lane.b32.xlu1 %v4601_v50, %s4915_s8 }
 0x915   :  { %v3631_v61 = vmul.f32 %v4697_v24, %v3630_v38  ;;  %4483 = vmatmul.msk.f32.vlgmr.msrb.gmra.mxu2 %vm1776_vm9, %v3680_v51 }
 0x917   :  { %v3632_v39 = vadd.f32 %v4697_v24, %v3631_v61 }
 0x919   :  { %v3636_v14 = vsel %vm3635_vm8, %v4697_v24, %v3632_v39 }
 0x91a   :  { %v3641_v12 = vsel %vm3638_vm11, %v3640_v36, %v3636_v14 }
 0x91b   :  { %v3678_v4 = vmul.f32 %v6212_v57, %v3641_v12 }
 0x91d   :  { %4481 = vmatmul.msk.f32.vlgmr.msrb.gmra.mxu0 %vm1776_vm9, %v3678_v4 }
 0x976   :  { %v3747_v11 = vpop.f32.mrf.mxu1  ;;  %v3770_v6 = vpop.f32.mrf.mxu2 }
 0x977   :  { %v3865_v32 = vrot.slane %v3747_v11, 4  ;;  %v3877_v41 = vrot.slane %v3770_v6, 4 }
 0x97f   :  { %v3701_v30 = vpop.f32.mrf.mxu3 }
 0x980   :  { %v3866_v13 = vsel %vm213_vm1, %v3865_v32, %v3701_v30  ;;  %v3867_v0 = vrot.slane %v3701_v30, 4 }
 0x981   :  { %v3872_v9 = vperm.slane %v3866_v13, %v5038_v21  ;;  %v3724_v8 = vpop.f32.mrf.mxu0 }
 0x982   :  { %v3868_v26 = vsel %vm213_vm1, %v3747_v11, %v3867_v0  ;;  %v3878_v37 = vsel %vm213_vm1, %v3877_v41, %v3724_v8  ;;  %v3879_v59 = vrot.slane %v3724_v8, 4 }
 0x983   :  { %v3876_v57 = vperm.slane %v3868_v26, %v5038_v21  ;;  %v3891_v48 = vrot.slane %v3872_v9, 4  ;;  %v3884_v42 = vperm.slane %v3878_v37, %v5038_v21 }
 0x984   :  { %v3880_v43 = vsel %vm213_vm1, %v3770_v6, %v3879_v59 }
 0x985   :  { %v3903_v49 = vrot.slane %v3876_v57, 4  ;;  %v3888_v29 = vperm.slane %v3880_v43, %v5038_v21  ;;  %v3889_v58 = vrot.slane %v3884_v42, 4  ;;  %v3892_v62 = vsel %vm213_vm1, %v3884_v42, %v3891_v48 }
 0x986   :  { %v3900_v2 = vperm.slane %v3892_v62, %v5059_v34 }
 0x987   :  { %v3890_v15 = vsel %vm213_vm1, %v3889_v58, %v3872_v9  ;;  %v3901_v46 = vrot.slane %v3888_v29, 4  ;;  %v3904_v22 = vsel %vm213_vm1, %v3888_v29, %v3903_v49 }
 0x988   :  { %v3896_v45 = vperm.slane %v3890_v15, %v5059_v34  ;;  %v3912_v53 = vperm.slane %v3904_v22, %v5059_v34  ;;  %v3915_v44 = vrot.slane %v3900_v2, 4 }
 0x989   :  { %v3902_v56 = vsel %vm213_vm1, %v3901_v46, %v3876_v57 }
 0x98a   :  { %v3908_v47 = vperm.slane %v3902_v56, %v5059_v34  ;;  %v3913_v54 = vrot.slane %v3896_v45, 4  ;;  %v3916_v40 = vsel %vm213_vm1, 0.0, %v3915_v44  ;;  %v3919_v18 = vrot.slane %v3912_v53, 4 }
 0x98b   :  { %v3977_v16 = vsel %vm213_vm1, %v3915_v44, %v3896_v45  ;;  %v3982_v5 = vrot.slane %v3916_v40, 4 }
 0x98c   :  { %v3914_v33 = vsel %vm213_vm1, 0.0, %v3913_v54  ;;  %v3917_v25 = vrot.slane %v3908_v47, 4  ;;  %v3920_v52 = vsel %vm213_vm1, 0.0, %v3919_v18  ;;  %v3981_v24 = vperm.slane %v3977_v16, %v5038_v21 }
 0x98d   :  { %v3993_v35 = vrot.slane %v3920_v52, 4  ;;  %v3983_v55 = vsel %vm213_vm1, %v3982_v5, %v3914_v33  ;;  %v3988_v1 = vsel %vm213_vm1, %v3919_v18, %v3908_v47 }
 0x98e   :  { %v3918_v28 = vsel %vm213_vm1, 0.0, %v3917_v25  ;;  %v3987_v27 = vperm.slane %v3983_v55, %v5038_v21  ;;  %v3992_v23 = vperm.slane %v3988_v1, %v5038_v21  ;;  %v4001_v17 = vrot.slane %v3981_v24, 4 }
 0x98f   :  { %v3793_v19 = vpop.f32.mrf.mxu3  ;;  %v3994_v38 = vsel %vm213_vm1, %v3993_v35, %v3918_v28 }
 0x990   :  { %v3998_v10 = vperm.slane %v3994_v38, %v5038_v21  ;;  %v4002_v51 = vsel %vm213_vm1, %v3987_v27, %v4001_v17  ;;  %v4013_v61 = vrot.slane %v3992_v23, 4  ;;  %v3923_v31 = vrot.slane %v3793_v19, 4 }
 0x991   :  { %v3839_v63 = vpop.f32.mrf.mxu1  ;;  %v4010_v36 = vperm.slane %v4002_v51, %v5059_v34  ;;  %v3999_v14 = vrot.slane %v3987_v27, 4 }
 0x992   :  { %v3921_v39 = vrot.slane %v3839_v63, 4  ;;  %v4014_v12 = vsel %vm213_vm1, %v3998_v10, %v4013_v61  ;;  %v4011_v4 = vrot.slane %v3998_v10, 4  ;;  %v3924_v13 = vsel %vm213_vm1, %v3839_v63, %v3923_v31 }
 0x993   :  { %v4022_v50 = vperm.slane %v4014_v12, %v5059_v34  ;;  %v4029_v11 = vrot.slane %v4010_v36, 4  ;;  %v4000_v6 = vsel %vm213_vm1, %v3999_v14, %v3981_v24  ;;  %v3932_v37 = vperm.slane %v3924_v13, %v5038_v21 }
 0x994   :  { %v3922_v32 = vsel %vm213_vm1, %v3921_v39, %v3793_v19  ;;  %v4012_v30 = vsel %vm213_vm1, %v4011_v4, %v3992_v23  ;;  %v4006_v41 = vperm.slane %v4000_v6, %v5059_v34 }
 0x995   :  { %v4030_v0 = vsel %vm213_vm1, %v4022_v50, %v4029_v11  ;;  %v4018_v9 = vperm.slane %v4012_v30, %v5059_v34  ;;  %v3928_v26 = vperm.slane %v3922_v32, %v5038_v21  ;;  %v3959_v15 = vrot.slane %v3932_v37, 4 }
 0x996   :  { %4103 = vrot.lane.b32.xlu1 %v4030_v0, %s4916_s9  ;;  %v4025_v48 = vrot.slane %v4006_v41, 4  ;;  %v4027_v53 = vrot.slane %v4022_v50, 4 }
 0x997   :  { %v4023_v57 = vrot.slane %v4018_v9, 4  ;;  %v3947_v29 = vrot.slane %v3928_v26, 4 }
 0x998   :  { %v3862_v8 = vpop.f32.mrf.mxu2  ;;  %v4026_v49 = vsel %vm213_vm1, %v4018_v9, %v4025_v48  ;;  %v4028_v52 = vsel %vm213_vm1, %v4027_v53, %v4010_v36 }
 0x999   :  { %v3933_v59 = vrot.slane %v3862_v8, 4  ;;  %4087 = vrot.lane.b32.xlu0 %v4026_v49, %s4900_s30  ;;  %v6555_v2 = vsel %vm213_vm1, %v4023_v57, %v4006_v41 }
 0x99a   :  { %v3816_v42 = vpop.f32.mrf.mxu0 }
 0x99b   :  { %v3935_v43 = vrot.slane %v3816_v42, 4  ;;  %v3934_v7 = vsel %vm213_vm1, %v3933_v59, %v3816_v42  ;;  %v4603_v42 = vpop.permute.xlu1 %4602 }
 0x99c   :  { %v3940_v62 = vperm.slane %v3934_v7, %v5038_v21  ;;  %v4605_v49 = vunpack.i.h.bf16 %v4603_v42 }
 0x99d   :  { %v3936_v58 = vsel %vm213_vm1, %v3862_v8, %v3935_v43  ;;  %v4604_v43 = vunpack.i.l.bf16 %v4603_v42 }
 0x99e   :  { %v3944_v46 = vperm.slane %v3936_v58, %v5038_v21  ;;  %v3945_v22 = vrot.slane %v3940_v62, 4  ;;  %v3948_v45 = vsel %vm213_vm1, %v3940_v62, %v3947_v29 }
 0x99f   :  { %v3956_v44 = vperm.slane %v3948_v45, %v5059_v34  ;;  %4146 = vmatpush.msrb.mxu3 %v4604_v43 }
 0x9a0   :  { %v3957_v56 = vrot.slane %v3944_v46, 4  ;;  %v3960_v47 = vsel %vm213_vm1, %v3944_v46, %v3959_v15  ;;  %v3946_v54 = vsel %vm213_vm1, %v3945_v22, %v3928_v26 }
 0x9a1   :  { %v3968_v40 = vperm.slane %v3960_v47, %v5059_v34  ;;  %v3952_v18 = vperm.slane %v3946_v54, %v5059_v34  ;;  %v3971_v5 = vrot.slane %v3956_v44, 4  ;;  %4095 = vrot.lane.b32.xlu0 %v4028_v52, %s4906_s24  ;;  %4147 = vmatpush.msrb.mxu3 %v4605_v49  ;;  %v140_v49 = vld [vmem:[#allocation10 + $0x48] sm:$0xff] }
 0x9a2   :  { %v3958_v16 = vsel %vm213_vm1, %v3957_v56, %v3932_v37 }
 0x9a3   :  { %v3964_v33 = vperm.slane %v3958_v16, %v5059_v34  ;;  %v3975_v25 = vrot.slane %v3968_v40, 4  ;;  %v3969_v24 = vrot.slane %v3952_v18, 4  ;;  %v3972_v35 = vsel %vm213_vm1, 0.0, %v3971_v5 }
 0x9a4   :  { %v4031_v55 = vsel %vm213_vm1, %v3971_v5, %v3952_v18  ;;  %v4036_v23 = vrot.slane %v3972_v35, 4 }
 0x9a5   :  { %v3973_v1 = vrot.slane %v3964_v33, 4  ;;  %v3976_v28 = vsel %vm213_vm1, 0.0, %v3975_v25  ;;  %v4035_v27 = vperm.slane %v4031_v55, %v5038_v21  ;;  %v3970_v17 = vsel %vm213_vm1, 0.0, %v3969_v24 }
 0x9a6   :  { %v4047_v19 = vrot.slane %v3976_v28, 4  ;;  %v4042_v38 = vsel %vm213_vm1, %v3975_v25, %v3964_v33  ;;  %v4037_v10 = vsel %vm213_vm1, %v4036_v23, %v3970_v17 }
 0x9a7   :  { %v3974_v63 = vsel %vm213_vm1, 0.0, %v3973_v1  ;;  %v4046_v51 = vperm.slane %v4042_v38, %v5038_v21  ;;  %v4055_v61 = vrot.slane %v4035_v27, 4  ;;  %v4041_v31 = vperm.slane %v4037_v10, %v5038_v21 }
 0x9a8   :  { %v4048_v39 = vsel %vm213_vm1, %v4047_v19, %v3974_v63 }
 0x9a9   :  { %v4052_v36 = vperm.slane %v4048_v39, %v5038_v21  ;;  %v4067_v14 = vrot.slane %v4046_v51, 4  ;;  %v4056_v12 = vsel %vm213_vm1, %v4041_v31, %v4055_v61  ;;  %v4053_v4 = vrot.slane %v4041_v31, 4 }
 0x9aa   :  { %v4064_v50 = vperm.slane %v4056_v12, %v5059_v34 }
 0x9ab   :  { %v4068_v11 = vsel %vm213_vm1, %v4052_v36, %v4067_v14  ;;  %v4065_v32 = vrot.slane %v4052_v36, 4  ;;  %v4054_v30 = vsel %vm213_vm1, %v4053_v4, %v4035_v27 }
 0x9ac   :  { %v4076_v6 = vperm.slane %v4068_v11, %v5059_v34  ;;  %v4083_v13 = vrot.slane %v4064_v50, 4  ;;  %v4060_v0 = vperm.slane %v4054_v30, %v5059_v34 }
 0x9ad   :  { %v4066_v41 = vsel %vm213_vm1, %v4065_v32, %v4046_v51 }
 0x9ae   :  { %v4081_v9 = vrot.slane %v4076_v6, 4  ;;  %v4072_v21 = vperm.slane %v4066_v41, %v5059_v34  ;;  %v4084_v26 = vsel %vm213_vm1, %v4076_v6, %v4083_v13  ;;  %v4079_v8 = vrot.slane %v4060_v0, 4  ;;  %v4608_v34 = vpop.permute.xlu2 %4607 }
 0x9af   :  { %4105 = vrot.lane.b32.xlu1 %v4084_v26, %s4916_s9  ;;  %v4609_v7 = vunpack.i.l.bf16 %v4608_v34  ;;  %v4610_v29 = vunpack.i.h.bf16 %v4608_v34  ;;  %v143_v26 = vld [vmem:[#allocation10 + $0x78] sm:$0xff] }
 0x9b0   :  { %v4082_v57 = vsel %vm213_vm1, %v4081_v9, %v4064_v50  ;;  %v4077_v48 = vrot.slane %v4072_v21, 4  ;;  %v4080_v37 = vsel %vm213_vm1, %v4072_v21, %v4079_v8  ;;  %v142_v8 = vld [vmem:[#allocation10 + $0x68] sm:$0xff]  ;;  %4291 = vmatpush.msrb.mxu1 %v143_v26 }
 0x9b1   :  { %4097 = vrot.lane.b32.xlu0 %v4082_v57, %s4906_s24  ;;  %4089 = vrot.lane.b32.xlu2 %v4080_v37, %s4900_s30  ;;  %v141_v37 = vld [vmem:[#allocation10 + $0x58] sm:$0xff] }
 0x9b2   :  { %v4078_v59 = vsel %vm213_vm1, %v4077_v48, %v4060_v0  ;;  %4148 = vmatpush.msrb.mxu3 %v4609_v7  ;;  %4292 = vmatpush.msrb.mxu1 %v142_v8 }
 0x9b4   :  { %4149 = vmatpush.msrb.mxu3 %v4610_v29  ;;  %4293 = vmatpush.msrb.mxu1 %v141_v37 }
 0x9b6   :  { %4294 = vmatpush.msrb.mxu1 %v140_v49 }
 0xa08   :  { %v4104_v46 = vpop.permute.xlu1 %4103 }
 0xa0b   :  { %v4088_v58 = vpop.permute.xlu0 %4087  ;;  %v4090_v53 = vpop.permute.xlu2 %4089 }
 0xa0c   :  { %v4109_v62 = vsel %vm921_vm2, %v6555_v2, %v4088_v58  ;;  %v4110_v44 = vsel %vm921_vm2, %v4078_v59, %v4090_v53  ;;  %v4617_v2 = vld [vmem:[#allocation11 + $0x4] ss:$0 sm:$0xff]  ;;  %v139_v58 = vld [vmem:[#allocation10 + $0x38] sm:$0xff] }
 0xa0d   :  { %4295 = vmatpush.msrb.mxu1 %v139_v58 }
 0xa13   :  { %v4096_v15 = vpop.permute.xlu0 %4095 }
 0xa14   :  { %v4111_v22 = vsel %vm1776_vm9, %v4109_v62, %v4096_v15 }
 0xa15   :  { %v4113_v45 = vsel %vm1779_vm10, %v4111_v22, %v4104_v46 }
 0xa16   :  { %4484 = vmatmul.msk.f32.vlgmr.msrb.gmra.mxu3 %vm162_vm0, %v4113_v45 }
 0xa21   :  { %v4106_v47 = vpop.permute.xlu1 %4105 }
 0xa23   :  { %v4098_v56 = vpop.permute.xlu0 %4097 }
 0xa24   :  { %v4112_v54 = vsel %vm1776_vm9, %v4110_v44, %v4098_v56  ;;  %v4618_v56 = vld [vmem:[#allocation11 + $0x9] ss:$0 sm:$0xff] }
 0xa25   :  { %v4114_v40 = vsel %vm1779_vm10, %v4112_v54, %v4106_v47 }
 0xa26   :  { %4485 = vmatmul.msk.f32.gmra.mxu3 %vm162_vm0, %v4114_v40  ;;  %v4619_v40 = vld [vmem:[#allocation11 + $0xa] ss:$0 sm:$0xff] }
 0xa99   :  { %v4151_v18 = vpop.f32.mrf.mxu3 }
 0xa9a   :  { %v4152_v16 = vadd.f32 %v4617_v2, %v4151_v18 }
 0xa9c   :  { %v4157_v5 = vadd.f32 %v4152_v16, %v5613_v20 }
 0xa9e   :  { %v4159_v33 = vsel %vm162_vm0, %v4157_v5, 0.0 }
 0xa9f   :  { %4160 = vadd.xlane.f32.xlu2 %v4159_v33 }
 0xaa9   :  { %v4154_v25 = vpop.f32.mrf.mxu3 }
 0xaaa   :  { %v4155_v52 = vadd.f32 %v4617_v2, %v4154_v25 }
 0xaac   :  { %v4158_v24 = vadd.f32 %v4155_v52, %v5619_v3 }
 0xaae   :  { %v4162_v35 = vsel %vm162_vm0, %v4158_v24, 0.0 }
 0xaaf   :  { %4163 = vadd.xlane.f32.xlu0 %v4162_v35 }
 0xb12   :  { %v4161_v55 = vpop.xlane.xlu2 %4160 }
 0xb13   :  { %v4165_v1 = vmul.f32 %v4161_v55, %v5589_v60 }
 0xb15   :  { %v6609_v28 = vsub.f32 %v4157_v5, %v4165_v1 }
 0xb17   :  { %v4169_v27 = vmul.f32 %v6609_v28, %v6609_v28 }
 0xb19   :  { %v4171_v20 = vsel %vm162_vm0, %v4169_v27, 0.0 }
 0xb1a   :  { %4172 = vadd.xlane.f32.xlu1 %v4171_v20 }
 0xb22   :  { %v4164_v23 = vpop.xlane.xlu0 %4163 }
 0xb23   :  { %v4166_v17 = vmul.f32 %v4164_v23, %v5589_v60 }
 0xb25   :  { %v6615_v19 = vsub.f32 %v4158_v24, %v4166_v17  ;;  %v138_v17 = vld [vmem:[#allocation10 + $0x28] sm:$0xff] }
 0xb26   :  { %4296 = vmatpush.msrb.mxu1 %v138_v17  ;;  %v4622_v17 = vld [vmem:[#allocation11 + $0xb] ss:$0 sm:$0xff] }
 0xb27   :  { %v4170_v3 = vmul.f32 %v6615_v19, %v6615_v19 }
 0xb29   :  { %v4174_v38 = vsel %vm162_vm0, %v4170_v3, 0.0  ;;  %v137_v3 = vld [vmem:[#allocation10 + $0x18] sm:$0xff] }
 0xb2a   :  { %4175 = vadd.xlane.f32.xlu2 %v4174_v38  ;;  %v136_v38 = vld [vmem:[#allocation10 + $0x8] sm:$0xff]  ;;  %4297 = vmatpush.msrb.mxu1 %v137_v3 }
 0xb2c   :  { %4298 = vmatpush.msrb.mxu1 %v136_v38 }
 0xb8d   :  { %v4173_v63 = vpop.xlane.xlu1 %4172 }
 0xb8e   :  { %v4177_v10 = vmul.f32 %v4173_v63, %v5589_v60  ;;  %v4620_v63 = vld [vmem:[#allocation11 + $0x5] ss:$0 sm:$0xff] }
 0xb90   :  { %v4179_v51 = vadd.f32 1e-05, %v4177_v10 }
 0xb92   :  { %4698 = vrsqrt.f32 %v4179_v51  ;;  %vm4188_vm1 = vcmp.eq.f32.partialorder %v4179_v51, inf  ;;  %v4191_v6 = vand.u32 2147483648, %v4179_v51  ;;  %vm4190_vm2 = vcmp.eq.f32.partialorder %v4179_v51, 0.0 }
 0xb98   :  { %v4699_v61 = vpop.eup %4698 }
 0xb99   :  { %v4182_v31 = vmul.f32 %v4699_v61, %v4179_v51 }
 0xb9b   :  { %v4183_v36 = vmul.f32 %v4699_v61, %v4182_v31 }
 0xb9d   :  { %v4176_v39 = vpop.xlane.xlu2 %4175  ;;  %v4184_v12 = vmul.f32 0.5, %v4183_v36 }
 0xb9e   :  { %v4178_v14 = vmul.f32 %v4176_v39, %v5589_v60 }
 0xb9f   :  { %v4185_v50 = vsub.f32 1.5, %v4184_v12 }
 0xba0   :  { %v4180_v4 = vadd.f32 1e-05, %v4178_v14 }
 0xba1   :  { %v4186_v11 = vmul.f32 %v4699_v61, %v4185_v50 }
 0xba2   :  { %4700 = vrsqrt.f32 %v4180_v4  ;;  %vm4200_vm9 = vcmp.eq.f32.partialorder %v4180_v4, inf  ;;  %vm4202_vm10 = vcmp.eq.f32.partialorder %v4180_v4, 0.0  ;;  %v4203_v29 = vand.u32 2147483648, %v4180_v4 }
 0xba3   :  { %v4187_v32 = vmul.f32 %v4186_v11, %v4179_v51 }
 0xba5   :  { %v4189_v13 = vsel %vm4188_vm1, %v4179_v51, %v4187_v32 }
 0xba6   :  { %v4192_v41 = vsel %vm4190_vm2, %v4191_v6, %v4189_v13 }
 0xba7   :  { %4702 = vrcp.f32 %v4192_v41  ;;  %v4216_v7 = vand.u32 2147483648, %v4192_v41  ;;  %v4214_v15 = vand.u32 2147483647, %v4192_v41  ;;  %vm4210_vm13 = vweird.f32 %v4192_v41 }
 0xba8   :  { %v4701_v30 = vpop.eup %4700 }
 0xba9   :  { %v4194_v0 = vmul.f32 %v4701_v30, %v4180_v4  ;;  %v4217_v53 = vor.u32 1.1754944e-38, %v4216_v7  ;;  %vm4215_vm15 = vcmp.eq.f32.partialorder %v4214_v15, 8.507059e+37 }
 0xbab   :  { %v4195_v9 = vmul.f32 %v4701_v30, %v4194_v0 }
 0xbad   :  { %v4196_v21 = vmul.f32 0.5, %v4195_v9  ;;  %v4703_v48 = vpop.eup %4702 }
 0xbae   :  { %v4206_v59 = vmul.f32 %v4703_v48, %v4192_v41  ;;  %vm4211_vm12 = vweird.f32 %v4703_v48 }
 0xbaf   :  { %v4197_v57 = vsub.f32 1.5, %v4196_v21  ;;  %vm4212_vm14 = vmor %vm4210_vm13, %vm4211_vm12 }
 0xbb0   :  { %v4207_v43 = vsub.f32 1.0, %v4206_v59 }
 0xbb1   :  { %v4198_v42 = vmul.f32 %v4701_v30, %v4197_v57 }
 0xbb2   :  { %v4208_v62 = vmul.f32 %v4703_v48, %v4207_v43 }
 0xbb3   :  { %v4199_v34 = vmul.f32 %v4198_v42, %v4180_v4 }
 0xbb4   :  { %v4209_v45 = vadd.f32 %v4703_v48, %v4208_v62 }
 0xbb5   :  { %v4201_v46 = vsel %vm4200_vm9, %v4180_v4, %v4199_v34 }
 0xbb6   :  { %v4204_v22 = vsel %vm4202_vm10, %v4203_v29, %v4201_v46  ;;  %v4213_v44 = vsel %vm4212_vm14, %v4703_v48, %v4209_v45 }
 0xbb7   :  { %4704 = vrcp.f32 %v4204_v22  ;;  %v4218_v47 = vsel %vm4215_vm15, %v4217_v53, %v4213_v44  ;;  %v4231_v25 = vand.u32 2147483648, %v4204_v22  ;;  %v4229_v24 = vand.u32 2147483647, %v4204_v22 }
 0xbb8   :  { %v4235_v54 = vmul.f32 %v4218_v47, %v6609_v28  ;;  %vm4225_vm4 = vweird.f32 %v4204_v22 }
 0xbb9   :  { %v4232_v55 = vor.u32 1.1754944e-38, %v4231_v25  ;;  %vm4230_vm6 = vcmp.eq.f32.partialorder %v4229_v24, 8.507059e+37 }
 0xbba   :  { %v4238_v18 = vmul.f32 %v4618_v56, %v4235_v54 }
 0xbbc   :  { %v4241_v5 = vadd.f32 %v4619_v40, %v4238_v18 }
 0xbbd   :  { %v4705_v2 = vpop.eup %4704 }
 0xbbe   :  { %v4221_v16 = vmul.f32 %v4705_v2, %v4204_v22  ;;  %4486 = vmatmul.msk.f32.vlgmr.msra.gmra.mxu0 %vm162_vm0, %v4241_v5  ;;  %vm4226_vm3 = vweird.f32 %v4705_v2 }
 0xbbf   :  { %vm4227_vm5 = vmor %vm4225_vm4, %vm4226_vm3 }
 0xbc0   :  { %v4222_v33 = vsub.f32 1.0, %v4221_v16 }
 0xbc2   :  { %v4223_v52 = vmul.f32 %v4705_v2, %v4222_v33 }
 0xbc4   :  { %v4224_v35 = vadd.f32 %v4705_v2, %v4223_v52 }
 0xbc6   :  { %v4228_v1 = vsel %vm4227_vm5, %v4705_v2, %v4224_v35 }
 0xbc7   :  { %v4233_v27 = vsel %vm4230_vm6, %v4232_v55, %v4228_v1 }
 0xbc8   :  { %v4236_v28 = vmul.f32 %v4233_v27, %v6615_v19  ;;  %v4621_v19 = vld [vmem:[#allocation11 + $0x6] ss:$0 sm:$0xff] }
 0xbca   :  { %v4239_v20 = vmul.f32 %v4618_v56, %v4236_v28 }
 0xbcc   :  { %v4242_v23 = vadd.f32 %v4619_v40, %v4239_v20 }
 0xbce   :  { %4487 = vmatmul.msk.f32.gmra.mxu0 %vm162_vm0, %v4242_v23 }
 0xc3b   :  { %v4267_v10 = vpop.f32.mrf.mxu0 }
 0xc3c   :  { %v4268_v51 = vadd.f32 %v4620_v63, %v4267_v10 }
 0xc3e   :  { %v4273_v61 = vmax.f32 %v4268_v51, 0.0 }
 0xc40   :  { %4488 = vmatmul.msk.f32.vlgmr.msrb.gmra.mxu1 %vm4276_vm7, %v4273_v61 }
 0xc4b   :  { %v4270_v31 = vpop.f32.mrf.mxu0 }
 0xc4c   :  { %v4271_v39 = vadd.f32 %v4620_v63, %v4270_v31  ;;  %v4623_v63 = vld [vmem:[#allocation11 + $0xc] ss:$0 sm:$0xff] }
 0xc4e   :  { %v4274_v36 = vmax.f32 %v4271_v39, 0.0 }
 0xc50   :  { %4489 = vmatmul.msk.f32.gmra.mxu1 %vm4276_vm7, %v4274_v36 }
 0xcbd   :  { %v4300_v14 = vpop.f32.mrf.mxu1 }
 0xcbe   :  { %v4301_v12 = vadd.f32 %v4621_v19, %v4300_v14 }
 0xcc0   :  { %v4306_v4 = vadd.f32 %v4301_v12, %v4241_v5 }
 0xcc2   :  { %v4308_v50 = vsel %vm162_vm0, %v4306_v4, 0.0 }
 0xcc3   :  { %4309 = vadd.xlane.f32.xlu0 %v4308_v50 }
 0xccd   :  { %v4303_v11 = vpop.f32.mrf.mxu1 }
 0xcce   :  { %v4304_v32 = vadd.f32 %v4621_v19, %v4303_v11 }
 0xcd0   :  { %v4307_v6 = vadd.f32 %v4304_v32, %v4242_v23 }
 0xcd2   :  { %v4311_v30 = vsel %vm162_vm0, %v4307_v6, 0.0 }
 0xcd3   :  { %4312 = vadd.xlane.f32.xlu1 %v4311_v30 }
 0xd36   :  { %v4310_v13 = vpop.xlane.xlu0 %4309 }
 0xd37   :  { %v4314_v0 = vmul.f32 %v4310_v13, %v5589_v60 }
 0xd39   :  { %v4316_v41 = vsub.f32 %v4306_v4, %v4314_v0 }
 0xd3b   :  { %v4318_v9 = vmul.f32 %v4316_v41, %v4316_v41 }
 0xd3d   :  { %v4320_v21 = vsel %vm162_vm0, %v4318_v9, 0.0 }
 0xd3e   :  { %4321 = vadd.xlane.f32.xlu2 %v4320_v21 }
 0xd46   :  { %v4313_v26 = vpop.xlane.xlu1 %4312 }
 0xd47   :  { %v4315_v8 = vmul.f32 %v4313_v26, %v5589_v60 }
 0xd49   :  { %v6631_v57 = vsub.f32 %v4307_v6, %v4315_v8 }
 0xd4b   :  { %v4319_v48 = vmul.f32 %v6631_v57, %v6631_v57 }
 0xd4d   :  { %v4323_v37 = vsel %vm162_vm0, %v4319_v48, 0.0 }
 0xd4e   :  { %4324 = vadd.xlane.f32.xlu0 %v4323_v37 }
 0xdb1   :  { %v4322_v59 = vpop.xlane.xlu2 %4321 }
 0xdb2   :  { %v4326_v42 = vmul.f32 %v4322_v59, %v5589_v60 }
 0xdb4   :  { %v4328_v49 = vadd.f32 1e-05, %v4326_v42 }
 0xdb6   :  { %4706 = vrsqrt.f32 %v4328_v49  ;;  %vm4337_vm8 = vcmp.eq.f32.partialorder %v4328_v49, inf  ;;  %v4340_v53 = vand.u32 2147483648, %v4328_v49  ;;  %vm4339_vm11 = vcmp.eq.f32.partialorder %v4328_v49, 0.0 }
 0xdbc   :  { %v4707_v43 = vpop.eup %4706 }
 0xdbd   :  { %v4331_v34 = vmul.f32 %v4707_v43, %v4328_v49 }
 0xdbf   :  { %v4332_v29 = vmul.f32 %v4707_v43, %v4331_v34 }
 0xdc1   :  { %v4325_v7 = vpop.xlane.xlu0 %4324  ;;  %v4333_v62 = vmul.f32 0.5, %v4332_v29 }
 0xdc2   :  { %v4327_v58 = vmul.f32 %v4325_v7, %v5589_v60 }
 0xdc3   :  { %v4334_v46 = vsub.f32 1.5, %v4333_v62 }
 0xdc4   :  { %v4329_v15 = vadd.f32 1e-05, %v4327_v58 }
 0xdc5   :  { %v4335_v22 = vmul.f32 %v4707_v43, %v4334_v46 }
 0xdc6   :  { %4708 = vrsqrt.f32 %v4329_v15  ;;  %vm4349_vm1 = vcmp.eq.f32.partialorder %v4329_v15, inf  ;;  %v4352_v52 = vand.u32 2147483648, %v4329_v15  ;;  %vm4351_vm2 = vcmp.eq.f32.partialorder %v4329_v15, 0.0 }
 0xdc7   :  { %v4336_v45 = vmul.f32 %v4335_v22, %v4328_v49 }
 0xdc9   :  { %v4338_v56 = vsel %vm4337_vm8, %v4328_v49, %v4336_v45 }
 0xdca   :  { %v4341_v54 = vsel %vm4339_vm11, %v4340_v53, %v4338_v56 }
 0xdcb   :  { %4710 = vrcp.f32 %v4341_v54  ;;  %v4365_v24 = vand.u32 2147483648, %v4341_v54  ;;  %v4363_v1 = vand.u32 2147483647, %v4341_v54  ;;  %vm4359_vm10 = vweird.f32 %v4341_v54 }
 0xdcc   :  { %v4709_v44 = vpop.eup %4708 }
 0xdcd   :  { %v4343_v47 = vmul.f32 %v4709_v44, %v4329_v15  ;;  %v4366_v20 = vor.u32 1.1754944e-38, %v4365_v24  ;;  %vm4364_vm13 = vcmp.eq.f32.partialorder %v4363_v1, 8.507059e+37 }
 0xdcf   :  { %v4344_v40 = vmul.f32 %v4709_v44, %v4343_v47 }
 0xdd1   :  { %v4345_v2 = vmul.f32 0.5, %v4344_v40  ;;  %v4711_v16 = vpop.eup %4710 }
 0xdd2   :  { %v4355_v60 = vmul.f32 %v4711_v16, %v4341_v54  ;;  %vm4360_vm9 = vweird.f32 %v4711_v16 }
 0xdd3   :  { %v4346_v18 = vsub.f32 1.5, %v4345_v2  ;;  %vm4361_vm12 = vmor %vm4359_vm10, %vm4360_vm9 }
 0xdd4   :  { %v4356_v25 = vsub.f32 1.0, %v4355_v60 }
 0xdd5   :  { %v4347_v5 = vmul.f32 %v4709_v44, %v4346_v18 }
 0xdd6   :  { %v4357_v55 = vmul.f32 %v4711_v16, %v4356_v25 }
 0xdd7   :  { %v4348_v33 = vmul.f32 %v4347_v5, %v4329_v15 }
 0xdd8   :  { %v4358_v28 = vadd.f32 %v4711_v16, %v4357_v55 }
 0xdd9   :  { %v4350_v35 = vsel %vm4349_vm1, %v4329_v15, %v4348_v33 }
 0xdda   :  { %v4353_v27 = vsel %vm4351_vm2, %v4352_v52, %v4350_v35  ;;  %v4362_v23 = vsel %vm4361_vm12, %v4711_v16, %v4358_v28 }
 0xddb   :  { %4712 = vrcp.f32 %v4353_v27  ;;  %v4367_v3 = vsel %vm4364_vm13, %v4366_v20, %v4362_v23  ;;  %v4380_v36 = vand.u32 2147483648, %v4353_v27  ;;  %v4378_v12 = vand.u32 2147483647, %v4353_v27 }
 0xddc   :  { %v4384_v38 = vmul.f32 %v4367_v3, %v4316_v41  ;;  %vm4374_vm15 = vweird.f32 %v4353_v27 }
 0xddd   :  { %v4381_v50 = vor.u32 1.1754944e-38, %v4380_v36  ;;  %vm4379_vm4 = vcmp.eq.f32.partialorder %v4378_v12, 8.507059e+37 }
 0xdde   :  { %v4387_v51 = vmul.f32 %v4622_v17, %v4384_v38 }
 0xde0   :  { %v4390_v31 = vadd.f32 %v4623_v63, %v4387_v51 }
 0xde1   :  { %v4713_v10 = vpop.eup %4712 }
 0xde2   :  { %v4370_v61 = vmul.f32 %v4713_v10, %v4353_v27  ;;  %v4392_v19 = vsel %vm162_vm0, %v4390_v31, 0.0  ;;  %vm4375_vm14 = vweird.f32 %v4713_v10 }
 0xde3   :  { %4394 = vst [vmem:[#allocation13] sm:$0xff] %v4392_v19  ;;  %vm4376_vm3 = vmor %vm4374_vm15, %vm4375_vm14 }
 0xde4   :  { %v4371_v39 = vsub.f32 1.0, %v4370_v61 }
 0xde6   :  { %v4372_v14 = vmul.f32 %v4713_v10, %v4371_v39 }
 0xde8   :  { %v4373_v4 = vadd.f32 %v4713_v10, %v4372_v14 }
 0xdea   :  { %v4377_v11 = vsel %vm4376_vm3, %v4713_v10, %v4373_v4 }
 0xdeb   :  { %v4382_v32 = vsel %vm4379_vm4, %v4381_v50, %v4377_v11 }
 0xdec   :  { %v4385_v6 = vmul.f32 %v4382_v32, %v6631_v57 }
 0xdee   :  { %v4388_v30 = vmul.f32 %v4622_v17, %v4385_v6 }
 0xdf0   :  { %v4391_v13 = vadd.f32 %v4623_v63, %v4388_v30 }
 0xdf2   :  { %v4393_v0 = vsel %vm162_vm0, %v4391_v13, 0.0 }
 0xdf3   :  { %4395 = vst [vmem:[#allocation13 + $0x8] sm:$0xff] %v4393_v0 }
 0xdf4   :  { %4408 = dma.vmem_to_hbm [thread:$0]  %s4401_s1, 256, %s4403_s12, [#allocation4], %s4899_s29, %s4899_s29, %s4900_s30  }
 0xdf5   :  { %4896 = dma.done.wait [#allocation4], 256  }
 0xdf6   :  { %4897 = vsyncadd [#allocation4], 4294967040 }
 0xdf7   :  { %4413 = vsyncpa [#allocation3], 1 }
 0xdf8   :  { %4414 = vsyncpa [#allocation6], 1 }
 0xdf9   :  { %4415 = vsyncpa [#allocation9], 1 }
 0xdfa   :  { %4416 = vsyncpa [#allocation12], 1 }
 0xdfb   :  { %4417 = vsyncpa [#allocation4], 1 }

</bundles_post_ra>
